<compile_context>
chip_gen: v7x
topology: tpu7x:2x2x1
jax: 0.10.0
libtpu: 0.0.40
codegen_flags: <defaults>
</compile_context>

<pallas_src>
import functools
import math

import jax
import jax.numpy as jnp
from jax import lax
from jax.experimental import pallas as pl
from jax.experimental.pallas import tpu as pltpu


# --------------------------------------------------------------------------
# Small helpers
# --------------------------------------------------------------------------
def _round_up(n, m):
    return ((n + m - 1) // m) * m


def _largest_divisor(n, cap):
    """Largest divisor of n that is <= cap (>=1)."""
    best = 1
    for d in range(1, min(n, cap) + 1):
        if n % d == 0:
            best = d
    return best


def _pick_tile(n, target, multiple):
    """Largest divisor of n that is a multiple of `multiple` and <= target; else n."""
    best = None
    d = multiple
    while d <= min(n, target):
        if n % d == 0:
            best = d
        d += multiple
    return best if best is not None else n


def _pad_gate_weight(w, nhid, in_size, nhid_p, in_p):
    """PyTorch LSTM weight (4*nhid, in) -> padded, transposed (in_p, 4*nhid_p).

    Gate order (i, f, g, o) is preserved; each gate occupies a lane-aligned
    nhid_p-wide column block, padded columns/rows are zero."""
    w4 = w.reshape(4, nhid, in_size)
    w4 = jnp.pad(w4, ((0, 0), (0, nhid_p - nhid), (0, in_p - in_size)))
    return jnp.transpose(w4, (2, 0, 1)).reshape(in_p, 4 * nhid_p)


# --------------------------------------------------------------------------
# LSTM layer kernel
#   grid = (batch_blocks, time_blocks)  with time blocked TB steps per call.
#   h/c carried through the in-kernel loop in registers, persisted in VMEM
#   scratch across time blocks.  PyTorch gate order: i, f, g, o.
# --------------------------------------------------------------------------
def _lstm_layer_kernel(x_ref, h0_ref, c0_ref, wih_ref, whh_ref, b_ref,
                       y_ref, hn_ref, cn_ref, h_scr, c_scr, *, nhid, t_block):
    @pl.when(pl.program_id(1) == 0)
    def _():
        h_scr[...] = h0_ref[...]
        c_scr[...] = c0_ref[...]

    def step(t, carry):
        h, c = carry
        x = x_ref[t]                                                   # (BB, nin)
        gates = (jnp.dot(x, wih_ref[...], preferred_element_type=jnp.float32)
                 + jnp.dot(h, whh_ref[...], preferred_element_type=jnp.float32)
                 + b_ref[...])                                         # (BB, 4*nhid)
        # nhid is a multiple of 128 -> lane-aligned gate slices (no XLU shuffles).
        i_g = jax.nn.sigmoid(gates[:, 0 * nhid:1 * nhid])
        f_g = jax.nn.sigmoid(gates[:, 1 * nhid:2 * nhid])
        g_g = jnp.tanh(gates[:, 2 * nhid:3 * nhid])
        o_g = jax.nn.sigmoid(gates[:, 3 * nhid:4 * nhid])
        c_new = f_g * c + i_g * g_g
        h_new = o_g * jnp.tanh(c_new)
        y_ref[t] = h_new
        return h_new, c_new

    h_fin, c_fin = lax.fori_loop(0, t_block, step,
                                 (h_scr[...], c_scr[...]), unroll=True)
    h_scr[...] = h_fin
    c_scr[...] = c_fin
    # Written every grid step (cheap) so the final-state outputs are always valid.
    hn_ref[...] = h_fin
    cn_ref[...] = c_fin


def lstm_layer(x, h0, c0, wih_t, whh_t, b):
    S, Bp, nin = x.shape
    nhid = h0.shape[-1]
    tb = _largest_divisor(S, 32)            # time steps per grid invocation
    bb = _pick_tile(Bp, 128, 8)             # batch rows per grid invocation

    kernel = functools.partial(_lstm_layer_kernel, nhid=nhid, t_block=tb)
    return pl.pallas_call(
        kernel,
        out_shape=(jax.ShapeDtypeStruct((S, Bp, nhid), jnp.float32),
                   jax.ShapeDtypeStruct((Bp, nhid), jnp.float32),
                   jax.ShapeDtypeStruct((Bp, nhid), jnp.float32)),
        grid_spec=pltpu.PrefetchScalarGridSpec(
            num_scalar_prefetch=0,
            grid=(Bp // bb, S // tb),
            in_specs=[
                pl.BlockSpec((tb, bb, nin), lambda bi, ti: (ti, bi, 0)),
                pl.BlockSpec((bb, nhid), lambda bi, ti: (bi, 0)),
                pl.BlockSpec((bb, nhid), lambda bi, ti: (bi, 0)),
                pl.BlockSpec((nin, 4 * nhid), lambda bi, ti: (0, 0)),
                pl.BlockSpec((nhid, 4 * nhid), lambda bi, ti: (0, 0)),
                pl.BlockSpec((1, 4 * nhid), lambda bi, ti: (0, 0)),
            ],
            out_specs=[
                pl.BlockSpec((tb, bb, nhid), lambda bi, ti: (ti, bi, 0)),
                pl.BlockSpec((bb, nhid), lambda bi, ti: (bi, 0)),
                pl.BlockSpec((bb, nhid), lambda bi, ti: (bi, 0)),
            ],
            scratch_shapes=[pltpu.VMEM((bb, nhid), jnp.float32),
                            pltpu.VMEM((bb, nhid), jnp.float32)],
        ),
        compiler_params=pltpu.CompilerParams(
            # batch blocks are independent (megacore on v7x); time is serial.
            dimension_semantics=("parallel", "arbitrary")),
    )(x, h0, c0, wih_t, whh_t, b)


# --------------------------------------------------------------------------
# Attention kernel: all sliding windows of one chunk processed at once.
#   Input is the flattened (time*batch, H) slab of (n_win + win - 1) steps.
#   fc1 = sum over t of  X[t : t+n_win] @ W1_t  -> win large matmuls,
#   then fc2 -> ReLU -> softmax -> alpha-weighted sum, all on full tiles.
# --------------------------------------------------------------------------
def _attn_window_kernel(x_ref, w1_ref, b1_ref, w2_ref, b2_ref, out_ref,
                        *, win, n_win, batch, nhid):
    nb = n_win * batch
    h = nhid

    # fc1 (bias broadcast once, hoisted out of any loop).
    h1 = (jnp.dot(x_ref[0:nb, :], w1_ref[0:h, :],
                  preferred_element_type=jnp.float32) + b1_ref[...])
    for t in range(1, win):
        h1 = h1 + jnp.dot(x_ref[t * batch:t * batch + nb, :],
                          w1_ref[t * h:(t + 1) * h, :],
                          preferred_element_type=jnp.float32)
    h1 = jnp.maximum(h1, 0.0)                     # ReLU (Dropout = identity, eval)

    # fc2 -> ReLU -> softmax over the window axis (matches reference: ReLU then softmax)
    attn = jnp.dot(h1, w2_ref[...], preferred_element_type=jnp.float32) + b2_ref[...]
    attn = jnp.maximum(attn, 0.0)                 # (nb, win)
    attn_max = jnp.max(attn, axis=1, keepdims=True)
    e = jnp.exp(attn - attn_max)
    alpha = e / jnp.sum(e, axis=1, keepdims=True)  # (nb, win)

    # alpha-weighted sum over the window (resident slab, static shifted views).
    feat = x_ref[0:nb, :] * alpha[:, 0:1]
    for t in range(1, win):
        feat = feat + x_ref[t * batch:t * batch + nb, :] * alpha[:, t:t + 1]
    out_ref[...] = feat


def attention(lstm_out, w1_t, b1, w2_t, b2, *, win, max_windows_per_call=512):
    """Sliding-window attention.  First (win-1) steps pass through unchanged;
    the windowed part is computed in chunks (halo = win-1) to bound VMEM."""
    S, B, H = lstm_out.shape
    n_win = S - win + 1
    prefix = lstm_out[:min(win - 1, S)]
    if n_win <= 0:
        return prefix

    pieces = [prefix]
    start = 0
    while start < n_win:
        cw = min(max_windows_per_call, n_win - start)
        x_chunk = lstm_out[start:start + cw + win - 1]          # (cw+win-1, B, H)
        x2d = x_chunk.reshape((cw + win - 1) * B, H)            # free reshape
        kernel = functools.partial(_attn_window_kernel,
                                   win=win, n_win=cw, batch=B, nhid=H)
        feat2d = pl.pallas_call(
            kernel,
            out_shape=jax.ShapeDtypeStruct((cw * B, H), jnp.float32),
            compiler_params=pltpu.CompilerParams(
                vmem_limit_bytes=32 * 1024 * 1024),
        )(x2d, w1_t, b1, w2_t, b2)
        pieces.append(feat2d.reshape(cw, B, H))
        start += cw
    return jnp.concatenate(pieces, axis=0)


# --------------------------------------------------------------------------
# Decoder: tiled matmul + bias.  Weight in bf16 (MXU), f32 accumulation.
#   Grid: vocab-column tile outer so the weight tile is reused across row tiles.
# --------------------------------------------------------------------------
def _decoder_kernel(x_ref, w_ref, b_ref, out_ref):
    out_ref[...] = (jnp.dot(x_ref[...].astype(w_ref.dtype), w_ref[...],
                            preferred_element_type=jnp.float32)
                    + b_ref[...])


def decoder(x2d, w_t, b):
    rows, H = x2d.shape
    ntok = w_t.shape[1]
    tm = _pick_tile(rows, 256, 8)
    tn = _pick_tile(ntok, 512, 128)
    return pl.pallas_call(
        _decoder_kernel,
        out_shape=jax.ShapeDtypeStruct((rows, ntok), jnp.float32),
        grid_spec=pltpu.PrefetchScalarGridSpec(
            num_scalar_prefetch=0,
            grid=(ntok // tn, rows // tm),
            in_specs=[
                pl.BlockSpec((tm, H), lambda j, i: (i, 0)),
                pl.BlockSpec((H, tn), lambda j, i: (0, j)),
                pl.BlockSpec((1, tn), lambda j, i: (0, j)),
            ],
            out_specs=pl.BlockSpec((tm, tn), lambda j, i: (i, j)),
        ),
        compiler_params=pltpu.CompilerParams(
            dimension_semantics=("parallel", "parallel")),
    )(x2d, w_t, b)


# --------------------------------------------------------------------------
# RNNModel (rnn_type='LSTM') wrapper with deterministic init.
# --------------------------------------------------------------------------
class RNNModelPallas:
    ATTN_WIN = 8  # Attention(8, nhid) in the reference module

    def __init__(self, ntoken, ninp, nhid, nlayers, key):
        self.ntoken, self.ninp, self.nhid, self.nlayers = ntoken, ninp, nhid, nlayers
        # Lane / sublane friendly padded sizes.
        self.ninp_p = _round_up(ninp, 128)
        self.nhid_p = _round_up(nhid, 128)
        self.ntoken_p = _round_up(ntoken, 128)

        initrange = 0.1
        keys = iter(jax.random.split(key, 4 + 4 * nlayers))

        # encoder / decoder (PyTorch init_weights)
        enc_w = jax.random.uniform(next(keys), (ntoken, ninp),
                                   minval=-initrange, maxval=initrange)
        self.enc_w = jnp.pad(enc_w, ((0, 0), (0, self.ninp_p - ninp)))

        dec_w = jax.random.uniform(next(keys), (ntoken, nhid),
                                   minval=-initrange, maxval=initrange)
        dec_w = jnp.pad(dec_w, ((0, self.ntoken_p - ntoken), (0, self.nhid_p - nhid)))
        self.dec_w_t = dec_w.T.astype(jnp.bfloat16)        # (nhid_p, ntoken_p), bf16
        self.dec_b = jnp.zeros((1, self.ntoken_p), jnp.float32)

        # LSTM layers (PyTorch default uniform(-1/sqrt(nhid), 1/sqrt(nhid)))
        s = 1.0 / math.sqrt(nhid)
        self.wih_t, self.whh_t, self.lstm_b = [], [], []
        for layer in range(nlayers):
            in_size = ninp if layer == 0 else nhid
            in_p = self.ninp_p if layer == 0 else self.nhid_p
            wih = jax.random.uniform(next(keys), (4 * nhid, in_size), minval=-s, maxval=s)
            whh = jax.random.uniform(next(keys), (4 * nhid, nhid), minval=-s, maxval=s)
            bih = jax.random.uniform(next(keys), (4 * nhid,), minval=-s, maxval=s)
            bhh = jax.random.uniform(next(keys), (4 * nhid,), minval=-s, maxval=s)
            self.wih_t.append(_pad_gate_weight(wih, nhid, in_size, self.nhid_p, in_p))
            self.whh_t.append(_pad_gate_weight(whh, nhid, nhid, self.nhid_p, self.nhid_p))
            bsum = (bih + bhh).reshape(4, nhid)
            bsum = jnp.pad(bsum, ((0, 0), (0, self.nhid_p - nhid)))
            self.lstm_b.append(bsum.reshape(1, 4 * self.nhid_p))

        # Attention fc: Linear(8*nhid, nhid) -> ReLU -> Dropout -> Linear(nhid, 8) -> ReLU
        win = self.ATTN_WIN
        w1 = jax.random.uniform(next(keys), (nhid, win * nhid),
                                minval=-initrange, maxval=initrange)
        # PyTorch .view(batch, -1) flattening is time-major then hidden.
        w1 = w1.reshape(nhid, win, nhid)                  # (out, t, h_in)
        w1 = jnp.pad(w1, ((0, self.nhid_p - nhid), (0, 0), (0, self.nhid_p - nhid)))
        self.attn_w1_t = jnp.transpose(w1, (1, 2, 0)).reshape(
            win * self.nhid_p, self.nhid_p)               # (win*nhid_p, nhid_p)
        self.attn_b1 = jnp.zeros((1, self.nhid_p), jnp.float32)

        w2 = jax.random.uniform(next(keys), (win, nhid),
                                minval=-initrange, maxval=initrange)
        self.attn_w2_t = jnp.pad(w2, ((0, 0), (0, self.nhid_p - nhid))).T  # (nhid_p, win)
        self.attn_b2 = jnp.zeros((1, win), jnp.float32)

    def init_hidden(self, bsz):
        z = jnp.zeros((self.nlayers, bsz, self.nhid), jnp.float32)
        return (z, z)

    def __call__(self, tokens, hidden):
        h0, c0 = hidden                                   # (nlayers, B, nhid)
        S, B = tokens.shape
        B_p = _round_up(max(B, 8), 8)
        pad_b = B_p - B
        pad_h = self.nhid_p - self.nhid

        # encoder embedding lookup (gather glue); dropout = identity in eval mode.
        x = jnp.take(self.enc_w, tokens, axis=0)          # (S, B, ninp_p)
        x = jnp.pad(x, ((0, 0), (0, pad_b), (0, 0)))      # (S, B_p, ninp_p)

        h0 = jnp.pad(h0, ((0, 0), (0, pad_b), (0, pad_h)))
        c0 = jnp.pad(c0, ((0, 0), (0, pad_b), (0, pad_h)))

        hns, cns = [], []
        for layer in range(self.nlayers):
            x, hn, cn = lstm_layer(x, h0[layer], c0[layer],
                                   self.wih_t[layer], self.whh_t[layer],
                                   self.lstm_b[layer])
            hns.append(hn[:B, :self.nhid])
            cns.append(cn[:B, :self.nhid])

        out = attention(x, self.attn_w1_t, self.attn_b1,
                        self.attn_w2_t, self.attn_b2,
                        win=self.ATTN_WIN)                # (S, B_p, nhid_p)

        S_out = out.shape[0]
        decoded = decoder(out.reshape(S_out * B_p, self.nhid_p),
                          self.dec_w_t, self.dec_b)       # (S*B_p, ntoken_p)
        decoded = decoded.reshape(S_out, B_p, self.ntoken_p)[:, :B, :self.ntoken]
        return decoded, (jnp.stack(hns), jnp.stack(cns))


if __name__ == "__main__":
    ntoken, ninp, nhid, nlayers = 50, 16, 32, 2
    S, B = 8, 2   # S must be >= attention window (8)

    key = jax.random.PRNGKey(0)
    k_params, k_tok = jax.random.split(key)

    model = RNNModelPallas(ntoken, ninp, nhid, nlayers, k_params)
    tokens = jax.random.randint(k_tok, (S, B), 0, ntoken, dtype=jnp.int32)
    hidden = model.init_hidden(B)

    decoded, hidden_out = model(tokens, hidden)
    jax.block_until_ready(decoded)
    jax.block_until_ready(hidden_out)

    assert decoded.shape == (S, B, ntoken)
    assert hidden_out[0].shape == (nlayers, B, nhid)
    assert hidden_out[1].shape == (nlayers, B, nhid)
    print("KERNEL_OK")
</pallas_src>

<mosaic_0001>
module attributes {stable_mosaic.version = 11 : i64} {
  func.func @_lstm_layer_kernel(%arg0: i32, %arg1: i32, %arg2: memref<8x8x128xf32, #tpu.memory_space<vmem>>, %arg3: memref<8x128xf32, #tpu.memory_space<vmem>>, %arg4: memref<8x128xf32, #tpu.memory_space<vmem>>, %arg5: memref<128x512xf32, #tpu.memory_space<vmem>>, %arg6: memref<128x512xf32, #tpu.memory_space<vmem>>, %arg7: memref<1x512xf32, #tpu.memory_space<vmem>>, %arg8: memref<8x8x128xf32, #tpu.memory_space<vmem>>, %arg9: memref<8x128xf32, #tpu.memory_space<vmem>>, %arg10: memref<8x128xf32, #tpu.memory_space<vmem>>, %arg11: memref<8x128xf32, #tpu.memory_space<vmem>>, %arg12: memref<8x128xf32, #tpu.memory_space<vmem>>) attributes {dimension_semantics = [#tpu.dimension_semantics<parallel>, #tpu.dimension_semantics<arbitrary>], iteration_bounds = array<i64: 1, 1>, scalar_prefetch = 0 : i64, scratch_operands = 2 : i64, tpu.core_type = #tpu.core_type<tc>, window_params = [{transform_indices = @transform_0, window_bounds = array<i64: 8, 8, 128>}, {transform_indices = @transform_1, window_bounds = array<i64: 8, 128>}, {transform_indices = @transform_2, window_bounds = array<i64: 8, 128>}, {pipeline_mode = #tpu.pipeline_mode<synchronous>, transform_indices = @transform_3, window_bounds = array<i64: 128, 512>}, {pipeline_mode = #tpu.pipeline_mode<synchronous>, transform_indices = @transform_4, window_bounds = array<i64: 128, 512>}, {pipeline_mode = #tpu.pipeline_mode<synchronous>, transform_indices = @transform_5, window_bounds = array<i64: 1, 512>}, {transform_indices = @transform_6, window_bounds = array<i64: 8, 8, 128>}, {transform_indices = @transform_7, window_bounds = array<i64: 8, 128>}, {transform_indices = @transform_8, window_bounds = array<i64: 8, 128>}]} {
    %c0_i32 = arith.constant 0 : i32
    %0 = arith.cmpi eq, %arg1, %c0_i32 : i32
    %1 = arith.extui %0 : i1 to i32
    %c0_i32_0 = arith.constant 0 : i32
    %2 = arith.cmpi ne, %1, %c0_i32_0 : i32
    scf.if %2 {
      %c0_132 = arith.constant 0 : index
      %c0_133 = arith.constant 0 : index
      %329 = vector.load %arg3[%c0_132, %c0_133] : memref<8x128xf32, #tpu.memory_space<vmem>>, vector<8x128xf32>
      %c0_134 = arith.constant 0 : index
      %c0_135 = arith.constant 0 : index
      %330 = vector.load %arg11[%c0_134, %c0_135] : memref<8x128xf32, #tpu.memory_space<vmem>>, vector<8x128xf32>
      tpu.vector_store %arg11[%c0_134, %c0_135], %329 {strides = array<i32>} : memref<8x128xf32, #tpu.memory_space<vmem>>, vector<8x128xf32>,
      %c0_136 = arith.constant 0 : index
      %c0_137 = arith.constant 0 : index
      %331 = vector.load %arg4[%c0_136, %c0_137] : memref<8x128xf32, #tpu.memory_space<vmem>>, vector<8x128xf32>
      %c0_138 = arith.constant 0 : index
      %c0_139 = arith.constant 0 : index
      %332 = vector.load %arg12[%c0_138, %c0_139] : memref<8x128xf32, #tpu.memory_space<vmem>>, vector<8x128xf32>
      tpu.vector_store %arg12[%c0_138, %c0_139], %331 {strides = array<i32>} : memref<8x128xf32, #tpu.memory_space<vmem>>, vector<8x128xf32>,
    } else {
    }
    %c0 = arith.constant 0 : index
    %c0_1 = arith.constant 0 : index
    %3 = vector.load %arg11[%c0, %c0_1] : memref<8x128xf32, #tpu.memory_space<vmem>>, vector<8x128xf32>
    %c0_2 = arith.constant 0 : index
    %c0_3 = arith.constant 0 : index
    %4 = vector.load %arg12[%c0_2, %c0_3] : memref<8x128xf32, #tpu.memory_space<vmem>>, vector<8x128xf32>
    %c0_i32_4 = arith.constant 0 : i32
    %5 = arith.index_cast %c0_i32_4 : i32 to index
    %c0_5 = arith.constant 0 : index
    %c0_6 = arith.constant 0 : index
    %6 = vector.load %arg2[%5, %c0_5, %c0_6] : memref<8x8x128xf32, #tpu.memory_space<vmem>>, vector<1x8x128xf32>
    %7 = vector.shape_cast %6 : vector<1x8x128xf32> to vector<8x128xf32>
    %c0_7 = arith.constant 0 : index
    %c0_8 = arith.constant 0 : index
    %8 = vector.load %arg5[%c0_7, %c0_8] : memref<128x512xf32, #tpu.memory_space<vmem>>, vector<128x512xf32>
    %cst = arith.constant dense<0.000000e+00> : vector<8x512xf32>
    %9 = tpu.matmul %7, %8, %cst {dimension_numbers = #tpu.dot_dimension_numbers<[1], [0], [0], [1], [0, 0, 1, 1], [], []>} : vector<8x128xf32>, vector<128x512xf32>, vector<8x512xf32> -> vector<8x512xf32>
    %c0_9 = arith.constant 0 : index
    %c0_10 = arith.constant 0 : index
    %10 = vector.load %arg6[%c0_9, %c0_10] : memref<128x512xf32, #tpu.memory_space<vmem>>, vector<128x512xf32>
    %cst_11 = arith.constant dense<0.000000e+00> : vector<8x512xf32>
    %11 = tpu.matmul %3, %10, %cst_11 {dimension_numbers = #tpu.dot_dimension_numbers<[1], [0], [0], [1], [0, 0, 1, 1], [], []>} : vector<8x128xf32>, vector<128x512xf32>, vector<8x512xf32> -> vector<8x512xf32>
    %12 = arith.addf %9, %11 : vector<8x512xf32>
    %c0_12 = arith.constant 0 : index
    %c0_13 = arith.constant 0 : index
    %13 = vector.load %arg7[%c0_12, %c0_13] : memref<1x512xf32, #tpu.memory_space<vmem>>, vector<1x512xf32>
    %14 = vector.broadcast %13 : vector<1x512xf32> to vector<8x512xf32>
    %15 = arith.addf %12, %14 : vector<8x512xf32>
    %16 = vector.extract_strided_slice %15 {offsets = [0, 0], sizes = [8, 128], strides = [1, 1]} : vector<8x512xf32> to vector<8x128xf32>
    %17 = arith.negf %16 : vector<8x128xf32>
    %18 = math.exp %17 : vector<8x128xf32>
    %cst_14 = arith.constant 1.000000e+00 : f32
    %19 = vector.broadcast %cst_14 : f32 to vector<8x128xf32>
    %20 = arith.addf %19, %18 : vector<8x128xf32>
    %21 = arith.divf %19, %20 : vector<8x128xf32>
    %22 = vector.extract_strided_slice %15 {offsets = [0, 128], sizes = [8, 128], strides = [1, 1]} : vector<8x512xf32> to vector<8x128xf32>
    %23 = arith.negf %22 : vector<8x128xf32>
    %24 = math.exp %23 : vector<8x128xf32>
    %cst_15 = arith.constant 1.000000e+00 : f32
    %25 = vector.broadcast %cst_15 : f32 to vector<8x128xf32>
    %26 = arith.addf %25, %24 : vector<8x128xf32>
    %27 = arith.divf %25, %26 : vector<8x128xf32>
    %28 = vector.extract_strided_slice %15 {offsets = [0, 256], sizes = [8, 128], strides = [1, 1]} : vector<8x512xf32> to vector<8x128xf32>
    %29 = math.tanh %28 : vector<8x128xf32>
    %30 = vector.extract_strided_slice %15 {offsets = [0, 384], sizes = [8, 128], strides = [1, 1]} : vector<8x512xf32> to vector<8x128xf32>
    %31 = arith.negf %30 : vector<8x128xf32>
    %32 = math.exp %31 : vector<8x128xf32>
    %cst_16 = arith.constant 1.000000e+00 : f32
    %33 = vector.broadcast %cst_16 : f32 to vector<8x128xf32>
    %34 = arith.addf %33, %32 : vector<8x128xf32>
    %35 = arith.divf %33, %34 : vector<8x128xf32>
    %36 = arith.mulf %27, %4 : vector<8x128xf32>
    %37 = arith.mulf %21, %29 : vector<8x128xf32>
    %38 = arith.addf %36, %37 : vector<8x128xf32>
    %39 = math.tanh %38 : vector<8x128xf32>
    %40 = arith.mulf %35, %39 : vector<8x128xf32>
    %41 = arith.index_cast %c0_i32_4 : i32 to index
    %c0_17 = arith.constant 0 : index
    %c0_18 = arith.constant 0 : index
    %42 = vector.load %arg8[%41, %c0_17, %c0_18] : memref<8x8x128xf32, #tpu.memory_space<vmem>>, vector<1x8x128xf32>
    %43 = vector.shape_cast %42 : vector<1x8x128xf32> to vector<8x128xf32>
    %44 = vector.shape_cast %40 : vector<8x128xf32> to vector<1x8x128xf32>
    tpu.vector_store %arg8[%41, %c0_17, %c0_18], %44 {strides = array<i32>} : memref<8x8x128xf32, #tpu.memory_space<vmem>>, vector<1x8x128xf32>,
    %c1_i32 = arith.constant 1 : i32
    %45 = arith.index_cast %c1_i32 : i32 to index
    %c0_19 = arith.constant 0 : index
    %c0_20 = arith.constant 0 : index
    %46 = vector.load %arg2[%45, %c0_19, %c0_20] : memref<8x8x128xf32, #tpu.memory_space<vmem>>, vector<1x8x128xf32>
    %47 = vector.shape_cast %46 : vector<1x8x128xf32> to vector<8x128xf32>
    %c0_21 = arith.constant 0 : index
    %c0_22 = arith.constant 0 : index
    %48 = vector.load %arg5[%c0_21, %c0_22] : memref<128x512xf32, #tpu.memory_space<vmem>>, vector<128x512xf32>
    %cst_23 = arith.constant dense<0.000000e+00> : vector<8x512xf32>
    %49 = tpu.matmul %47, %48, %cst_23 {dimension_numbers = #tpu.dot_dimension_numbers<[1], [0], [0], [1], [0, 0, 1, 1], [], []>} : vector<8x128xf32>, vector<128x512xf32>, vector<8x512xf32> -> vector<8x512xf32>
    %c0_24 = arith.constant 0 : index
    %c0_25 = arith.constant 0 : index
    %50 = vector.load %arg6[%c0_24, %c0_25] : memref<128x512xf32, #tpu.memory_space<vmem>>, vector<128x512xf32>
    %cst_26 = arith.constant dense<0.000000e+00> : vector<8x512xf32>
    %51 = tpu.matmul %40, %50, %cst_26 {dimension_numbers = #tpu.dot_dimension_numbers<[1], [0], [0], [1], [0, 0, 1, 1], [], []>} : vector<8x128xf32>, vector<128x512xf32>, vector<8x512xf32> -> vector<8x512xf32>
    %52 = arith.addf %49, %51 : vector<8x512xf32>
    %c0_27 = arith.constant 0 : index
    %c0_28 = arith.constant 0 : index
    %53 = vector.load %arg7[%c0_27, %c0_28] : memref<1x512xf32, #tpu.memory_space<vmem>>, vector<1x512xf32>
    %54 = vector.broadcast %53 : vector<1x512xf32> to vector<8x512xf32>
    %55 = arith.addf %52, %54 : vector<8x512xf32>
    %56 = vector.extract_strided_slice %55 {offsets = [0, 0], sizes = [8, 128], strides = [1, 1]} : vector<8x512xf32> to vector<8x128xf32>
    %57 = arith.negf %56 : vector<8x128xf32>
    %58 = math.exp %57 : vector<8x128xf32>
    %cst_29 = arith.constant 1.000000e+00 : f32
    %59 = vector.broadcast %cst_29 : f32 to vector<8x128xf32>
    %60 = arith.addf %59, %58 : vector<8x128xf32>
    %61 = arith.divf %59, %60 : vector<8x128xf32>
    %62 = vector.extract_strided_slice %55 {offsets = [0, 128], sizes = [8, 128], strides = [1, 1]} : vector<8x512xf32> to vector<8x128xf32>
    %63 = arith.negf %62 : vector<8x128xf32>
    %64 = math.exp %63 : vector<8x128xf32>
    %cst_30 = arith.constant 1.000000e+00 : f32
    %65 = vector.broadcast %cst_30 : f32 to vector<8x128xf32>
    %66 = arith.addf %65, %64 : vector<8x128xf32>
    %67 = arith.divf %65, %66 : vector<8x128xf32>
    %68 = vector.extract_strided_slice %55 {offsets = [0, 256], sizes = [8, 128], strides = [1, 1]} : vector<8x512xf32> to vector<8x128xf32>
    %69 = math.tanh %68 : vector<8x128xf32>
    %70 = vector.extract_strided_slice %55 {offsets = [0, 384], sizes = [8, 128], strides = [1, 1]} : vector<8x512xf32> to vector<8x128xf32>
    %71 = arith.negf %70 : vector<8x128xf32>
    %72 = math.exp %71 : vector<8x128xf32>
    %cst_31 = arith.constant 1.000000e+00 : f32
    %73 = vector.broadcast %cst_31 : f32 to vector<8x128xf32>
    %74 = arith.addf %73, %72 : vector<8x128xf32>
    %75 = arith.divf %73, %74 : vector<8x128xf32>
    %76 = arith.mulf %67, %38 : vector<8x128xf32>
    %77 = arith.mulf %61, %69 : vector<8x128xf32>
    %78 = arith.addf %76, %77 : vector<8x128xf32>
    %79 = math.tanh %78 : vector<8x128xf32>
    %80 = arith.mulf %75, %79 : vector<8x128xf32>
    %81 = arith.index_cast %c1_i32 : i32 to index
    %c0_32 = arith.constant 0 : index
    %c0_33 = arith.constant 0 : index
    %82 = vector.load %arg8[%81, %c0_32, %c0_33] : memref<8x8x128xf32, #tpu.memory_space<vmem>>, vector<1x8x128xf32>
    %83 = vector.shape_cast %82 : vector<1x8x128xf32> to vector<8x128xf32>
    %84 = vector.shape_cast %80 : vector<8x128xf32> to vector<1x8x128xf32>
    tpu.vector_store %arg8[%81, %c0_32, %c0_33], %84 {strides = array<i32>} : memref<8x8x128xf32, #tpu.memory_space<vmem>>, vector<1x8x128xf32>,
    %c2_i32 = arith.constant 2 : i32
    %85 = arith.index_cast %c2_i32 : i32 to index
    %c0_34 = arith.constant 0 : index
    %c0_35 = arith.constant 0 : index
    %86 = vector.load %arg2[%85, %c0_34, %c0_35] : memref<8x8x128xf32, #tpu.memory_space<vmem>>, vector<1x8x128xf32>
    %87 = vector.shape_cast %86 : vector<1x8x128xf32> to vector<8x128xf32>
    %c0_36 = arith.constant 0 : index
    %c0_37 = arith.constant 0 : index
    %88 = vector.load %arg5[%c0_36, %c0_37] : memref<128x512xf32, #tpu.memory_space<vmem>>, vector<128x512xf32>
    %cst_38 = arith.constant dense<0.000000e+00> : vector<8x512xf32>
    %89 = tpu.matmul %87, %88, %cst_38 {dimension_numbers = #tpu.dot_dimension_numbers<[1], [0], [0], [1], [0, 0, 1, 1], [], []>} : vector<8x128xf32>, vector<128x512xf32>, vector<8x512xf32> -> vector<8x512xf32>
    %c0_39 = arith.constant 0 : index
    %c0_40 = arith.constant 0 : index
    %90 = vector.load %arg6[%c0_39, %c0_40] : memref<128x512xf32, #tpu.memory_space<vmem>>, vector<128x512xf32>
    %cst_41 = arith.constant dense<0.000000e+00> : vector<8x512xf32>
    %91 = tpu.matmul %80, %90, %cst_41 {dimension_numbers = #tpu.dot_dimension_numbers<[1], [0], [0], [1], [0, 0, 1, 1], [], []>} : vector<8x128xf32>, vector<128x512xf32>, vector<8x512xf32> -> vector<8x512xf32>
    %92 = arith.addf %89, %91 : vector<8x512xf32>
    %c0_42 = arith.constant 0 : index
    %c0_43 = arith.constant 0 : index
    %93 = vector.load %arg7[%c0_42, %c0_43] : memref<1x512xf32, #tpu.memory_space<vmem>>, vector<1x512xf32>
    %94 = vector.broadcast %93 : vector<1x512xf32> to vector<8x512xf32>
    %95 = arith.addf %92, %94 : vector<8x512xf32>
    %96 = vector.extract_strided_slice %95 {offsets = [0, 0], sizes = [8, 128], strides = [1, 1]} : vector<8x512xf32> to vector<8x128xf32>
    %97 = arith.negf %96 : vector<8x128xf32>
    %98 = math.exp %97 : vector<8x128xf32>
    %cst_44 = arith.constant 1.000000e+00 : f32
    %99 = vector.broadcast %cst_44 : f32 to vector<8x128xf32>
    %100 = arith.addf %99, %98 : vector<8x128xf32>
    %101 = arith.divf %99, %100 : vector<8x128xf32>
    %102 = vector.extract_strided_slice %95 {offsets = [0, 128], sizes = [8, 128], strides = [1, 1]} : vector<8x512xf32> to vector<8x128xf32>
    %103 = arith.negf %102 : vector<8x128xf32>
    %104 = math.exp %103 : vector<8x128xf32>
    %cst_45 = arith.constant 1.000000e+00 : f32
    %105 = vector.broadcast %cst_45 : f32 to vector<8x128xf32>
    %106 = arith.addf %105, %104 : vector<8x128xf32>
    %107 = arith.divf %105, %106 : vector<8x128xf32>
    %108 = vector.extract_strided_slice %95 {offsets = [0, 256], sizes = [8, 128], strides = [1, 1]} : vector<8x512xf32> to vector<8x128xf32>
    %109 = math.tanh %108 : vector<8x128xf32>
    %110 = vector.extract_strided_slice %95 {offsets = [0, 384], sizes = [8, 128], strides = [1, 1]} : vector<8x512xf32> to vector<8x128xf32>
    %111 = arith.negf %110 : vector<8x128xf32>
    %112 = math.exp %111 : vector<8x128xf32>
    %cst_46 = arith.constant 1.000000e+00 : f32
    %113 = vector.broadcast %cst_46 : f32 to vector<8x128xf32>
    %114 = arith.addf %113, %112 : vector<8x128xf32>
    %115 = arith.divf %113, %114 : vector<8x128xf32>
    %116 = arith.mulf %107, %78 : vector<8x128xf32>
    %117 = arith.mulf %101, %109 : vector<8x128xf32>
    %118 = arith.addf %116, %117 : vector<8x128xf32>
    %119 = math.tanh %118 : vector<8x128xf32>
    %120 = arith.mulf %115, %119 : vector<8x128xf32>
    %121 = arith.index_cast %c2_i32 : i32 to index
    %c0_47 = arith.constant 0 : index
    %c0_48 = arith.constant 0 : index
    %122 = vector.load %arg8[%121, %c0_47, %c0_48] : memref<8x8x128xf32, #tpu.memory_space<vmem>>, vector<1x8x128xf32>
    %123 = vector.shape_cast %122 : vector<1x8x128xf32> to vector<8x128xf32>
    %124 = vector.shape_cast %120 : vector<8x128xf32> to vector<1x8x128xf32>
    tpu.vector_store %arg8[%121, %c0_47, %c0_48], %124 {strides = array<i32>} : memref<8x8x128xf32, #tpu.memory_space<vmem>>, vector<1x8x128xf32>,
    %c3_i32 = arith.constant 3 : i32
    %125 = arith.index_cast %c3_i32 : i32 to index
    %c0_49 = arith.constant 0 : index
    %c0_50 = arith.constant 0 : index
    %126 = vector.load %arg2[%125, %c0_49, %c0_50] : memref<8x8x128xf32, #tpu.memory_space<vmem>>, vector<1x8x128xf32>
    %127 = vector.shape_cast %126 : vector<1x8x128xf32> to vector<8x128xf32>
    %c0_51 = arith.constant 0 : index
    %c0_52 = arith.constant 0 : index
    %128 = vector.load %arg5[%c0_51, %c0_52] : memref<128x512xf32, #tpu.memory_space<vmem>>, vector<128x512xf32>
    %cst_53 = arith.constant dense<0.000000e+00> : vector<8x512xf32>
    %129 = tpu.matmul %127, %128, %cst_53 {dimension_numbers = #tpu.dot_dimension_numbers<[1], [0], [0], [1], [0, 0, 1, 1], [], []>} : vector<8x128xf32>, vector<128x512xf32>, vector<8x512xf32> -> vector<8x512xf32>
    %c0_54 = arith.constant 0 : index
    %c0_55 = arith.constant 0 : index
    %130 = vector.load %arg6[%c0_54, %c0_55] : memref<128x512xf32, #tpu.memory_space<vmem>>, vector<128x512xf32>
    %cst_56 = arith.constant dense<0.000000e+00> : vector<8x512xf32>
    %131 = tpu.matmul %120, %130, %cst_56 {dimension_numbers = #tpu.dot_dimension_numbers<[1], [0], [0], [1], [0, 0, 1, 1], [], []>} : vector<8x128xf32>, vector<128x512xf32>, vector<8x512xf32> -> vector<8x512xf32>
    %132 = arith.addf %129, %131 : vector<8x512xf32>
    %c0_57 = arith.constant 0 : index
    %c0_58 = arith.constant 0 : index
    %133 = vector.load %arg7[%c0_57, %c0_58] : memref<1x512xf32, #tpu.memory_space<vmem>>, vector<1x512xf32>
    %134 = vector.broadcast %133 : vector<1x512xf32> to vector<8x512xf32>
    %135 = arith.addf %132, %134 : vector<8x512xf32>
    %136 = vector.extract_strided_slice %135 {offsets = [0, 0], sizes = [8, 128], strides = [1, 1]} : vector<8x512xf32> to vector<8x128xf32>
    %137 = arith.negf %136 : vector<8x128xf32>
    %138 = math.exp %137 : vector<8x128xf32>
    %cst_59 = arith.constant 1.000000e+00 : f32
    %139 = vector.broadcast %cst_59 : f32 to vector<8x128xf32>
    %140 = arith.addf %139, %138 : vector<8x128xf32>
    %141 = arith.divf %139, %140 : vector<8x128xf32>
    %142 = vector.extract_strided_slice %135 {offsets = [0, 128], sizes = [8, 128], strides = [1, 1]} : vector<8x512xf32> to vector<8x128xf32>
    %143 = arith.negf %142 : vector<8x128xf32>
    %144 = math.exp %143 : vector<8x128xf32>
    %cst_60 = arith.constant 1.000000e+00 : f32
    %145 = vector.broadcast %cst_60 : f32 to vector<8x128xf32>
    %146 = arith.addf %145, %144 : vector<8x128xf32>
    %147 = arith.divf %145, %146 : vector<8x128xf32>
    %148 = vector.extract_strided_slice %135 {offsets = [0, 256], sizes = [8, 128], strides = [1, 1]} : vector<8x512xf32> to vector<8x128xf32>
    %149 = math.tanh %148 : vector<8x128xf32>
    %150 = vector.extract_strided_slice %135 {offsets = [0, 384], sizes = [8, 128], strides = [1, 1]} : vector<8x512xf32> to vector<8x128xf32>
    %151 = arith.negf %150 : vector<8x128xf32>
    %152 = math.exp %151 : vector<8x128xf32>
    %cst_61 = arith.constant 1.000000e+00 : f32
    %153 = vector.broadcast %cst_61 : f32 to vector<8x128xf32>
    %154 = arith.addf %153, %152 : vector<8x128xf32>
    %155 = arith.divf %153, %154 : vector<8x128xf32>
    %156 = arith.mulf %147, %118 : vector<8x128xf32>
    %157 = arith.mulf %141, %149 : vector<8x128xf32>
    %158 = arith.addf %156, %157 : vector<8x128xf32>
    %159 = math.tanh %158 : vector<8x128xf32>
    %160 = arith.mulf %155, %159 : vector<8x128xf32>
    %161 = arith.index_cast %c3_i32 : i32 to index
    %c0_62 = arith.constant 0 : index
    %c0_63 = arith.constant 0 : index
    %162 = vector.load %arg8[%161, %c0_62, %c0_63] : memref<8x8x128xf32, #tpu.memory_space<vmem>>, vector<1x8x128xf32>
    %163 = vector.shape_cast %162 : vector<1x8x128xf32> to vector<8x128xf32>
    %164 = vector.shape_cast %160 : vector<8x128xf32> to vector<1x8x128xf32>
    tpu.vector_store %arg8[%161, %c0_62, %c0_63], %164 {strides = array<i32>} : memref<8x8x128xf32, #tpu.memory_space<vmem>>, vector<1x8x128xf32>,
    %c4_i32 = arith.constant 4 : i32
    %165 = arith.index_cast %c4_i32 : i32 to index
    %c0_64 = arith.constant 0 : index
    %c0_65 = arith.constant 0 : index
    %166 = vector.load %arg2[%165, %c0_64, %c0_65] : memref<8x8x128xf32, #tpu.memory_space<vmem>>, vector<1x8x128xf32>
    %167 = vector.shape_cast %166 : vector<1x8x128xf32> to vector<8x128xf32>
    %c0_66 = arith.constant 0 : index
    %c0_67 = arith.constant 0 : index
    %168 = vector.load %arg5[%c0_66, %c0_67] : memref<128x512xf32, #tpu.memory_space<vmem>>, vector<128x512xf32>
    %cst_68 = arith.constant dense<0.000000e+00> : vector<8x512xf32>
    %169 = tpu.matmul %167, %168, %cst_68 {dimension_numbers = #tpu.dot_dimension_numbers<[1], [0], [0], [1], [0, 0, 1, 1], [], []>} : vector<8x128xf32>, vector<128x512xf32>, vector<8x512xf32> -> vector<8x512xf32>
    %c0_69 = arith.constant 0 : index
    %c0_70 = arith.constant 0 : index
    %170 = vector.load %arg6[%c0_69, %c0_70] : memref<128x512xf32, #tpu.memory_space<vmem>>, vector<128x512xf32>
    %cst_71 = arith.constant dense<0.000000e+00> : vector<8x512xf32>
    %171 = tpu.matmul %160, %170, %cst_71 {dimension_numbers = #tpu.dot_dimension_numbers<[1], [0], [0], [1], [0, 0, 1, 1], [], []>} : vector<8x128xf32>, vector<128x512xf32>, vector<8x512xf32> -> vector<8x512xf32>
    %172 = arith.addf %169, %171 : vector<8x512xf32>
    %c0_72 = arith.constant 0 : index
    %c0_73 = arith.constant 0 : index
    %173 = vector.load %arg7[%c0_72, %c0_73] : memref<1x512xf32, #tpu.memory_space<vmem>>, vector<1x512xf32>
    %174 = vector.broadcast %173 : vector<1x512xf32> to vector<8x512xf32>
    %175 = arith.addf %172, %174 : vector<8x512xf32>
    %176 = vector.extract_strided_slice %175 {offsets = [0, 0], sizes = [8, 128], strides = [1, 1]} : vector<8x512xf32> to vector<8x128xf32>
    %177 = arith.negf %176 : vector<8x128xf32>
    %178 = math.exp %177 : vector<8x128xf32>
    %cst_74 = arith.constant 1.000000e+00 : f32
    %179 = vector.broadcast %cst_74 : f32 to vector<8x128xf32>
    %180 = arith.addf %179, %178 : vector<8x128xf32>
    %181 = arith.divf %179, %180 : vector<8x128xf32>
    %182 = vector.extract_strided_slice %175 {offsets = [0, 128], sizes = [8, 128], strides = [1, 1]} : vector<8x512xf32> to vector<8x128xf32>
    %183 = arith.negf %182 : vector<8x128xf32>
    %184 = math.exp %183 : vector<8x128xf32>
    %cst_75 = arith.constant 1.000000e+00 : f32
    %185 = vector.broadcast %cst_75 : f32 to vector<8x128xf32>
    %186 = arith.addf %185, %184 : vector<8x128xf32>
    %187 = arith.divf %185, %186 : vector<8x128xf32>
    %188 = vector.extract_strided_slice %175 {offsets = [0, 256], sizes = [8, 128], strides = [1, 1]} : vector<8x512xf32> to vector<8x128xf32>
    %189 = math.tanh %188 : vector<8x128xf32>
    %190 = vector.extract_strided_slice %175 {offsets = [0, 384], sizes = [8, 128], strides = [1, 1]} : vector<8x512xf32> to vector<8x128xf32>
    %191 = arith.negf %190 : vector<8x128xf32>
    %192 = math.exp %191 : vector<8x128xf32>
    %cst_76 = arith.constant 1.000000e+00 : f32
    %193 = vector.broadcast %cst_76 : f32 to vector<8x128xf32>
    %194 = arith.addf %193, %192 : vector<8x128xf32>
    %195 = arith.divf %193, %194 : vector<8x128xf32>
    %196 = arith.mulf %187, %158 : vector<8x128xf32>
    %197 = arith.mulf %181, %189 : vector<8x128xf32>
    %198 = arith.addf %196, %197 : vector<8x128xf32>
    %199 = math.tanh %198 : vector<8x128xf32>
    %200 = arith.mulf %195, %199 : vector<8x128xf32>
    %201 = arith.index_cast %c4_i32 : i32 to index
    %c0_77 = arith.constant 0 : index
    %c0_78 = arith.constant 0 : index
    %202 = vector.load %arg8[%201, %c0_77, %c0_78] : memref<8x8x128xf32, #tpu.memory_space<vmem>>, vector<1x8x128xf32>
    %203 = vector.shape_cast %202 : vector<1x8x128xf32> to vector<8x128xf32>
    %204 = vector.shape_cast %200 : vector<8x128xf32> to vector<1x8x128xf32>
    tpu.vector_store %arg8[%201, %c0_77, %c0_78], %204 {strides = array<i32>} : memref<8x8x128xf32, #tpu.memory_space<vmem>>, vector<1x8x128xf32>,
    %c5_i32 = arith.constant 5 : i32
    %205 = arith.index_cast %c5_i32 : i32 to index
    %c0_79 = arith.constant 0 : index
    %c0_80 = arith.constant 0 : index
    %206 = vector.load %arg2[%205, %c0_79, %c0_80] : memref<8x8x128xf32, #tpu.memory_space<vmem>>, vector<1x8x128xf32>
    %207 = vector.shape_cast %206 : vector<1x8x128xf32> to vector<8x128xf32>
    %c0_81 = arith.constant 0 : index
    %c0_82 = arith.constant 0 : index
    %208 = vector.load %arg5[%c0_81, %c0_82] : memref<128x512xf32, #tpu.memory_space<vmem>>, vector<128x512xf32>
    %cst_83 = arith.constant dense<0.000000e+00> : vector<8x512xf32>
    %209 = tpu.matmul %207, %208, %cst_83 {dimension_numbers = #tpu.dot_dimension_numbers<[1], [0], [0], [1], [0, 0, 1, 1], [], []>} : vector<8x128xf32>, vector<128x512xf32>, vector<8x512xf32> -> vector<8x512xf32>
    %c0_84 = arith.constant 0 : index
    %c0_85 = arith.constant 0 : index
    %210 = vector.load %arg6[%c0_84, %c0_85] : memref<128x512xf32, #tpu.memory_space<vmem>>, vector<128x512xf32>
    %cst_86 = arith.constant dense<0.000000e+00> : vector<8x512xf32>
    %211 = tpu.matmul %200, %210, %cst_86 {dimension_numbers = #tpu.dot_dimension_numbers<[1], [0], [0], [1], [0, 0, 1, 1], [], []>} : vector<8x128xf32>, vector<128x512xf32>, vector<8x512xf32> -> vector<8x512xf32>
    %212 = arith.addf %209, %211 : vector<8x512xf32>
    %c0_87 = arith.constant 0 : index
    %c0_88 = arith.constant 0 : index
    %213 = vector.load %arg7[%c0_87, %c0_88] : memref<1x512xf32, #tpu.memory_space<vmem>>, vector<1x512xf32>
    %214 = vector.broadcast %213 : vector<1x512xf32> to vector<8x512xf32>
    %215 = arith.addf %212, %214 : vector<8x512xf32>
    %216 = vector.extract_strided_slice %215 {offsets = [0, 0], sizes = [8, 128], strides = [1, 1]} : vector<8x512xf32> to vector<8x128xf32>
    %217 = arith.negf %216 : vector<8x128xf32>
    %218 = math.exp %217 : vector<8x128xf32>
    %cst_89 = arith.constant 1.000000e+00 : f32
    %219 = vector.broadcast %cst_89 : f32 to vector<8x128xf32>
    %220 = arith.addf %219, %218 : vector<8x128xf32>
    %221 = arith.divf %219, %220 : vector<8x128xf32>
    %222 = vector.extract_strided_slice %215 {offsets = [0, 128], sizes = [8, 128], strides = [1, 1]} : vector<8x512xf32> to vector<8x128xf32>
    %223 = arith.negf %222 : vector<8x128xf32>
    %224 = math.exp %223 : vector<8x128xf32>
    %cst_90 = arith.constant 1.000000e+00 : f32
    %225 = vector.broadcast %cst_90 : f32 to vector<8x128xf32>
    %226 = arith.addf %225, %224 : vector<8x128xf32>
    %227 = arith.divf %225, %226 : vector<8x128xf32>
    %228 = vector.extract_strided_slice %215 {offsets = [0, 256], sizes = [8, 128], strides = [1, 1]} : vector<8x512xf32> to vector<8x128xf32>
    %229 = math.tanh %228 : vector<8x128xf32>
    %230 = vector.extract_strided_slice %215 {offsets = [0, 384], sizes = [8, 128], strides = [1, 1]} : vector<8x512xf32> to vector<8x128xf32>
    %231 = arith.negf %230 : vector<8x128xf32>
    %232 = math.exp %231 : vector<8x128xf32>
    %cst_91 = arith.constant 1.000000e+00 : f32
    %233 = vector.broadcast %cst_91 : f32 to vector<8x128xf32>
    %234 = arith.addf %233, %232 : vector<8x128xf32>
    %235 = arith.divf %233, %234 : vector<8x128xf32>
    %236 = arith.mulf %227, %198 : vector<8x128xf32>
    %237 = arith.mulf %221, %229 : vector<8x128xf32>
    %238 = arith.addf %236, %237 : vector<8x128xf32>
    %239 = math.tanh %238 : vector<8x128xf32>
    %240 = arith.mulf %235, %239 : vector<8x128xf32>
    %241 = arith.index_cast %c5_i32 : i32 to index
    %c0_92 = arith.constant 0 : index
    %c0_93 = arith.constant 0 : index
    %242 = vector.load %arg8[%241, %c0_92, %c0_93] : memref<8x8x128xf32, #tpu.memory_space<vmem>>, vector<1x8x128xf32>
    %243 = vector.shape_cast %242 : vector<1x8x128xf32> to vector<8x128xf32>
    %244 = vector.shape_cast %240 : vector<8x128xf32> to vector<1x8x128xf32>
    tpu.vector_store %arg8[%241, %c0_92, %c0_93], %244 {strides = array<i32>} : memref<8x8x128xf32, #tpu.memory_space<vmem>>, vector<1x8x128xf32>,
    %c6_i32 = arith.constant 6 : i32
    %245 = arith.index_cast %c6_i32 : i32 to index
    %c0_94 = arith.constant 0 : index
    %c0_95 = arith.constant 0 : index
    %246 = vector.load %arg2[%245, %c0_94, %c0_95] : memref<8x8x128xf32, #tpu.memory_space<vmem>>, vector<1x8x128xf32>
    %247 = vector.shape_cast %246 : vector<1x8x128xf32> to vector<8x128xf32>
    %c0_96 = arith.constant 0 : index
    %c0_97 = arith.constant 0 : index
    %248 = vector.load %arg5[%c0_96, %c0_97] : memref<128x512xf32, #tpu.memory_space<vmem>>, vector<128x512xf32>
    %cst_98 = arith.constant dense<0.000000e+00> : vector<8x512xf32>
    %249 = tpu.matmul %247, %248, %cst_98 {dimension_numbers = #tpu.dot_dimension_numbers<[1], [0], [0], [1], [0, 0, 1, 1], [], []>} : vector<8x128xf32>, vector<128x512xf32>, vector<8x512xf32> -> vector<8x512xf32>
    %c0_99 = arith.constant 0 : index
    %c0_100 = arith.constant 0 : index
    %250 = vector.load %arg6[%c0_99, %c0_100] : memref<128x512xf32, #tpu.memory_space<vmem>>, vector<128x512xf32>
    %cst_101 = arith.constant dense<0.000000e+00> : vector<8x512xf32>
    %251 = tpu.matmul %240, %250, %cst_101 {dimension_numbers = #tpu.dot_dimension_numbers<[1], [0], [0], [1], [0, 0, 1, 1], [], []>} : vector<8x128xf32>, vector<128x512xf32>, vector<8x512xf32> -> vector<8x512xf32>
    %252 = arith.addf %249, %251 : vector<8x512xf32>
    %c0_102 = arith.constant 0 : index
    %c0_103 = arith.constant 0 : index
    %253 = vector.load %arg7[%c0_102, %c0_103] : memref<1x512xf32, #tpu.memory_space<vmem>>, vector<1x512xf32>
    %254 = vector.broadcast %253 : vector<1x512xf32> to vector<8x512xf32>
    %255 = arith.addf %252, %254 : vector<8x512xf32>
    %256 = vector.extract_strided_slice %255 {offsets = [0, 0], sizes = [8, 128], strides = [1, 1]} : vector<8x512xf32> to vector<8x128xf32>
    %257 = arith.negf %256 : vector<8x128xf32>
    %258 = math.exp %257 : vector<8x128xf32>
    %cst_104 = arith.constant 1.000000e+00 : f32
    %259 = vector.broadcast %cst_104 : f32 to vector<8x128xf32>
    %260 = arith.addf %259, %258 : vector<8x128xf32>
    %261 = arith.divf %259, %260 : vector<8x128xf32>
    %262 = vector.extract_strided_slice %255 {offsets = [0, 128], sizes = [8, 128], strides = [1, 1]} : vector<8x512xf32> to vector<8x128xf32>
    %263 = arith.negf %262 : vector<8x128xf32>
    %264 = math.exp %263 : vector<8x128xf32>
    %cst_105 = arith.constant 1.000000e+00 : f32
    %265 = vector.broadcast %cst_105 : f32 to vector<8x128xf32>
    %266 = arith.addf %265, %264 : vector<8x128xf32>
    %267 = arith.divf %265, %266 : vector<8x128xf32>
    %268 = vector.extract_strided_slice %255 {offsets = [0, 256], sizes = [8, 128], strides = [1, 1]} : vector<8x512xf32> to vector<8x128xf32>
    %269 = math.tanh %268 : vector<8x128xf32>
    %270 = vector.extract_strided_slice %255 {offsets = [0, 384], sizes = [8, 128], strides = [1, 1]} : vector<8x512xf32> to vector<8x128xf32>
    %271 = arith.negf %270 : vector<8x128xf32>
    %272 = math.exp %271 : vector<8x128xf32>
    %cst_106 = arith.constant 1.000000e+00 : f32
    %273 = vector.broadcast %cst_106 : f32 to vector<8x128xf32>
    %274 = arith.addf %273, %272 : vector<8x128xf32>
    %275 = arith.divf %273, %274 : vector<8x128xf32>
    %276 = arith.mulf %267, %238 : vector<8x128xf32>
    %277 = arith.mulf %261, %269 : vector<8x128xf32>
    %278 = arith.addf %276, %277 : vector<8x128xf32>
    %279 = math.tanh %278 : vector<8x128xf32>
    %280 = arith.mulf %275, %279 : vector<8x128xf32>
    %281 = arith.index_cast %c6_i32 : i32 to index
    %c0_107 = arith.constant 0 : index
    %c0_108 = arith.constant 0 : index
    %282 = vector.load %arg8[%281, %c0_107, %c0_108] : memref<8x8x128xf32, #tpu.memory_space<vmem>>, vector<1x8x128xf32>
    %283 = vector.shape_cast %282 : vector<1x8x128xf32> to vector<8x128xf32>
    %284 = vector.shape_cast %280 : vector<8x128xf32> to vector<1x8x128xf32>
    tpu.vector_store %arg8[%281, %c0_107, %c0_108], %284 {strides = array<i32>} : memref<8x8x128xf32, #tpu.memory_space<vmem>>, vector<1x8x128xf32>,
    %c7_i32 = arith.constant 7 : i32
    %285 = arith.index_cast %c7_i32 : i32 to index
    %c0_109 = arith.constant 0 : index
    %c0_110 = arith.constant 0 : index
    %286 = vector.load %arg2[%285, %c0_109, %c0_110] : memref<8x8x128xf32, #tpu.memory_space<vmem>>, vector<1x8x128xf32>
    %287 = vector.shape_cast %286 : vector<1x8x128xf32> to vector<8x128xf32>
    %c0_111 = arith.constant 0 : index
    %c0_112 = arith.constant 0 : index
    %288 = vector.load %arg5[%c0_111, %c0_112] : memref<128x512xf32, #tpu.memory_space<vmem>>, vector<128x512xf32>
    %cst_113 = arith.constant dense<0.000000e+00> : vector<8x512xf32>
    %289 = tpu.matmul %287, %288, %cst_113 {dimension_numbers = #tpu.dot_dimension_numbers<[1], [0], [0], [1], [0, 0, 1, 1], [], []>} : vector<8x128xf32>, vector<128x512xf32>, vector<8x512xf32> -> vector<8x512xf32>
    %c0_114 = arith.constant 0 : index
    %c0_115 = arith.constant 0 : index
    %290 = vector.load %arg6[%c0_114, %c0_115] : memref<128x512xf32, #tpu.memory_space<vmem>>, vector<128x512xf32>
    %cst_116 = arith.constant dense<0.000000e+00> : vector<8x512xf32>
    %291 = tpu.matmul %280, %290, %cst_116 {dimension_numbers = #tpu.dot_dimension_numbers<[1], [0], [0], [1], [0, 0, 1, 1], [], []>} : vector<8x128xf32>, vector<128x512xf32>, vector<8x512xf32> -> vector<8x512xf32>
    %292 = arith.addf %289, %291 : vector<8x512xf32>
    %c0_117 = arith.constant 0 : index
    %c0_118 = arith.constant 0 : index
    %293 = vector.load %arg7[%c0_117, %c0_118] : memref<1x512xf32, #tpu.memory_space<vmem>>, vector<1x512xf32>
    %294 = vector.broadcast %293 : vector<1x512xf32> to vector<8x512xf32>
    %295 = arith.addf %292, %294 : vector<8x512xf32>
    %296 = vector.extract_strided_slice %295 {offsets = [0, 0], sizes = [8, 128], strides = [1, 1]} : vector<8x512xf32> to vector<8x128xf32>
    %297 = arith.negf %296 : vector<8x128xf32>
    %298 = math.exp %297 : vector<8x128xf32>
    %cst_119 = arith.constant 1.000000e+00 : f32
    %299 = vector.broadcast %cst_119 : f32 to vector<8x128xf32>
    %300 = arith.addf %299, %298 : vector<8x128xf32>
    %301 = arith.divf %299, %300 : vector<8x128xf32>
    %302 = vector.extract_strided_slice %295 {offsets = [0, 128], sizes = [8, 128], strides = [1, 1]} : vector<8x512xf32> to vector<8x128xf32>
    %303 = arith.negf %302 : vector<8x128xf32>
    %304 = math.exp %303 : vector<8x128xf32>
    %cst_120 = arith.constant 1.000000e+00 : f32
    %305 = vector.broadcast %cst_120 : f32 to vector<8x128xf32>
    %306 = arith.addf %305, %304 : vector<8x128xf32>
    %307 = arith.divf %305, %306 : vector<8x128xf32>
    %308 = vector.extract_strided_slice %295 {offsets = [0, 256], sizes = [8, 128], strides = [1, 1]} : vector<8x512xf32> to vector<8x128xf32>
    %309 = math.tanh %308 : vector<8x128xf32>
    %310 = vector.extract_strided_slice %295 {offsets = [0, 384], sizes = [8, 128], strides = [1, 1]} : vector<8x512xf32> to vector<8x128xf32>
    %311 = arith.negf %310 : vector<8x128xf32>
    %312 = math.exp %311 : vector<8x128xf32>
    %cst_121 = arith.constant 1.000000e+00 : f32
    %313 = vector.broadcast %cst_121 : f32 to vector<8x128xf32>
    %314 = arith.addf %313, %312 : vector<8x128xf32>
    %315 = arith.divf %313, %314 : vector<8x128xf32>
    %316 = arith.mulf %307, %278 : vector<8x128xf32>
    %317 = arith.mulf %301, %309 : vector<8x128xf32>
    %318 = arith.addf %316, %317 : vector<8x128xf32>
    %319 = math.tanh %318 : vector<8x128xf32>
    %320 = arith.mulf %315, %319 : vector<8x128xf32>
    %321 = arith.index_cast %c7_i32 : i32 to index
    %c0_122 = arith.constant 0 : index
    %c0_123 = arith.constant 0 : index
    %322 = vector.load %arg8[%321, %c0_122, %c0_123] : memref<8x8x128xf32, #tpu.memory_space<vmem>>, vector<1x8x128xf32>
    %323 = vector.shape_cast %322 : vector<1x8x128xf32> to vector<8x128xf32>
    %324 = vector.shape_cast %320 : vector<8x128xf32> to vector<1x8x128xf32>
    tpu.vector_store %arg8[%321, %c0_122, %c0_123], %324 {strides = array<i32>} : memref<8x8x128xf32, #tpu.memory_space<vmem>>, vector<1x8x128xf32>,
    %c8_i32 = arith.constant 8 : i32
    %c0_124 = arith.constant 0 : index
    %c0_125 = arith.constant 0 : index
    %325 = vector.load %arg11[%c0_124, %c0_125] : memref<8x128xf32, #tpu.memory_space<vmem>>, vector<8x128xf32>
    tpu.vector_store %arg11[%c0_124, %c0_125], %320 {strides = array<i32>} : memref<8x128xf32, #tpu.memory_space<vmem>>, vector<8x128xf32>,
    %c0_126 = arith.constant 0 : index
    %c0_127 = arith.constant 0 : index
    %326 = vector.load %arg12[%c0_126, %c0_127] : memref<8x128xf32, #tpu.memory_space<vmem>>, vector<8x128xf32>
    tpu.vector_store %arg12[%c0_126, %c0_127], %318 {strides = array<i32>} : memref<8x128xf32, #tpu.memory_space<vmem>>, vector<8x128xf32>,
    %c0_128 = arith.constant 0 : index
    %c0_129 = arith.constant 0 : index
    %327 = vector.load %arg9[%c0_128, %c0_129] : memref<8x128xf32, #tpu.memory_space<vmem>>, vector<8x128xf32>
    tpu.vector_store %arg9[%c0_128, %c0_129], %320 {strides = array<i32>} : memref<8x128xf32, #tpu.memory_space<vmem>>, vector<8x128xf32>,
    %c0_130 = arith.constant 0 : index
    %c0_131 = arith.constant 0 : index
    %328 = vector.load %arg10[%c0_130, %c0_131] : memref<8x128xf32, #tpu.memory_space<vmem>>, vector<8x128xf32>
    tpu.vector_store %arg10[%c0_130, %c0_131], %318 {strides = array<i32>} : memref<8x128xf32, #tpu.memory_space<vmem>>, vector<8x128xf32>,
    return
  }
  func.func @transform_0(%arg0: i32, %arg1: i32) -> (i32, i32, i32) {
    %c0_i32 = arith.constant 0 : i32
    %c0_i32_0 = arith.constant 0 : i32
    return %arg1, %arg0, %c0_i32 : i32, i32, i32
  }
  func.func @transform_1(%arg0: i32, %arg1: i32) -> (i32, i32) {
    %c0_i32 = arith.constant 0 : i32
    %c0_i32_0 = arith.constant 0 : i32
    return %arg0, %c0_i32 : i32, i32
  }
  func.func @transform_2(%arg0: i32, %arg1: i32) -> (i32, i32) {
    %c0_i32 = arith.constant 0 : i32
    %c0_i32_0 = arith.constant 0 : i32
    return %arg0, %c0_i32 : i32, i32
  }
  func.func @transform_3(%arg0: i32, %arg1: i32) -> (i32, i32) {
    %c0_i32 = arith.constant 0 : i32
    %c0_i32_0 = arith.constant 0 : i32
    %c0_i32_1 = arith.constant 0 : i32
    return %c0_i32, %c0_i32_0 : i32, i32
  }
  func.func @transform_4(%arg0: i32, %arg1: i32) -> (i32, i32) {
    %c0_i32 = arith.constant 0 : i32
    %c0_i32_0 = arith.constant 0 : i32
    %c0_i32_1 = arith.constant 0 : i32
    return %c0_i32, %c0_i32_0 : i32, i32
  }
  func.func @transform_5(%arg0: i32, %arg1: i32) -> (i32, i32) {
    %c0_i32 = arith.constant 0 : i32
    %c0_i32_0 = arith.constant 0 : i32
    %c0_i32_1 = arith.constant 0 : i32
    return %c0_i32, %c0_i32_0 : i32, i32
  }
  func.func @transform_6(%arg0: i32, %arg1: i32) -> (i32, i32, i32) {
    %c0_i32 = arith.constant 0 : i32
    %c0_i32_0 = arith.constant 0 : i32
    return %arg1, %arg0, %c0_i32 : i32, i32, i32
  }
  func.func @transform_7(%arg0: i32, %arg1: i32) -> (i32, i32) {
    %c0_i32 = arith.constant 0 : i32
    %c0_i32_0 = arith.constant 0 : i32
    return %arg0, %c0_i32 : i32, i32
  }
  func.func @transform_8(%arg0: i32, %arg1: i32) -> (i32, i32) {
    %c0_i32 = arith.constant 0 : i32
    %c0_i32_0 = arith.constant 0 : i32
    return %arg0, %c0_i32 : i32, i32
  }
}

</mosaic_0001>

<bundles_post_ra>
// kernel: tpu_custom_call.1
= control target key start
LH: loop header
LB: loop body
LE: loop exit
PB: predicated region body
PF: predicated region fallthrough
CT: control target
= control target key end

     0   :  { %14 = vsyncpa [#allocation5], 0  ;;  %s6620_s0 = inlined_call_operand.hbm [shape: f32[8,8,128], index: 0, kind: input, shape index: {}]   ;;  %s6621_s1 = inlined_call_operand.hbm [shape: f32[8,128], index: 1, kind: input, shape index: {}]   ;;  %s6622_s2 = inlined_call_operand.hbm [shape: f32[8,128], index: 2, kind: input, shape index: {}]   ;;  %s6623_s3 = inlined_call_operand.hbm [shape: f32[128,512], index: 3, kind: input, shape index: {}]   ;;  %s6624_s4 = inlined_call_operand.hbm [shape: f32[128,512], index: 4, kind: input, shape index: {}]   ;;  %s6625_s5 = inlined_call_operand.vmem [shape: f32[1,512], index: 5, kind: input, shape index: {}]   ;;  %s6626_s6 = inlined_call_operand.hbm [shape: f32[8,8,128], index: 6, kind: output, shape index: {0}]   ;;  %s6627_s7 = inlined_call_operand.hbm [shape: f32[8,128], index: 7, kind: output, shape index: {1}]   ;;  %s6628_s8 = inlined_call_operand.hbm [shape: f32[8,128], index: 8, kind: output, shape index: {2}]  }
   0x1   :  { %15 = vsyncpa [#allocation8], 0 }
   0x2   :  { %16 = vsyncpa [#allocation11], 0 }
   0x3   :  { %17 = vsyncpa [#allocation6], 0 }
   0x4   :  { %18 = vsyncpa [#allocation15], 0  ;;  %s5285_s27 = smov [#allocation7]   ;;  %s5286_s29 = smov [#allocation10]  }
   0x5   :  { %s37_s28 = sshll.u32 %s5285_s27, 4  ;;  %s56_s30 = sshll.u32 %s5286_s29, 4  ;;  %s38_s28 = int_to_ptr.vmem [resolvable:$true] %s37_s28  ;;  %s5343_s30 = int_to_ptr.vmem [resolvable:$true] %s56_s30 }
   0x6   :  { %s5099_s11 = scalar_lea.hbm %s6621_s1, 128 }
   0x7   :  { %p5100_p0 = scmp.ne.s32.totalorder %s6621_s1, %s5099_s11  ;;  %p5103_p1 = scmp.lt.u32.totalorder %s5099_s11, %s6621_s1 }
   0x9   :  { %p5105_p2 = pnand %p5103_p1, %p5100_p0 }
   0xb   :  { %5108 = shalt.err (!%p5105_p2)
}
   0xc   :  { %s5109_s16 = scalar_lea.vmem %s38_s28, 128  ;;  %p5114_p4 = scmp.lt.s32.totalorder %s38_s28, %s38_s28 }
   0xd   :  { %p5110_p3 = scmp.ne.s32.totalorder %s38_s28, %s5109_s16  ;;  %p5115_p5 = scmp.lt.s32.totalorder %s5109_s16, %s5109_s16 }
   0xf   :  { %p5116_p6 = por %p5115_p5, %p5114_p4 }
  0x11   :  { %p5117_p7 = pnand %p5116_p6, %p5110_p3 }
  0x13   :  { %5120 = shalt.err (!%p5117_p7)
}
  0x14   :  { %40 = dma.hbm_to_vmem [thread:$0]  %s6621_s1, 128, %s38_s28, [#allocation8]  }
  0x15   :  { %s5121_s21 = scalar_lea.hbm %s6623_s3, 8192 }
  0x16   :  { %p5122_p8 = scmp.ne.s32.totalorder %s6623_s3, %s5121_s21  ;;  %p5125_p9 = scmp.lt.u32.totalorder %s5121_s21, %s6623_s3 }
  0x18   :  { %p5127_p10 = pnand %p5125_p9, %p5122_p8 }
  0x1a   :  { %5130 = shalt.err (!%p5127_p10)
}
  0x1b   :  { %s5131_s26 = scalar_lea.vmem %s5343_s30, 8192  ;;  %p5136_p12 = scmp.lt.s32.totalorder %s5343_s30, %s5343_s30 }
  0x1c   :  { %p5132_p11 = scmp.ne.s32.totalorder %s5343_s30, %s5131_s26  ;;  %p5137_p13 = scmp.lt.s32.totalorder %s5131_s26, %s5131_s26 }
  0x1e   :  { %p5138_p0 = por %p5137_p13, %p5136_p12 }
  0x20   :  { %p5139_p1 = pnand %p5138_p0, %p5132_p11 }
  0x22   :  { %5142 = shalt.err (!%p5139_p1)
}
  0x23   :  { %s5287_s1 = smov 512   ;;  %s5288_s27 = smov 32  }
  0x24   :  { %62 = dma.hbm_to_vmem [thread:$0]  %s6623_s3, 8192, %s5343_s30, [#allocation11], %s5287_s1, %s5287_s1, %s5288_s27  }
  0x25   :  { %s5289_s9 = smov [#allocation4]   ;;  %s5143_s13 = scalar_lea.hbm %s6620_s0, 1024 }
  0x26   :  { %s24_s10 = sshll.u32 %s5289_s9, 4  ;;  %p5144_p2 = scmp.ne.s32.totalorder %s6620_s0, %s5143_s13  ;;  %s25_s10 = int_to_ptr.vmem [resolvable:$true] %s24_s10 }
  0x27   :  { %p5147_p3 = scmp.lt.u32.totalorder %s5143_s13, %s6620_s0 }
  0x29   :  { %p5149_p4 = pnand %p5147_p3, %p5144_p2 }
  0x2b   :  { %5152 = shalt.err (!%p5149_p4)
}
  0x2c   :  { %s5153_s18 = scalar_lea.vmem %s25_s10, 1024  ;;  %p5158_p6 = scmp.lt.s32.totalorder %s25_s10, %s25_s10 }
  0x2d   :  { %p5154_p5 = scmp.ne.s32.totalorder %s25_s10, %s5153_s18  ;;  %p5159_p7 = scmp.lt.s32.totalorder %s5153_s18, %s5153_s18 }
  0x2f   :  { %p5160_p8 = por %p5159_p7, %p5158_p6 }
  0x31   :  { %p5161_p9 = pnand %p5160_p8, %p5154_p5 }
  0x33   :  { %5164 = shalt.err (!%p5161_p9)
}
  0x34   :  { %s5290_s3 = smov 128   ;;  %s5291_s30 = smov 8  }
  0x35   :  { %30 = dma.hbm_to_vmem [thread:$0]  %s6620_s0, 1024, %s25_s10, [#allocation5], %s5290_s3, %s5290_s3, %s5291_s30  }
  0x36   :  { %s5292_s21 = smov [#allocation9]   ;;  %s5293_s23 = smov [#allocation12]  }
  0x37   :  { %s47_s22 = sshll.u32 %s5292_s21, 4  ;;  %s68_s24 = sshll.u32 %s5293_s23, 4  ;;  %s48_s22 = int_to_ptr.vmem [resolvable:$true] %s47_s22  ;;  %s69_s24 = int_to_ptr.vmem [resolvable:$true] %s68_s24 }
  0x38   :  { %s5165_s28 = scalar_lea.hbm %s6622_s2, 128 }
  0x39   :  { %p5166_p10 = scmp.ne.s32.totalorder %s6622_s2, %s5165_s28  ;;  %p5169_p11 = scmp.lt.u32.totalorder %s5165_s28, %s6622_s2 }
  0x3b   :  { %p5171_p12 = pnand %p5169_p11, %p5166_p10 }
  0x3d   :  { %5174 = shalt.err (!%p5171_p12)
}
  0x3e   :  { %s5175_s0 = scalar_lea.vmem %s48_s22, 128  ;;  %p5180_p0 = scmp.lt.s32.totalorder %s48_s22, %s48_s22 }
  0x3f   :  { %p5176_p13 = scmp.ne.s32.totalorder %s48_s22, %s5175_s0  ;;  %p5181_p1 = scmp.lt.s32.totalorder %s5175_s0, %s5175_s0 }
  0x41   :  { %p5182_p2 = por %p5181_p1, %p5180_p0 }
  0x43   :  { %p5183_p3 = pnand %p5182_p2, %p5176_p13 }
  0x45   :  { %5186 = shalt.err (!%p5183_p3)
}
  0x46   :  { %50 = dma.hbm_to_vmem [thread:$0]  %s6622_s2, 128, %s48_s22, [#allocation8]  }
  0x47   :  { %s5187_s16 = scalar_lea.hbm %s6624_s4, 8192 }
  0x48   :  { %p5188_p4 = scmp.ne.s32.totalorder %s6624_s4, %s5187_s16  ;;  %p5191_p5 = scmp.lt.u32.totalorder %s5187_s16, %s6624_s4 }
  0x4a   :  { %p5193_p6 = pnand %p5191_p5, %p5188_p4 }
  0x4c   :  { %5196 = shalt.err (!%p5193_p6)
}
  0x4d   :  { %s5197_s21 = scalar_lea.vmem %s69_s24, 8192  ;;  %p5202_p8 = scmp.lt.s32.totalorder %s69_s24, %s69_s24 }
  0x4e   :  { %p5198_p7 = scmp.ne.s32.totalorder %s69_s24, %s5197_s21  ;;  %p5203_p9 = scmp.lt.s32.totalorder %s5197_s21, %s5197_s21 }
  0x50   :  { %p5204_p10 = por %p5203_p9, %p5202_p8 }
  0x52   :  { %p5205_p11 = pnand %p5204_p10, %p5198_p7 }
  0x54   :  { %5208 = shalt.err (!%p5205_p11)
}
  0x55   :  { %74 = dma.hbm_to_vmem [thread:$0]  %s6624_s4, 8192, %s69_s24, [#allocation11], %s5287_s1, %s5287_s1, %s5288_s27  }
  0x56   :  { %5275 = dma.done.wait [#allocation5], 1024  }
  0x57   :  { %5276 = vsyncadd [#allocation5], 4294966272 }
  0x58   :  { %5277 = dma.done.wait [#allocation8], 256  }
  0x59   :  { %5278 = vsyncadd [#allocation8], 4294967040 }
  0x5a   :  { %5279 = dma.done.wait [#allocation11], 16384  }
  0x5b   :  { %5280 = vsyncadd [#allocation11], 4294950912  ;;  %v6629_v0 = vmov 0.0   ;;  %v168_v1 = vld [vmem:[#allocation12 + $0x8] sm:$0xff]  ;;  %v170_v3 = vld [vmem:[#allocation12 + $0x18] sm:$0xff]  ;;  %s5296_s16 = smov [#allocation13]  }
  0x5c   :  { %295 = vmatprep.mubr.f32.mxu0 %v6629_v0  ;;  %366 = vmatprep.mubr.f32.mxu1 %v6629_v0  ;;  %v172_v2 = vld [vmem:[#allocation12 + $0x28] sm:$0xff]  ;;  %v174_v5 = vld [vmem:[#allocation12 + $0x38] sm:$0xff]  ;;  %v167_v6 = vld [vmem:[#allocation12] sm:$0xff]  ;;  %s3837_s17 = sshll.u32 %s5296_s16, 4  ;;  %s5297_s18 = smov [#allocation16]   ;;  %s6567_s17 = int_to_ptr.vmem [resolvable:$true] %s3837_s17 }
  0x5d   :  { %v5421_v4 = vpack.c.bf16 %v172_v2, %v168_v1  ;;  %v171_v7 = vld [vmem:[#allocation12 + $0x20] sm:$0xff]  ;;  %v5423_v8 = vpack.c.bf16 %v174_v5, %v170_v3  ;;  %v169_v10 = vld [vmem:[#allocation12 + $0x10] sm:$0xff]  ;;  %v176_v12 = vld [vmem:[#allocation12 + $0x48] sm:$0xff]  ;;  %s3860_s19 = sshll.u32 %s5297_s18, 4  ;;  %s6569_s19 = int_to_ptr.vmem [resolvable:$true] %s3860_s19 }
  0x5e   :  { %v5425_v9 = vpack.c.bf16 %v171_v7, %v167_v6  ;;  %v173_v11 = vld [vmem:[#allocation12 + $0x30] sm:$0xff]  ;;  %v180_v14 = vld [vmem:[#allocation12 + $0x68] sm:$0xff]  ;;  %v178_v15 = vld [vmem:[#allocation12 + $0x58] sm:$0xff] }
  0x5f   :  { %3903 = vmatprep.subr.bf16.mxu0 %v5421_v4  ;;  %v5428_v13 = vpack.c.bf16 %v173_v11, %v169_v10  ;;  %v182_v16 = vld [vmem:[#allocation12 + $0x78] sm:$0xff]  ;;  %3935 = vmatprep.subr.bf16.mxu1 %v5423_v8  ;;  %v5432_v17 = vpack.c.bf16 %v180_v14, %v176_v12  ;;  %v175_v19 = vld [vmem:[#allocation12 + $0x40] sm:$0xff]  ;;  %v177_v21 = vld [vmem:[#allocation12 + $0x50] sm:$0xff] }
  0x60   :  { %3905 = vmatpush1.bf16.msra.mxu0 %v5425_v9  ;;  %v5434_v18 = vpack.c.bf16 %v182_v16, %v178_v15  ;;  %v179_v20 = vld [vmem:[#allocation12 + $0x60] sm:$0xff]  ;;  %v181_v23 = vld [vmem:[#allocation12 + $0x70] sm:$0xff]  ;;  %v184_v24 = vld [vmem:[#allocation12 + $0x88] sm:$0xff] }
  0x61   :  { %3937 = vmatpush1.bf16.msra.mxu1 %v5428_v13  ;;  %v5437_v22 = vpack.c.bf16 %v179_v20, %v175_v19  ;;  %v188_v25 = vld [vmem:[#allocation12 + $0xa8] sm:$0xff]  ;;  %3907 = vmatprep.subr.bf16.mxu0 %v5432_v17  ;;  %v5441_v26 = vpack.c.bf16 %v181_v23, %v177_v21  ;;  %v186_v28 = vld [vmem:[#allocation12 + $0x98] sm:$0xff]  ;;  %v183_v30 = vld [vmem:[#allocation12 + $0x80] sm:$0xff] }
  0x62   :  { %3939 = vmatprep.subr.bf16.mxu1 %v5434_v18  ;;  %v5443_v27 = vpack.c.bf16 %v188_v25, %v184_v24  ;;  %v190_v29 = vld [vmem:[#allocation12 + $0xb8] sm:$0xff]  ;;  %v187_v32 = vld [vmem:[#allocation12 + $0xa0] sm:$0xff]  ;;  %v185_v33 = vld [vmem:[#allocation12 + $0x90] sm:$0xff] }
  0x63   :  { %v5445_v31 = vpack.c.bf16 %v190_v29, %v186_v28  ;;  %v189_v34 = vld [vmem:[#allocation12 + $0xb0] sm:$0xff]  ;;  %v5448_v35 = vpack.c.bf16 %v187_v32, %v183_v30  ;;  %v192_v36 = vld [vmem:[#allocation12 + $0xc8] sm:$0xff]  ;;  %v194_v38 = vld [vmem:[#allocation12 + $0xd8] sm:$0xff] }
  0x64   :  { %3909 = vmatpush1.bf16.msra.mxu0 %v5437_v22  ;;  %v196_v37 = vld [vmem:[#allocation12 + $0xe8] sm:$0xff]  ;;  %v5452_v39 = vpack.c.bf16 %v189_v34, %v185_v33  ;;  %v198_v41 = vld [vmem:[#allocation12 + $0xf8] sm:$0xff]  ;;  %v191_v42 = vld [vmem:[#allocation12 + $0xc0] sm:$0xff] }
  0x65   :  { %3941 = vmatpush1.bf16.msra.mxu1 %v5441_v26  ;;  %3911 = vmatprep.subr.bf16.mxu0 %v5443_v27  ;;  %v5454_v40 = vpack.c.bf16 %v196_v37, %v192_v36  ;;  %v195_v43 = vld [vmem:[#allocation12 + $0xe0] sm:$0xff]  ;;  %v5457_v44 = vpack.c.bf16 %v198_v41, %v194_v38  ;;  %v193_v45 = vld [vmem:[#allocation12 + $0xd0] sm:$0xff]  ;;  %v200_v47 = vld [vmem:[#allocation12 + $0x108] sm:$0xff] }
  0x66   :  { %3943 = vmatprep.subr.bf16.mxu1 %v5445_v31  ;;  %v197_v46 = vld [vmem:[#allocation12 + $0xf0] sm:$0xff]  ;;  %v204_v48 = vld [vmem:[#allocation12 + $0x128] sm:$0xff]  ;;  %v202_v49 = vld [vmem:[#allocation12 + $0x118] sm:$0xff]  ;;  %v5460_v51 = vpack.c.bf16 %v195_v43, %v191_v42 }
  0x67   :  { %v206_v50 = vld [vmem:[#allocation12 + $0x138] sm:$0xff]  ;;  %v5464_v52 = vpack.c.bf16 %v197_v46, %v193_v45  ;;  %v5466_v53 = vpack.c.bf16 %v204_v48, %v200_v47  ;;  %v199_v54 = vld [vmem:[#allocation12 + $0x100] sm:$0xff]  ;;  %v201_v56 = vld [vmem:[#allocation12 + $0x110] sm:$0xff] }
  0x68   :  { %3913 = vmatpush1.bf16.msra.mxu0 %v5448_v35  ;;  %v203_v55 = vld [vmem:[#allocation12 + $0x120] sm:$0xff]  ;;  %v5469_v57 = vpack.c.bf16 %v206_v50, %v202_v49  ;;  %v205_v58 = vld [vmem:[#allocation12 + $0x130] sm:$0xff]  ;;  %v208_v59 = vld [vmem:[#allocation12 + $0x148] sm:$0xff] }
  0x69   :  { %3945 = vmatpush1.bf16.msra.mxu1 %v5452_v39  ;;  %3915 = vmatprep.subr.bf16.mxu0 %v5454_v40  ;;  %v212_v60 = vld [vmem:[#allocation12 + $0x168] sm:$0xff]  ;;  %v210_v61 = vld [vmem:[#allocation12 + $0x158] sm:$0xff]  ;;  %v5472_v63 = vpack.c.bf16 %v203_v55, %v199_v54  ;;  %v5476_v1 = vpack.c.bf16 %v205_v58, %v201_v56  ;;  %v207_v3 = vld [vmem:[#allocation12 + $0x140] sm:$0xff] }
  0x6a   :  { %3947 = vmatprep.subr.bf16.mxu1 %v5457_v44  ;;  %v214_v62 = vld [vmem:[#allocation12 + $0x178] sm:$0xff]  ;;  %v5478_v2 = vpack.c.bf16 %v212_v60, %v208_v59  ;;  %v211_v5 = vld [vmem:[#allocation12 + $0x160] sm:$0xff]  ;;  %v209_v6 = vld [vmem:[#allocation12 + $0x150] sm:$0xff] }
  0x6b   :  { %v5481_v7 = vpack.c.bf16 %v214_v62, %v210_v61  ;;  %v213_v10 = vld [vmem:[#allocation12 + $0x170] sm:$0xff]  ;;  %v216_v11 = vld [vmem:[#allocation12 + $0x188] sm:$0xff]  ;;  %v218_v14 = vld [vmem:[#allocation12 + $0x198] sm:$0xff]  ;;  %v5484_v16 = vpack.c.bf16 %v211_v5, %v207_v3 }
  0x6c   :  { %3917 = vmatpush1.bf16.msra.mxu0 %v5460_v51  ;;  %v220_v12 = vld [vmem:[#allocation12 + $0x1a8] sm:$0xff]  ;;  %v222_v15 = vld [vmem:[#allocation12 + $0x1b8] sm:$0xff]  ;;  %v5488_v19 = vpack.c.bf16 %v213_v10, %v209_v6  ;;  %v215_v21 = vld [vmem:[#allocation12 + $0x180] sm:$0xff] }
  0x6d   :  { %3949 = vmatpush1.bf16.msra.mxu1 %v5464_v52  ;;  %3919 = vmatprep.subr.bf16.mxu0 %v5466_v53  ;;  %v5490_v20 = vpack.c.bf16 %v220_v12, %v216_v11  ;;  %v219_v23 = vld [vmem:[#allocation12 + $0x1a0] sm:$0xff]  ;;  %v217_v24 = vld [vmem:[#allocation12 + $0x190] sm:$0xff]  ;;  %v5493_v25 = vpack.c.bf16 %v222_v15, %v218_v14  ;;  %v224_v29 = vld [vmem:[#allocation12 + $0x1c8] sm:$0xff] }
  0x6e   :  { %3951 = vmatprep.subr.bf16.mxu1 %v5469_v57  ;;  %v221_v28 = vld [vmem:[#allocation12 + $0x1b0] sm:$0xff]  ;;  %v228_v30 = vld [vmem:[#allocation12 + $0x1e8] sm:$0xff]  ;;  %v226_v32 = vld [vmem:[#allocation12 + $0x1d8] sm:$0xff]  ;;  %v5496_v34 = vpack.c.bf16 %v219_v23, %v215_v21 }
  0x6f   :  { %v230_v33 = vld [vmem:[#allocation12 + $0x1f8] sm:$0xff]  ;;  %v5500_v36 = vpack.c.bf16 %v221_v28, %v217_v24  ;;  %v5502_v37 = vpack.c.bf16 %v228_v30, %v224_v29  ;;  %v223_v38 = vld [vmem:[#allocation12 + $0x1c0] sm:$0xff]  ;;  %v225_v42 = vld [vmem:[#allocation12 + $0x1d0] sm:$0xff] }
  0x70   :  { %3921 = vmatpush1.bf16.msra.mxu0 %v5472_v63  ;;  %v227_v41 = vld [vmem:[#allocation12 + $0x1e0] sm:$0xff]  ;;  %v5505_v43 = vpack.c.bf16 %v230_v33, %v226_v32  ;;  %v229_v45 = vld [vmem:[#allocation12 + $0x1f0] sm:$0xff]  ;;  %v104_v46 = vld [vmem:[#allocation10 + $0x8] sm:$0xff] }
  0x71   :  { %3953 = vmatpush1.bf16.msra.mxu1 %v5476_v1  ;;  %3923 = vmatprep.subr.bf16.mxu0 %v5478_v2  ;;  %v108_v47 = vld [vmem:[#allocation10 + $0x28] sm:$0xff]  ;;  %v106_v48 = vld [vmem:[#allocation10 + $0x18] sm:$0xff]  ;;  %v5508_v50 = vpack.c.bf16 %v227_v41, %v223_v38  ;;  %v5512_v54 = vpack.c.bf16 %v229_v45, %v225_v42  ;;  %v103_v56 = vld [vmem:[#allocation10] sm:$0xff] }
  0x72   :  { %3955 = vmatprep.subr.bf16.mxu1 %v5481_v7  ;;  %v110_v49 = vld [vmem:[#allocation10 + $0x38] sm:$0xff]  ;;  %v5514_v55 = vpack.c.bf16 %v108_v47, %v104_v46  ;;  %v107_v58 = vld [vmem:[#allocation10 + $0x20] sm:$0xff]  ;;  %v105_v59 = vld [vmem:[#allocation10 + $0x10] sm:$0xff] }
  0x73   :  { %v5517_v60 = vpack.c.bf16 %v110_v49, %v106_v48  ;;  %v109_v61 = vld [vmem:[#allocation10 + $0x30] sm:$0xff]  ;;  %v112_v62 = vld [vmem:[#allocation10 + $0x48] sm:$0xff]  ;;  %v114_v5 = vld [vmem:[#allocation10 + $0x58] sm:$0xff]  ;;  %v5520_v11 = vpack.c.bf16 %v107_v58, %v103_v56 }
  0x74   :  { %3925 = vmatpush1.bf16.msra.mxu0 %v5484_v16  ;;  %v116_v3 = vld [vmem:[#allocation10 + $0x68] sm:$0xff]  ;;  %v118_v6 = vld [vmem:[#allocation10 + $0x78] sm:$0xff]  ;;  %v96_v10 = vld [vmem:[#allocation7] sm:$0xff]  ;;  %v5524_v12 = vpack.c.bf16 %v109_v61, %v105_v59 }
  0x75   :  { %3957 = vmatpush1.bf16.msra.mxu1 %v5488_v19  ;;  %3927 = vmatprep.subr.bf16.mxu0 %v5490_v20  ;;  %v5526_v14 = vpack.c.bf16 %v116_v3, %v112_v62  ;;  %v111_v15 = vld [vmem:[#allocation10 + $0x40] sm:$0xff]  ;;  %v113_v23 = vld [vmem:[#allocation10 + $0x50] sm:$0xff]  ;;  %v5529_v24 = vpack.c.bf16 %v118_v6, %v114_v5  ;;  %v120_v29 = vld [vmem:[#allocation10 + $0x88] sm:$0xff] }
  0x76   :  { %3959 = vmatprep.subr.bf16.mxu1 %v5493_v25  ;;  %v115_v21 = vld [vmem:[#allocation10 + $0x60] sm:$0xff]  ;;  %v117_v28 = vld [vmem:[#allocation10 + $0x70] sm:$0xff]  ;;  %v124_v30 = vld [vmem:[#allocation10 + $0xa8] sm:$0xff] }
  0x77   :  { %v122_v32 = vld [vmem:[#allocation10 + $0x98] sm:$0xff]  ;;  %v5532_v38 = vpack.c.bf16 %v115_v21, %v111_v15  ;;  %v5536_v41 = vpack.c.bf16 %v117_v28, %v113_v23  ;;  %v5538_v42 = vpack.c.bf16 %v124_v30, %v120_v29  ;;  %v119_v45 = vld [vmem:[#allocation10 + $0x80] sm:$0xff]  ;;  %v121_v47 = vld [vmem:[#allocation10 + $0x90] sm:$0xff] }
  0x78   :  { %3929 = vmatpush1.bf16.msra.mxu0 %v5496_v34  ;;  %v126_v33 = vld [vmem:[#allocation10 + $0xb8] sm:$0xff]  ;;  %v123_v46 = vld [vmem:[#allocation10 + $0xa0] sm:$0xff]  ;;  %v125_v49 = vld [vmem:[#allocation10 + $0xb0] sm:$0xff] }
  0x79   :  { %3961 = vmatpush1.bf16.msra.mxu1 %v5500_v36  ;;  %3931 = vmatprep.subr.bf16.mxu0 %v5502_v37  ;;  %v5541_v48 = vpack.c.bf16 %v126_v33, %v122_v32  ;;  %v128_v56 = vld [vmem:[#allocation10 + $0xc8] sm:$0xff]  ;;  %v130_v59 = vld [vmem:[#allocation10 + $0xd8] sm:$0xff]  ;;  %v5546_v62 = vpack.c.bf16 %v123_v46, %v119_v45  ;;  %v5550_v3 = vpack.c.bf16 %v125_v49, %v121_v47  ;;  %v127_v6 = vld [vmem:[#allocation10 + $0xc0] sm:$0xff] }
  0x7a   :  { %3963 = vmatprep.subr.bf16.mxu1 %v5505_v43  ;;  %v132_v58 = vld [vmem:[#allocation10 + $0xe8] sm:$0xff]  ;;  %v134_v61 = vld [vmem:[#allocation10 + $0xf8] sm:$0xff]  ;;  %v129_v15 = vld [vmem:[#allocation10 + $0xd0] sm:$0xff] }
  0x7b   :  { %6689 = vst [vmem:[#allocation22_spill] sm:$0xff] %v5550_v3  ;;  %v5552_v5 = vpack.c.bf16 %v132_v58, %v128_v56  ;;  %v5555_v21 = vpack.c.bf16 %v134_v61, %v130_v59  ;;  %v133_v23 = vld [vmem:[#allocation10 + $0xf0] sm:$0xff]  ;;  %v136_v28 = vld [vmem:[#allocation10 + $0x108] sm:$0xff]  ;;  %v138_v30 = vld [vmem:[#allocation10 + $0x118] sm:$0xff] }
  0x7c   :  { %3933 = vmatpush1.bf16.msra.mxu0 %v5508_v50  ;;  %v140_v29 = vld [vmem:[#allocation10 + $0x128] sm:$0xff]  ;;  %v142_v32 = vld [vmem:[#allocation10 + $0x138] sm:$0xff]  ;;  %v5562_v45 = vpack.c.bf16 %v133_v23, %v129_v15  ;;  %v135_v47 = vld [vmem:[#allocation10 + $0x100] sm:$0xff] }
  0x7d   :  { %3965 = vmatpush1.bf16.msra.mxu1 %v5512_v54  ;;  %3967 = vmatprep.subr.bf16.mxu0 %v5514_v55  ;;  %6690 = vst [vmem:[#allocation23_spill] sm:$0xff] %v5552_v5  ;;  %6691 = vst [vmem:[#allocation24_spill] sm:$0xff] %v5555_v21  ;;  %v5564_v46 = vpack.c.bf16 %v140_v29, %v136_v28  ;;  %v139_v49 = vld [vmem:[#allocation10 + $0x120] sm:$0xff]  ;;  %v137_v56 = vld [vmem:[#allocation10 + $0x110] sm:$0xff]  ;;  %v5567_v58 = vpack.c.bf16 %v142_v32, %v138_v30 }
  0x7e   :  { %3999 = vmatprep.subr.bf16.mxu1 %v5517_v60  ;;  %6693 = vst [vmem:[#allocation26_spill] sm:$0xff] %v5562_v45  ;;  %v141_v59 = vld [vmem:[#allocation10 + $0x130] sm:$0xff]  ;;  %v144_v61 = vld [vmem:[#allocation10 + $0x148] sm:$0xff]  ;;  %v143_v28 = vld [vmem:[#allocation10 + $0x140] sm:$0xff] }
  0x7f   :  { %296 = vmatmul.mubr.f32.vlgmr.msra.gmra.mrb[0].mxu0 %v96_v10  ;;  %6694 = vst [vmem:[#allocation27_spill] sm:$0xff] %v5564_v46  ;;  %6695 = vst [vmem:[#allocation28_spill] sm:$0xff] %v5567_v58  ;;  %v5574_v15 = vpack.c.bf16 %v141_v59, %v137_v56  ;;  %v147_v29 = vld [vmem:[#allocation10 + $0x160] sm:$0xff]  ;;  %v145_v30 = vld [vmem:[#allocation10 + $0x150] sm:$0xff] }
  0x80   :  { %367 = vmatmul.mubr.f32.vlgmr.msra.gmra.mrb[0].mxu1 %v96_v10  ;;  %3969 = vmatpush1.bf16.msra.mxu0 %v5520_v11  ;;  %v131_v10 = vld [vmem:[#allocation10 + $0xe0] sm:$0xff] }
  0x81   :  { %4001 = vmatpush1.bf16.msra.mxu1 %v5524_v12  ;;  %3971 = vmatprep.subr.bf16.mxu0 %v5526_v14  ;;  %v5558_v33 = vpack.c.bf16 %v131_v10, %v127_v6  ;;  %v146_v6 = vld [vmem:[#allocation10 + $0x158] sm:$0xff]  ;;  %6697 = vst [vmem:[#allocation30_spill] sm:$0xff] %v5574_v15  ;;  %v151_v59 = vld [vmem:[#allocation10 + $0x180] sm:$0xff] }
  0x82   :  { %4003 = vmatprep.subr.bf16.mxu1 %v5529_v24  ;;  %437 = vmatprep.mubr.f32.mxu0 %v6629_v0  ;;  %v150_v10 = vld [vmem:[#allocation10 + $0x178] sm:$0xff] }
  0x83   :  { %508 = vmatprep.mubr.f32.mxu1 %v6629_v0  ;;  %6692 = vst [vmem:[#allocation25_spill] sm:$0xff] %v5558_v33  ;;  %v148_v0 = vld [vmem:[#allocation10 + $0x168] sm:$0xff]  ;;  %v5579_v32 = vpack.c.bf16 %v150_v10, %v146_v6  ;;  %v153_v6 = vld [vmem:[#allocation10 + $0x190] sm:$0xff] }
  0x84   :  { %3973 = vmatpush1.bf16.msra.mxu0 %v5532_v38  ;;  %v5576_v23 = vpack.c.bf16 %v148_v0, %v144_v61  ;;  %v155_v61 = vld [vmem:[#allocation10 + $0x1a0] sm:$0xff] }
  0x85   :  { %4005 = vmatpush1.bf16.msra.mxu1 %v5536_v41  ;;  %3975 = vmatprep.subr.bf16.mxu0 %v5538_v42  ;;  %6698 = vst [vmem:[#allocation31_spill] sm:$0xff] %v5579_v32 }
  0x86   :  { %4007 = vmatprep.subr.bf16.mxu1 %v5541_v48 }
  0x88   :  { %3977 = vmatpush1.bf16.msra.mxu0 %v5546_v62 }
  0x89   :  { %4009 = vmatpush1.bf16.msra.mxu1 %v5550_v3  ;;  %3979 = vmatprep.subr.bf16.mxu0 %v5552_v5  ;;  %v5570_v3 = vpack.c.bf16 %v139_v49, %v135_v47  ;;  %v152_v5 = vld [vmem:[#allocation10 + $0x188] sm:$0xff]  ;;  %v154_v47 = vld [vmem:[#allocation10 + $0x198] sm:$0xff] }
  0x8a   :  { %4011 = vmatprep.subr.bf16.mxu1 %v5555_v21  ;;  %v149_v21 = vld [vmem:[#allocation10 + $0x170] sm:$0xff]  ;;  %v158_v49 = vld [vmem:[#allocation10 + $0x1b8] sm:$0xff] }
  0x8b   :  { %6696 = vst [vmem:[#allocation29_spill] sm:$0xff] %v5570_v3  ;;  %v5586_v0 = vpack.c.bf16 %v149_v21, %v145_v30  ;;  %v5591_v10 = vpack.c.bf16 %v158_v49, %v154_v47  ;;  %v163_v30 = vld [vmem:[#allocation10 + $0x1e0] sm:$0xff]  ;;  %v161_v49 = vld [vmem:[#allocation10 + $0x1d0] sm:$0xff] }
  0x8c   :  { %3981 = vmatpush1.bf16.msra.mxu0 %v5558_v33  ;;  %v156_v33 = vld [vmem:[#allocation10 + $0x1a8] sm:$0xff] }
  0x8d   :  { %4013 = vmatpush1.bf16.msra.mxu1 %v5562_v45  ;;  %3983 = vmatprep.subr.bf16.mxu0 %v5564_v46  ;;  %v5582_v45 = vpack.c.bf16 %v147_v29, %v143_v28  ;;  %v5588_v56 = vpack.c.bf16 %v156_v33, %v152_v5  ;;  %v160_v46 = vld [vmem:[#allocation10 + $0x1c8] sm:$0xff]  ;;  %v162_v28 = vld [vmem:[#allocation10 + $0x1d8] sm:$0xff]  ;;  %v159_v33 = vld [vmem:[#allocation10 + $0x1c0] sm:$0xff] }
  0x8e   :  { %4015 = vmatprep.subr.bf16.mxu1 %v5567_v58  ;;  %v157_v58 = vld [vmem:[#allocation10 + $0x1b0] sm:$0xff]  ;;  %v166_v29 = vld [vmem:[#allocation10 + $0x1f8] sm:$0xff] }
  0x8f   :  { %v5598_v5 = vpack.c.bf16 %v157_v58, %v153_v6  ;;  %v5603_v47 = vpack.c.bf16 %v166_v29, %v162_v28  ;;  %v6704_v29 = vld [vmem:[#allocation26_spill] sm:$0xff] }
  0x90   :  { %3985 = vmatpush1.bf16.msra.mxu0 %v5570_v3  ;;  %v164_v3 = vld [vmem:[#allocation10 + $0x1e8] sm:$0xff] }
  0x91   :  { %4017 = vmatpush1.bf16.msra.mxu1 %v5574_v15  ;;  %3987 = vmatprep.subr.bf16.mxu0 %v5576_v23  ;;  %v5594_v15 = vpack.c.bf16 %v155_v61, %v151_v59  ;;  %v5600_v21 = vpack.c.bf16 %v164_v3, %v160_v46  ;;  %v5606_v59 = vpack.c.bf16 %v163_v30, %v159_v33  ;;  %v102_v3 = vld [vmem:[#allocation4] sm:$0xff]  ;;  %v6699_v46 = vmov 0.0   ;;  %v6705_v33 = vld [vmem:[#allocation27_spill] sm:$0xff] }
  0x92   :  { %4019 = vmatprep.subr.bf16.mxu1 %v5579_v32  ;;  %v165_v32 = vld [vmem:[#allocation10 + $0x1f0] sm:$0xff] }
  0x93   :  { %v5610_v58 = vpack.c.bf16 %v165_v32, %v161_v49  ;;  %v1104_v49 = vld [vmem:[#allocation12 + $0x30] sm:$0xff] }
  0x94   :  { %3989 = vmatpush1.bf16.msra.mxu0 %v5582_v45 }
  0x95   :  { %4021 = vmatpush1.bf16.msra.mxu1 %v5586_v0  ;;  %3991 = vmatprep.subr.bf16.mxu0 %v5588_v56 }
  0x96   :  { %4023 = vmatprep.subr.bf16.mxu1 %v5591_v10 }
  0x98   :  { %3993 = vmatpush1.bf16.msra.mxu0 %v5594_v15 }
  0x99   :  { %4025 = vmatpush1.bf16.msra.mxu1 %v5598_v5  ;;  %3995 = vmatprep.subr.bf16.mxu0 %v5600_v21 }
  0x9a   :  { %4027 = vmatprep.subr.bf16.mxu1 %v5603_v47 }
  0x9c   :  { %3997 = vmatpush1.bf16.msra.mxu0 %v5606_v59 }
  0x9d   :  { %4029 = vmatpush1.bf16.msra.mxu1 %v5610_v58  ;;  %4031 = vmatprep.subr.bf16.mxu0 %v5421_v4  ;;  %v517_v4 = vlaneseq }
  0x9e   :  { %4063 = vmatprep.subr.bf16.mxu1 %v5423_v8 }
  0x9f   :  { %438 = vmatmul.mubr.f32.vlgmr.msra.gmra.mrb[0].mxu0 %v102_v3  ;;  %v518_v8 = vshrl.u32 %v517_v4, 7  ;;  %v1109_v4 = vld [vmem:[#allocation12 + $0x58] sm:$0xff] }
  0xa0   :  { %509 = vmatmul.mubr.f32.vlgmr.msra.gmra.mrb[0].mxu1 %v102_v3  ;;  %4033 = vmatpush1.bf16.msra.mxu0 %v5425_v9  ;;  %v1111_v3 = vld [vmem:[#allocation12 + $0x68] sm:$0xff] }
  0xa1   :  { %4065 = vmatpush1.bf16.msra.mxu1 %v5428_v13  ;;  %4035 = vmatprep.subr.bf16.mxu0 %v5432_v17  ;;  %v5651_v9 = vsub.s32 0, %v518_v8  ;;  %v515_v13 = vld [vmem:[%s6625_s5] sm:$0xf]  ;;  %v5656_v17 = vsub.s32 1, %v518_v8 }
  0xa2   :  { %4067 = vmatprep.subr.bf16.mxu1 %v5434_v18  ;;  %760 = vmatprep.mubr.f32.mxu0 %v6699_v46 }
  0xa3   :  { %831 = vmatprep.mubr.f32.mxu1 %v6699_v46  ;;  %v520_v18 = vrot.slane %v515_v13, %v5651_v9 }
  0xa4   :  { %4037 = vmatpush1.bf16.msra.mxu0 %v5437_v22  ;;  %v524_v22 = vrot.slane %v515_v13, %v5656_v17 }
  0xa5   :  { %4069 = vmatpush1.bf16.msra.mxu1 %v5441_v26  ;;  %4039 = vmatprep.subr.bf16.mxu0 %v5443_v27  ;;  %v5660_v27 = vsub.s32 3, %v518_v8 }
  0xa6   :  { %4071 = vmatprep.subr.bf16.mxu1 %v5445_v31 }
  0xa8   :  { %4041 = vmatpush1.bf16.msra.mxu0 %v5448_v35 }
  0xa9   :  { %4073 = vmatpush1.bf16.msra.mxu1 %v5452_v39  ;;  %4043 = vmatprep.subr.bf16.mxu0 %v5454_v40 }
  0xaa   :  { %4075 = vmatprep.subr.bf16.mxu1 %v5457_v44 }
  0xac   :  { %4045 = vmatpush1.bf16.msra.mxu0 %v5460_v51 }
  0xad   :  { %4077 = vmatpush1.bf16.msra.mxu1 %v5464_v52  ;;  %4047 = vmatprep.subr.bf16.mxu0 %v5466_v53  ;;  %v532_v53 = vrot.slane %v515_v13, %v5660_v27 }
  0xae   :  { %4079 = vmatprep.subr.bf16.mxu1 %v5469_v57  ;;  %v5663_v57 = vsub.s32 2, %v518_v8 }
  0xb0   :  { %4049 = vmatpush1.bf16.msra.mxu0 %v5472_v63 }
  0xb1   :  { %4081 = vmatpush1.bf16.msra.mxu1 %v5476_v1  ;;  %4051 = vmatprep.subr.bf16.mxu0 %v5478_v2  ;;  %v528_v1 = vrot.slane %v515_v13, %v5663_v57  ;;  %v1113_v13 = vld [vmem:[#allocation12 + $0x78] sm:$0xff] }
  0xb2   :  { %4083 = vmatprep.subr.bf16.mxu1 %v5481_v7 }
  0xb4   :  { %4053 = vmatpush1.bf16.msra.mxu0 %v5484_v16 }
  0xb5   :  { %4085 = vmatpush1.bf16.msra.mxu1 %v5488_v19  ;;  %4055 = vmatprep.subr.bf16.mxu0 %v5490_v20 }
  0xb6   :  { %4087 = vmatprep.subr.bf16.mxu1 %v5493_v25 }
  0xb8   :  { %4057 = vmatpush1.bf16.msra.mxu0 %v5496_v34 }
  0xb9   :  { %4089 = vmatpush1.bf16.msra.mxu1 %v5500_v36  ;;  %4059 = vmatprep.subr.bf16.mxu0 %v5502_v37  ;;  %v98_v37 = vld [vmem:[#allocation9] sm:$0xff] }
  0xba   :  { %4091 = vmatprep.subr.bf16.mxu1 %v5505_v43 }
  0xbc   :  { %4061 = vmatpush1.bf16.msra.mxu0 %v5508_v50 }
  0xbd   :  { %4093 = vmatpush1.bf16.msra.mxu1 %v5512_v54  ;;  %4095 = vmatprep.subr.bf16.mxu0 %v5514_v55 }
  0xbe   :  { %4127 = vmatprep.subr.bf16.mxu1 %v5517_v60 }
 0x172   :  { %v439_v26 = vpop.f32.mrb[0].mxu0 }
 0x173   :  { %v537_v31 = vadd.f32 %v520_v18, %v439_v26  ;;  %v510_v35 = vpop.f32.mrb[0].mxu1  ;;  %v441_v39 = vpop.f32.mrb[1].mxu0  ;;  %v1106_v18 = vld [vmem:[#allocation12 + $0x40] sm:$0xff]  ;;  %v5717_v26 = vpack.c.bf16 %v1113_v13, %v1109_v4  ;;  %v1140_v13 = vld [vmem:[#allocation12 + $0x150] sm:$0xff] }
 0x174   :  { %v538_v40 = vadd.f32 %v524_v22, %v441_v39  ;;  %v512_v44 = vpop.f32.mrb[1].mxu1  ;;  %v539_v7 = vadd.f32 %v528_v1, %v510_v35  ;;  %v1110_v22 = vld [vmem:[#allocation12 + $0x60] sm:$0xff]  ;;  %v1108_v35 = vld [vmem:[#allocation12 + $0x50] sm:$0xff] }
 0x175   :  { %v3878_v51 = vmul.f32 -1.442695, %v537_v31  ;;  %v540_v63 = vadd.f32 %v532_v53, %v512_v44  ;;  %v5719_v31 = vpack.c.bf16 %v1110_v22, %v1106_v18  ;;  %v1112_v39 = vld [vmem:[#allocation12 + $0x70] sm:$0xff]  ;;  %v1115_v44 = vld [vmem:[#allocation12 + $0x88] sm:$0xff]  ;;  %v1114_v1 = vld [vmem:[#allocation12 + $0x80] sm:$0xff] }
 0x176   :  { %v3879_v52 = vmul.f32 -1.442695, %v538_v40  ;;  %v5722_v40 = vpack.c.bf16 %v1112_v39, %v1108_v35  ;;  %v1144_v18 = vld [vmem:[#allocation12 + $0x170] sm:$0xff]  ;;  %v1147_v22 = vld [vmem:[#allocation12 + $0x188] sm:$0xff] }
 0x177   :  { %4971 = vpow2.f32 %v3878_v51  ;;  %v3880_v2 = vmul.f32 -1.442695, %v540_v63  ;;  %v1119_v51 = vld [vmem:[#allocation12 + $0xa8] sm:$0xff]  ;;  %v1121_v63 = vld [vmem:[#allocation12 + $0xb8] sm:$0xff]  ;;  %v5770_v35 = vpack.c.bf16 %v1144_v18, %v1140_v13 }
 0x178   :  { %4973 = vpow2.f32 %v3879_v52  ;;  %v1117_v52 = vld [vmem:[#allocation12 + $0x98] sm:$0xff]  ;;  %v5727_v53 = vpack.c.bf16 %v1119_v51, %v1115_v44  ;;  %v1151_v39 = vld [vmem:[#allocation12 + $0x1a8] sm:$0xff] }
 0x179   :  { %4975 = vpow2.f32 %v3880_v2  ;;  %v1118_v2 = vld [vmem:[#allocation12 + $0xa0] sm:$0xff]  ;;  %v1149_v44 = vld [vmem:[#allocation12 + $0x198] sm:$0xff] }
 0x17a   :  { %4977 = vtanh.f32 %v539_v7  ;;  %v5729_v7 = vpack.c.bf16 %v1121_v63, %v1117_v52  ;;  %v1153_v51 = vld [vmem:[#allocation12 + $0x1b8] sm:$0xff]  ;;  %v5774_v52 = vpack.c.bf16 %v1151_v39, %v1147_v22 }
 0x17b   :  { %v5776_v63 = vpack.c.bf16 %v1153_v51, %v1149_v44 }
 0x181   :  { %v4972_v16 = vpop.eup %4971 }
 0x182   :  { %v4974_v19 = vpop.eup %4973  ;;  %v544_v20 = vadd.f32 1.0, %v4972_v16  ;;  %v5731_v16 = vpack.c.bf16 %v1118_v2, %v1114_v1  ;;  %v1146_v1 = vld [vmem:[#allocation12 + $0x180] sm:$0xff] }
 0x183   :  { %v550_v25 = vadd.f32 1.0, %v4974_v19  ;;  %v4976_v34 = vpop.eup %4975  ;;  %v1116_v19 = vld [vmem:[#allocation12 + $0x90] sm:$0xff]  ;;  %v1150_v2 = vld [vmem:[#allocation12 + $0x1a0] sm:$0xff] }
 0x184   :  { %4979 = vrcp.f32 %v544_v20  ;;  %v4978_v36 = vpop.eup %4977  ;;  %v557_v55 = vadd.f32 1.0, %v4976_v34  ;;  %v1120_v20 = vld [vmem:[#allocation12 + $0xb0] sm:$0xff]  ;;  %v1123_v34 = vld [vmem:[#allocation12 + $0xc8] sm:$0xff] }
 0x185   :  { %4981 = vrcp.f32 %v550_v25  ;;  %v5734_v25 = vpack.c.bf16 %v1120_v20, %v1116_v19  ;;  %v1148_v19 = vld [vmem:[#allocation12 + $0x190] sm:$0xff]  ;;  %v5779_v20 = vpack.c.bf16 %v1150_v2, %v1146_v1 }
 0x186   :  { %4983 = vrcp.f32 %v557_v55  ;;  %v1126_v55 = vld [vmem:[#allocation12 + $0xe0] sm:$0xff] }
 0x18e   :  { %v4980_v43 = vpop.eup %4979 }
 0x18f   :  { %v4982_v50 = vpop.eup %4981  ;;  %v561_v54 = vmul.f32 %v4980_v43, %v4978_v36  ;;  %v1127_v36 = vld [vmem:[#allocation12 + $0xe8] sm:$0xff] }
 0x190   :  { %v560_v60 = vmul.f32 %v4982_v50, %v98_v37  ;;  %v4984_v61 = vpop.eup %4983  ;;  %v1125_v37 = vld [vmem:[#allocation12 + $0xd8] sm:$0xff]  ;;  %v5739_v43 = vpack.c.bf16 %v1127_v36, %v1123_v34  ;;  %v1152_v34 = vld [vmem:[#allocation12 + $0x1b0] sm:$0xff]  ;;  %v1155_v36 = vld [vmem:[#allocation12 + $0x1c8] sm:$0xff] }
 0x191   :  { %v1129_v50 = vld [vmem:[#allocation12 + $0xf8] sm:$0xff] }
 0x192   :  { %v5666_v32 = vadd.f32 %v561_v54, %v560_v60  ;;  %v1122_v54 = vld [vmem:[#allocation12 + $0xc0] sm:$0xff]  ;;  %v5741_v60 = vpack.c.bf16 %v1129_v50, %v1125_v37  ;;  %v1159_v37 = vld [vmem:[#allocation12 + $0x1e8] sm:$0xff]  ;;  %v5783_v50 = vpack.c.bf16 %v1152_v34, %v1148_v19 }
 0x194   :  { %4985 = vtanh.f32 %v5666_v32 }
 0x19e   :  { %v4986_v6 = vpop.eup %4985 }
 0x19f   :  { %v564_v28 = vmul.f32 %v4986_v6, %v4984_v61  ;;  %v5743_v61 = vpack.c.bf16 %v1126_v55, %v1122_v54  ;;  %v1124_v6 = vld [vmem:[#allocation12 + $0xd0] sm:$0xff]  ;;  %v5785_v54 = vpack.c.bf16 %v1159_v37, %v1155_v36  ;;  %v1157_v55 = vld [vmem:[#allocation12 + $0x1d8] sm:$0xff] }
 0x1a1   :  { %565 = vst [vmem:[#allocation13] sm:$0xff] %v564_v28  ;;  %761 = vmatmul.mubr.f32.vlgmr.msra.gmra.mrb[2].mxu0 %v564_v28  ;;  %832 = vmatmul.mubr.f32.vlgmr.msra.gmra.mrb[2].mxu1 %v564_v28  ;;  %v1128_v28 = vld [vmem:[#allocation12 + $0xf0] sm:$0xff] }
 0x1a2   :  { %4097 = vmatpush1.bf16.msra.mxu0 %v5520_v11  ;;  %4129 = vmatpush1.bf16.msra.mxu1 %v5524_v12  ;;  %v6700_v11 = vld [vmem:[#allocation22_spill] sm:$0xff]  ;;  %v6701_v12 = vld [vmem:[#allocation23_spill] sm:$0xff] }
 0x1a3   :  { %4099 = vmatprep.subr.bf16.mxu0 %v5526_v14  ;;  %4131 = vmatprep.subr.bf16.mxu1 %v5529_v24  ;;  %v6702_v14 = vld [vmem:[#allocation24_spill] sm:$0xff]  ;;  %v6703_v24 = vld [vmem:[#allocation25_spill] sm:$0xff] }
 0x1a4   :  { %902 = vmatprep.mubr.f32.mxu0 %v6699_v46  ;;  %973 = vmatprep.mubr.f32.mxu1 %v6699_v46 }
 0x1a6   :  { %4101 = vmatpush1.bf16.msra.mxu0 %v5532_v38  ;;  %4133 = vmatpush1.bf16.msra.mxu1 %v5536_v41  ;;  %v6706_v38 = vld [vmem:[#allocation28_spill] sm:$0xff]  ;;  %v6707_v41 = vld [vmem:[#allocation29_spill] sm:$0xff] }
 0x1a7   :  { %4103 = vmatprep.subr.bf16.mxu0 %v5538_v42  ;;  %4135 = vmatprep.subr.bf16.mxu1 %v5541_v48  ;;  %v6708_v42 = vld [vmem:[#allocation30_spill] sm:$0xff]  ;;  %v6709_v48 = vld [vmem:[#allocation31_spill] sm:$0xff] }
 0x1aa   :  { %4105 = vmatpush1.bf16.msra.mxu0 %v5546_v62  ;;  %4137 = vmatpush1.bf16.msra.mxu1 %v6700_v11  ;;  %v567_v62 = vld [vmem:[#allocation4 + $0x8] sm:$0xff]  ;;  %v5746_v11 = vpack.c.bf16 %v1128_v28, %v1124_v6  ;;  %v1154_v28 = vld [vmem:[#allocation12 + $0x1c0] sm:$0xff] }
 0x1ab   :  { %4107 = vmatprep.subr.bf16.mxu0 %v6701_v12  ;;  %4139 = vmatprep.subr.bf16.mxu1 %v6702_v14  ;;  %v1131_v12 = vld [vmem:[#allocation12 + $0x108] sm:$0xff]  ;;  %v1161_v6 = vld [vmem:[#allocation12 + $0x1f8] sm:$0xff] }
 0x1ac   :  { %v1135_v14 = vld [vmem:[#allocation12 + $0x128] sm:$0xff] }
 0x1ae   :  { %4109 = vmatpush1.bf16.msra.mxu0 %v6703_v24  ;;  %4141 = vmatpush1.bf16.msra.mxu1 %v6704_v29  ;;  %v1133_v24 = vld [vmem:[#allocation12 + $0x118] sm:$0xff]  ;;  %v5751_v29 = vpack.c.bf16 %v1135_v14, %v1131_v12  ;;  %v5787_v12 = vpack.c.bf16 %v1161_v6, %v1157_v55  ;;  %v1158_v14 = vld [vmem:[#allocation12 + $0x1e0] sm:$0xff] }
 0x1af   :  { %4111 = vmatprep.subr.bf16.mxu0 %v6705_v33  ;;  %4143 = vmatprep.subr.bf16.mxu1 %v6706_v38  ;;  %v1137_v33 = vld [vmem:[#allocation12 + $0x138] sm:$0xff]  ;;  %v1130_v38 = vld [vmem:[#allocation12 + $0x100] sm:$0xff] }
 0x1b2   :  { %4113 = vmatpush1.bf16.msra.mxu0 %v6707_v41  ;;  %4145 = vmatpush1.bf16.msra.mxu1 %v6708_v42  ;;  %v1134_v41 = vld [vmem:[#allocation12 + $0x120] sm:$0xff]  ;;  %v5753_v42 = vpack.c.bf16 %v1137_v33, %v1133_v24  ;;  %v1156_v24 = vld [vmem:[#allocation12 + $0x1d0] sm:$0xff] }
 0x1b3   :  { %4115 = vmatprep.subr.bf16.mxu0 %v5576_v23  ;;  %4147 = vmatprep.subr.bf16.mxu1 %v6709_v48  ;;  %v1103_v23 = vld [vmem:[#allocation12 + $0x28] sm:$0xff]  ;;  %v5755_v48 = vpack.c.bf16 %v1134_v41, %v1130_v38  ;;  %v1160_v33 = vld [vmem:[#allocation12 + $0x1f0] sm:$0xff]  ;;  %v5790_v38 = vpack.c.bf16 %v1158_v14, %v1154_v28 }
 0x1b4   :  { %v1035_v41 = vld [vmem:[#allocation10 + $0x8] sm:$0xff] }
 0x1b6   :  { %4117 = vmatpush1.bf16.msra.mxu0 %v5582_v45  ;;  %4149 = vmatpush1.bf16.msra.mxu1 %v5586_v0  ;;  %v1099_v45 = vld [vmem:[#allocation12 + $0x8] sm:$0xff] }
 0x1b7   :  { %4119 = vmatprep.subr.bf16.mxu0 %v5588_v56  ;;  %4151 = vmatprep.subr.bf16.mxu1 %v5591_v10  ;;  %v5703_v0 = vpack.c.bf16 %v1103_v23, %v1099_v45  ;;  %v1105_v56 = vld [vmem:[#allocation12 + $0x38] sm:$0xff]  ;;  %v1098_v10 = vld [vmem:[#allocation12] sm:$0xff]  ;;  %v1136_v45 = vld [vmem:[#allocation12 + $0x130] sm:$0xff] }
 0x1ba   :  { %4121 = vmatpush1.bf16.msra.mxu0 %v5594_v15  ;;  %4153 = vmatpush1.bf16.msra.mxu1 %v5598_v5  ;;  %v1101_v15 = vld [vmem:[#allocation12 + $0x18] sm:$0xff]  ;;  %v1102_v5 = vld [vmem:[#allocation12 + $0x20] sm:$0xff] }
 0x1bb   :  { %4123 = vmatprep.subr.bf16.mxu0 %v5600_v21  ;;  %4155 = vmatprep.subr.bf16.mxu1 %v5603_v47  ;;  %v5705_v21 = vpack.c.bf16 %v1105_v56, %v1101_v15  ;;  %v5707_v30 = vpack.c.bf16 %v1102_v5, %v1098_v10  ;;  %v1100_v47 = vld [vmem:[#allocation12 + $0x10] sm:$0xff]  ;;  %v1139_v15 = vld [vmem:[#allocation12 + $0x148] sm:$0xff]  ;;  %v1141_v10 = vld [vmem:[#allocation12 + $0x158] sm:$0xff] }
 0x1bc   :  { %v1143_v56 = vld [vmem:[#allocation12 + $0x168] sm:$0xff] }
 0x1bd   :  { %v5763_v5 = vpack.c.bf16 %v1143_v56, %v1139_v15  ;;  %v5794_v15 = vpack.c.bf16 %v1160_v33, %v1156_v24 }
 0x1be   :  { %4125 = vmatpush1.bf16.msra.mxu0 %v5606_v59  ;;  %4157 = vmatpush1.bf16.msra.mxu1 %v5610_v58  ;;  %v5710_v59 = vpack.c.bf16 %v1104_v49, %v1100_v47  ;;  %v1107_v58 = vld [vmem:[#allocation12 + $0x48] sm:$0xff]  ;;  %v1145_v47 = vld [vmem:[#allocation12 + $0x178] sm:$0xff]  ;;  %v1138_v49 = vld [vmem:[#allocation12 + $0x140] sm:$0xff] }
 0x1bf   :  { %4159 = vmatprep.subr.bf16.mxu0 %v5703_v0  ;;  %4191 = vmatprep.subr.bf16.mxu1 %v5705_v21  ;;  %v5715_v8 = vpack.c.bf16 %v1111_v3, %v1107_v58  ;;  %v1142_v58 = vld [vmem:[#allocation12 + $0x160] sm:$0xff]  ;;  %v5765_v3 = vpack.c.bf16 %v1145_v47, %v1141_v10  ;;  %v1041_v10 = vld [vmem:[#allocation10 + $0x38] sm:$0xff] }
 0x1c0   :  { %v5767_v4 = vpack.c.bf16 %v1142_v58, %v1138_v49  ;;  %v980_v49 = vld [vmem:[%s6625_s5] sm:$0xf] }
 0x1c1   :  { %903 = vmatmul.mubr.f32.vlgmr.msra.gmra.mrb[2].mxu0 %v567_v62  ;;  %974 = vmatmul.mubr.f32.vlgmr.msra.gmra.mrb[2].mxu1 %v567_v62  ;;  %v1132_v62 = vld [vmem:[#allocation12 + $0x110] sm:$0xff]  ;;  %v985_v58 = vrot.slane %v980_v49, %v5651_v9  ;;  %v989_v13 = vrot.slane %v980_v49, %v5656_v17  ;;  %v997_v34 = vrot.slane %v980_v49, %v5660_v27 }
 0x1c2   :  { %1226 = vmatprep.mubr.f32.mxu0 %v6699_v46  ;;  %1297 = vmatprep.mubr.f32.mxu1 %v6699_v46  ;;  %v5758_v23 = vpack.c.bf16 %v1136_v45, %v1132_v62  ;;  %v1039_v62 = vld [vmem:[#allocation10 + $0x28] sm:$0xff]  ;;  %v1037_v45 = vld [vmem:[#allocation10 + $0x18] sm:$0xff]  ;;  %v993_v37 = vrot.slane %v980_v49, %v5663_v57  ;;  %v1034_v49 = vld [vmem:[#allocation10] sm:$0xff] }
 0x1c3   :  { %4161 = vmatpush1.bf16.msra.mxu0 %v5707_v30  ;;  %4193 = vmatpush1.bf16.msra.mxu1 %v5710_v59  ;;  %v5796_v56 = vpack.c.bf16 %v1039_v62, %v1035_v41  ;;  %v5799_v47 = vpack.c.bf16 %v1041_v10, %v1037_v45 }
 0x1c4   :  { %4163 = vmatprep.subr.bf16.mxu0 %v5715_v8  ;;  %4195 = vmatprep.subr.bf16.mxu1 %v5717_v26 }
 0x1c7   :  { %4165 = vmatpush1.bf16.msra.mxu0 %v5719_v31  ;;  %4197 = vmatpush1.bf16.msra.mxu1 %v5722_v40 }
 0x1c8   :  { %4167 = vmatprep.subr.bf16.mxu0 %v5727_v53  ;;  %4199 = vmatprep.subr.bf16.mxu1 %v5729_v7 }
 0x1cb   :  { %4169 = vmatpush1.bf16.msra.mxu0 %v5731_v16  ;;  %4201 = vmatpush1.bf16.msra.mxu1 %v5734_v25 }
 0x1cc   :  { %4171 = vmatprep.subr.bf16.mxu0 %v5739_v43  ;;  %4203 = vmatprep.subr.bf16.mxu1 %v5741_v60 }
 0x1cf   :  { %4173 = vmatpush1.bf16.msra.mxu0 %v5743_v61  ;;  %4205 = vmatpush1.bf16.msra.mxu1 %v5746_v11 }
 0x1d0   :  { %4175 = vmatprep.subr.bf16.mxu0 %v5751_v29  ;;  %4207 = vmatprep.subr.bf16.mxu1 %v5753_v42 }
 0x1d3   :  { %4177 = vmatpush1.bf16.msra.mxu0 %v5755_v48  ;;  %4209 = vmatpush1.bf16.msra.mxu1 %v5758_v23 }
 0x1d4   :  { %4179 = vmatprep.subr.bf16.mxu0 %v5763_v5  ;;  %4211 = vmatprep.subr.bf16.mxu1 %v5765_v3 }
 0x1d7   :  { %4181 = vmatpush1.bf16.msra.mxu0 %v5767_v4  ;;  %4213 = vmatpush1.bf16.msra.mxu1 %v5770_v35 }
 0x1d8   :  { %4183 = vmatprep.subr.bf16.mxu0 %v5774_v52  ;;  %4215 = vmatprep.subr.bf16.mxu1 %v5776_v63 }
 0x1db   :  { %4185 = vmatpush1.bf16.msra.mxu0 %v5779_v20  ;;  %4217 = vmatpush1.bf16.msra.mxu1 %v5783_v50 }
 0x1dc   :  { %4187 = vmatprep.subr.bf16.mxu0 %v5785_v54  ;;  %4219 = vmatprep.subr.bf16.mxu1 %v5787_v12 }
 0x1df   :  { %4189 = vmatpush1.bf16.msra.mxu0 %v5790_v38  ;;  %4221 = vmatpush1.bf16.msra.mxu1 %v5794_v15 }
 0x1e0   :  { %4223 = vmatprep.subr.bf16.mxu0 %v5796_v56  ;;  %4255 = vmatprep.subr.bf16.mxu1 %v5799_v47 }
 0x294   :  { %v904_v18 = vpop.f32.mrb[2].mxu0  ;;  %v975_v22 = vpop.f32.mrb[2].mxu1 }
 0x295   :  { %v1002_v39 = vadd.f32 %v985_v58, %v904_v18  ;;  %v906_v44 = vpop.f32.mrb[3].mxu0  ;;  %v977_v51 = vpop.f32.mrb[3].mxu1  ;;  %v1004_v6 = vadd.f32 %v993_v37, %v975_v22  ;;  %v1038_v22 = vld [vmem:[#allocation10 + $0x20] sm:$0xff] }
 0x296   :  { %v1003_v1 = vadd.f32 %v989_v13, %v906_v44  ;;  %v1005_v36 = vadd.f32 %v997_v34, %v977_v51  ;;  %v1036_v44 = vld [vmem:[#allocation10 + $0x10] sm:$0xff]  ;;  %v1049_v34 = vld [vmem:[#allocation10 + $0x78] sm:$0xff] }
 0x297   :  { %v3881_v2 = vmul.f32 -1.442695, %v1002_v39  ;;  %v1040_v51 = vld [vmem:[#allocation10 + $0x30] sm:$0xff] }
 0x298   :  { %v3882_v19 = vmul.f32 -1.442695, %v1003_v1  ;;  %v3883_v55 = vmul.f32 -1.442695, %v1005_v36  ;;  %v1043_v1 = vld [vmem:[#allocation10 + $0x48] sm:$0xff] }
 0x299   :  { %4987 = vpow2.f32 %v3881_v2  ;;  %v1047_v2 = vld [vmem:[#allocation10 + $0x68] sm:$0xff] }
 0x29a   :  { %4989 = vpow2.f32 %v3882_v19  ;;  %v1045_v19 = vld [vmem:[#allocation10 + $0x58] sm:$0xff] }
 0x29b   :  { %4991 = vpow2.f32 %v3883_v55  ;;  %v5816_v55 = vpack.c.bf16 %v1038_v22, %v1034_v49  ;;  %v1050_v22 = vld [vmem:[#allocation10 + $0x80] sm:$0xff] }
 0x29c   :  { %4993 = vtanh.f32 %v1004_v6  ;;  %v5818_v6 = vpack.c.bf16 %v1040_v51, %v1036_v44  ;;  %v1054_v44 = vld [vmem:[#allocation10 + $0xa0] sm:$0xff] }
 0x2a3   :  { %v4988_v28 = vpop.eup %4987 }
 0x2a4   :  { %v4990_v14 = vpop.eup %4989  ;;  %v1009_v24 = vadd.f32 1.0, %v4988_v28  ;;  %v1046_v28 = vld [vmem:[#allocation10 + $0x60] sm:$0xff] }
 0x2a5   :  { %v1015_v33 = vadd.f32 1.0, %v4990_v14  ;;  %v4992_v41 = vpop.eup %4991 }
 0x2a6   :  { %4995 = vrcp.f32 %v1009_v24  ;;  %v4994_v62 = vpop.eup %4993  ;;  %v1022_v13 = vadd.f32 1.0, %v4992_v41  ;;  %v5820_v24 = vpack.c.bf16 %v1047_v2, %v1043_v1  ;;  %v1044_v41 = vld [vmem:[#allocation10 + $0x50] sm:$0xff] }
 0x2a7   :  { %4997 = vrcp.f32 %v1015_v33  ;;  %v5822_v33 = vpack.c.bf16 %v1049_v34, %v1045_v19  ;;  %v1052_v2 = vld [vmem:[#allocation10 + $0x90] sm:$0xff]  ;;  %v1059_v34 = vld [vmem:[#allocation10 + $0xc8] sm:$0xff] }
 0x2a8   :  { %4999 = vrcp.f32 %v1022_v13  ;;  %6710 = vst [vmem:[#allocation22_spill] sm:$0xff] %v5820_v24  ;;  %v1057_v13 = vld [vmem:[#allocation10 + $0xb8] sm:$0xff]  ;;  %v1056_v19 = vld [vmem:[#allocation10 + $0xb0] sm:$0xff] }
 0x2a9   :  { %6711 = vst [vmem:[#allocation23_spill] sm:$0xff] %v5822_v33 }
 0x2b0   :  { %v4996_v45 = vpop.eup %4995 }
 0x2b1   :  { %v4998_v10 = vpop.eup %4997  ;;  %v1026_v58 = vmul.f32 %v4996_v45, %v4994_v62  ;;  %v1048_v62 = vld [vmem:[#allocation10 + $0x70] sm:$0xff]  ;;  %v1051_v45 = vld [vmem:[#allocation10 + $0x88] sm:$0xff] }
 0x2b2   :  { %v1025_v18 = vmul.f32 %v4998_v10, %v5666_v32  ;;  %v5000_v36 = vpop.eup %4999  ;;  %v1042_v32 = vld [vmem:[#allocation10 + $0x40] sm:$0xff]  ;;  %v1055_v10 = vld [vmem:[#allocation10 + $0xa8] sm:$0xff]  ;;  %v5828_v49 = vpack.c.bf16 %v1048_v62, %v1044_v41 }
 0x2b3   :  { %v5832_v51 = vpack.c.bf16 %v1055_v10, %v1051_v45  ;;  %v1058_v41 = vld [vmem:[#allocation10 + $0xc0] sm:$0xff] }
 0x2b4   :  { %v5813_v39 = vadd.f32 %v1026_v58, %v1025_v18  ;;  %v1053_v58 = vld [vmem:[#allocation10 + $0x98] sm:$0xff]  ;;  %v5826_v18 = vpack.c.bf16 %v1046_v28, %v1042_v32  ;;  %6713 = vst [vmem:[#allocation25_spill] sm:$0xff] %v5828_v49  ;;  %v5840_v32 = vpack.c.bf16 %v1054_v44, %v1050_v22  ;;  %v5842_v28 = vpack.c.bf16 %v1056_v19, %v1052_v2  ;;  %v1062_v62 = vld [vmem:[#allocation10 + $0xe0] sm:$0xff] }
 0x2b5   :  { %6714 = vst [vmem:[#allocation26_spill] sm:$0xff] %v5832_v51  ;;  %v5834_v1 = vpack.c.bf16 %v1057_v13, %v1053_v58  ;;  %v1060_v58 = vld [vmem:[#allocation10 + $0xd0] sm:$0xff]  ;;  %v5852_v22 = vpack.c.bf16 %v1062_v62, %v1058_v41  ;;  %v1066_v2 = vld [vmem:[#allocation10 + $0x100] sm:$0xff] }
 0x2b6   :  { %5001 = vtanh.f32 %v5813_v39  ;;  %6712 = vst [vmem:[#allocation24_spill] sm:$0xff] %v5826_v18  ;;  %6716 = vst [vmem:[#allocation28_spill] sm:$0xff] %v5840_v32  ;;  %v1064_v13 = vld [vmem:[#allocation10 + $0xf0] sm:$0xff]  ;;  %v1070_v19 = vld [vmem:[#allocation10 + $0x120] sm:$0xff] }
 0x2b7   :  { %6715 = vst [vmem:[#allocation27_spill] sm:$0xff] %v5834_v1  ;;  %6717 = vst [vmem:[#allocation29_spill] sm:$0xff] %v5842_v28  ;;  %v5854_v44 = vpack.c.bf16 %v1064_v13, %v1060_v58  ;;  %v5864_v41 = vpack.c.bf16 %v1070_v19, %v1066_v2  ;;  %v1074_v58 = vld [vmem:[#allocation10 + $0x140] sm:$0xff] }
 0x2b8   :  { %6720 = vst [vmem:[#allocation32_spill] sm:$0xff] %v5852_v22  ;;  %v1078_v13 = vld [vmem:[#allocation10 + $0x160] sm:$0xff] }
 0x2b9   :  { %6721 = vst [vmem:[#allocation33_spill] sm:$0xff] %v5854_v44  ;;  %6724 = vst [vmem:[#allocation36_spill] sm:$0xff] %v5864_v41  ;;  %v5876_v2 = vpack.c.bf16 %v1078_v13, %v1074_v58 }
 0x2c0   :  { %v5002_v37 = vpop.eup %5001 }
 0x2c1   :  { %v1029_v14 = vmul.f32 %v5002_v37, %v5000_v36  ;;  %v1063_v36 = vld [vmem:[#allocation10 + $0xe8] sm:$0xff]  ;;  %v1061_v37 = vld [vmem:[#allocation10 + $0xd8] sm:$0xff] }
 0x2c2   :  { %v5846_v45 = vpack.c.bf16 %v1063_v36, %v1059_v34 }
 0x2c3   :  { %1031 = vst [vmem:[#allocation13 + $0x8] sm:$0xff] %v1029_v14  ;;  %1227 = vmatmul.mubr.f32.vlgmr.msra.gmra.mrb[4].mxu0 %v1029_v14  ;;  %1298 = vmatmul.mubr.f32.vlgmr.msra.gmra.mrb[4].mxu1 %v1029_v14  ;;  %v1065_v14 = vld [vmem:[#allocation10 + $0xf8] sm:$0xff] }
 0x2c4   :  { %4225 = vmatpush1.bf16.msra.mxu0 %v5816_v55  ;;  %4257 = vmatpush1.bf16.msra.mxu1 %v5818_v6  ;;  %6718 = vst [vmem:[#allocation30_spill] sm:$0xff] %v5846_v45  ;;  %v5848_v10 = vpack.c.bf16 %v1065_v14, %v1061_v37  ;;  %v1068_v37 = vld [vmem:[#allocation10 + $0x110] sm:$0xff] }
 0x2c5   :  { %4227 = vmatprep.subr.bf16.mxu0 %v5820_v24  ;;  %4259 = vmatprep.subr.bf16.mxu1 %v5822_v33  ;;  %v1067_v33 = vld [vmem:[#allocation10 + $0x108] sm:$0xff]  ;;  %v1069_v24 = vld [vmem:[#allocation10 + $0x118] sm:$0xff]  ;;  %v1072_v14 = vld [vmem:[#allocation10 + $0x130] sm:$0xff] }
 0x2c6   :  { %1368 = vmatprep.mubr.f32.mxu0 %v6699_v46  ;;  %1439 = vmatprep.mubr.f32.mxu1 %v6699_v46  ;;  %6719 = vst [vmem:[#allocation31_spill] sm:$0xff] %v5848_v10  ;;  %v5866_v62 = vpack.c.bf16 %v1072_v14, %v1068_v37  ;;  %v1082_v37 = vld [vmem:[#allocation10 + $0x180] sm:$0xff] }
 0x2c7   :  { %v1086_v14 = vld [vmem:[#allocation10 + $0x1a0] sm:$0xff] }
 0x2c8   :  { %4229 = vmatpush1.bf16.msra.mxu0 %v5826_v18  ;;  %4261 = vmatpush1.bf16.msra.mxu1 %v5828_v49  ;;  %v1071_v18 = vld [vmem:[#allocation10 + $0x128] sm:$0xff]  ;;  %v1073_v49 = vld [vmem:[#allocation10 + $0x138] sm:$0xff]  ;;  %6725 = vst [vmem:[#allocation37_spill] sm:$0xff] %v5866_v62  ;;  %v5888_v58 = vpack.c.bf16 %v1086_v14, %v1082_v37 }
 0x2c9   :  { %4231 = vmatprep.subr.bf16.mxu0 %v5832_v51  ;;  %4263 = vmatprep.subr.bf16.mxu1 %v5834_v1  ;;  %v5858_v34 = vpack.c.bf16 %v1071_v18, %v1067_v33  ;;  %v5860_v36 = vpack.c.bf16 %v1073_v49, %v1069_v24  ;;  %v1075_v1 = vld [vmem:[#allocation10 + $0x148] sm:$0xff]  ;;  %v1077_v51 = vld [vmem:[#allocation10 + $0x158] sm:$0xff]  ;;  %v1076_v18 = vld [vmem:[#allocation10 + $0x150] sm:$0xff] }
 0x2ca   :  { %v1080_v49 = vld [vmem:[#allocation10 + $0x170] sm:$0xff] }
 0x2cb   :  { %6722 = vst [vmem:[#allocation34_spill] sm:$0xff] %v5858_v34  ;;  %6723 = vst [vmem:[#allocation35_spill] sm:$0xff] %v5860_v36  ;;  %v5878_v19 = vpack.c.bf16 %v1080_v49, %v1076_v18  ;;  %v1090_v18 = vld [vmem:[#allocation10 + $0x1c0] sm:$0xff]  ;;  %v1096_v49 = vld [vmem:[#allocation10 + $0x1f0] sm:$0xff] }
 0x2cc   :  { %4233 = vmatpush1.bf16.msra.mxu0 %v5840_v32  ;;  %4265 = vmatpush1.bf16.msra.mxu1 %v5842_v28  ;;  %v1079_v32 = vld [vmem:[#allocation10 + $0x168] sm:$0xff]  ;;  %v1081_v28 = vld [vmem:[#allocation10 + $0x178] sm:$0xff] }
 0x2cd   :  { %4235 = vmatprep.subr.bf16.mxu0 %v5846_v45  ;;  %4267 = vmatprep.subr.bf16.mxu1 %v5848_v10  ;;  %v5870_v24 = vpack.c.bf16 %v1079_v32, %v1075_v1  ;;  %v5872_v33 = vpack.c.bf16 %v1081_v28, %v1077_v51  ;;  %v1083_v10 = vld [vmem:[#allocation10 + $0x188] sm:$0xff]  ;;  %v1085_v45 = vld [vmem:[#allocation10 + $0x198] sm:$0xff]  ;;  %v1084_v32 = vld [vmem:[#allocation10 + $0x190] sm:$0xff] }
 0x2ce   :  { %v1088_v28 = vld [vmem:[#allocation10 + $0x1b0] sm:$0xff] }
 0x2cf   :  { %v5890_v13 = vpack.c.bf16 %v1088_v28, %v1084_v32  ;;  %v6735_v32 = vld [vmem:[#allocation31_spill] sm:$0xff]  ;;  %v6736_v28 = vld [vmem:[#allocation32_spill] sm:$0xff] }
 0x2d0   :  { %4237 = vmatpush1.bf16.msra.mxu0 %v5852_v22  ;;  %4269 = vmatpush1.bf16.msra.mxu1 %v5854_v44  ;;  %v1087_v22 = vld [vmem:[#allocation10 + $0x1a8] sm:$0xff]  ;;  %v1089_v44 = vld [vmem:[#allocation10 + $0x1b8] sm:$0xff] }
 0x2d1   :  { %4239 = vmatprep.subr.bf16.mxu0 %v5858_v34  ;;  %4271 = vmatprep.subr.bf16.mxu1 %v5860_v36  ;;  %v5882_v51 = vpack.c.bf16 %v1087_v22, %v1083_v10  ;;  %v5884_v1 = vpack.c.bf16 %v1089_v44, %v1085_v45  ;;  %v1091_v36 = vld [vmem:[#allocation10 + $0x1c8] sm:$0xff]  ;;  %v1093_v34 = vld [vmem:[#allocation10 + $0x1d8] sm:$0xff]  ;;  %v1094_v22 = vld [vmem:[#allocation10 + $0x1e0] sm:$0xff] }
 0x2d2   :  { %v1092_v44 = vld [vmem:[#allocation10 + $0x1d0] sm:$0xff]  ;;  %v5900_v37 = vpack.c.bf16 %v1094_v22, %v1090_v18  ;;  %v6737_v18 = vld [vmem:[#allocation33_spill] sm:$0xff] }
 0x2d3   :  { %v5902_v14 = vpack.c.bf16 %v1096_v49, %v1092_v44  ;;  %v6738_v22 = vld [vmem:[#allocation34_spill] sm:$0xff]  ;;  %v6739_v44 = vld [vmem:[#allocation35_spill] sm:$0xff]  ;;  %v6740_v49 = vld [vmem:[#allocation36_spill] sm:$0xff] }
 0x2d4   :  { %4241 = vmatpush1.bf16.msra.mxu0 %v5864_v41  ;;  %4273 = vmatpush1.bf16.msra.mxu1 %v5866_v62  ;;  %v1095_v41 = vld [vmem:[#allocation10 + $0x1e8] sm:$0xff]  ;;  %v1097_v62 = vld [vmem:[#allocation10 + $0x1f8] sm:$0xff] }
 0x2d5   :  { %4243 = vmatprep.subr.bf16.mxu0 %v5870_v24  ;;  %4275 = vmatprep.subr.bf16.mxu1 %v5872_v33  ;;  %v5894_v45 = vpack.c.bf16 %v1095_v41, %v1091_v36  ;;  %v5896_v10 = vpack.c.bf16 %v1097_v62, %v1093_v34  ;;  %v1033_v34 = vld [vmem:[#allocation4 + $0x10] sm:$0xff]  ;;  %v6730_v36 = vld [vmem:[#allocation26_spill] sm:$0xff]  ;;  %v6731_v41 = vld [vmem:[#allocation27_spill] sm:$0xff] }
 0x2d6   :  { %v6732_v62 = vld [vmem:[#allocation28_spill] sm:$0xff] }
 0x2d8   :  { %4245 = vmatpush1.bf16.msra.mxu0 %v5876_v2  ;;  %4277 = vmatpush1.bf16.msra.mxu1 %v5878_v19 }
 0x2d9   :  { %4247 = vmatprep.subr.bf16.mxu0 %v5882_v51  ;;  %4279 = vmatprep.subr.bf16.mxu1 %v5884_v1 }
 0x2dc   :  { %4249 = vmatpush1.bf16.msra.mxu0 %v5888_v58  ;;  %4281 = vmatpush1.bf16.msra.mxu1 %v5890_v13 }
 0x2dd   :  { %4251 = vmatprep.subr.bf16.mxu0 %v5894_v45  ;;  %4283 = vmatprep.subr.bf16.mxu1 %v5896_v10 }
 0x2e0   :  { %4253 = vmatpush1.bf16.msra.mxu0 %v5900_v37  ;;  %4285 = vmatpush1.bf16.msra.mxu1 %v5902_v14 }
 0x2e1   :  { %4287 = vmatprep.subr.bf16.mxu0 %v5703_v0  ;;  %4319 = vmatprep.subr.bf16.mxu1 %v5705_v21  ;;  %v1446_v0 = vld [vmem:[%s6625_s5] sm:$0xf] }
 0x2e2   :  { %v1451_v21 = vrot.slane %v1446_v0, %v5651_v9 }
 0x2e3   :  { %1369 = vmatmul.mubr.f32.vlgmr.msra.gmra.mrb[4].mxu0 %v1033_v34  ;;  %1440 = vmatmul.mubr.f32.vlgmr.msra.gmra.mrb[4].mxu1 %v1033_v34  ;;  %v6741_v34 = vld [vmem:[#allocation37_spill] sm:$0xff] }
 0x2e4   :  { %4289 = vmatpush1.bf16.msra.mxu0 %v5707_v30  ;;  %4321 = vmatpush1.bf16.msra.mxu1 %v5710_v59  ;;  %v1455_v30 = vrot.slane %v1446_v0, %v5656_v17 }
 0x2e5   :  { %4291 = vmatprep.subr.bf16.mxu0 %v5715_v8  ;;  %4323 = vmatprep.subr.bf16.mxu1 %v5717_v26 }
 0x2e6   :  { %1692 = vmatprep.mubr.f32.mxu0 %v6699_v46  ;;  %1763 = vmatprep.mubr.f32.mxu1 %v6699_v46 }
 0x2e8   :  { %4293 = vmatpush1.bf16.msra.mxu0 %v5719_v31  ;;  %4325 = vmatpush1.bf16.msra.mxu1 %v5722_v40 }
 0x2e9   :  { %4295 = vmatprep.subr.bf16.mxu0 %v5727_v53  ;;  %4327 = vmatprep.subr.bf16.mxu1 %v5729_v7 }
 0x2ec   :  { %4297 = vmatpush1.bf16.msra.mxu0 %v5731_v16  ;;  %4329 = vmatpush1.bf16.msra.mxu1 %v5734_v25  ;;  %v1463_v25 = vrot.slane %v1446_v0, %v5660_v27 }
 0x2ed   :  { %4299 = vmatprep.subr.bf16.mxu0 %v5739_v43  ;;  %4331 = vmatprep.subr.bf16.mxu1 %v5741_v60  ;;  %v1459_v60 = vrot.slane %v1446_v0, %v5663_v57 }
 0x2f0   :  { %4301 = vmatpush1.bf16.msra.mxu0 %v5743_v61  ;;  %4333 = vmatpush1.bf16.msra.mxu1 %v5746_v11 }
 0x2f1   :  { %4303 = vmatprep.subr.bf16.mxu0 %v5751_v29  ;;  %4335 = vmatprep.subr.bf16.mxu1 %v5753_v42 }
 0x2f4   :  { %4305 = vmatpush1.bf16.msra.mxu0 %v5755_v48  ;;  %4337 = vmatpush1.bf16.msra.mxu1 %v5758_v23 }
 0x2f5   :  { %4307 = vmatprep.subr.bf16.mxu0 %v5763_v5  ;;  %4339 = vmatprep.subr.bf16.mxu1 %v5765_v3 }
 0x2f8   :  { %4309 = vmatpush1.bf16.msra.mxu0 %v5767_v4  ;;  %4341 = vmatpush1.bf16.msra.mxu1 %v5770_v35 }
 0x2f9   :  { %4311 = vmatprep.subr.bf16.mxu0 %v5774_v52  ;;  %4343 = vmatprep.subr.bf16.mxu1 %v5776_v63 }
 0x2fc   :  { %4313 = vmatpush1.bf16.msra.mxu0 %v5779_v20  ;;  %4345 = vmatpush1.bf16.msra.mxu1 %v5783_v50 }
 0x2fd   :  { %4315 = vmatprep.subr.bf16.mxu0 %v5785_v54  ;;  %4347 = vmatprep.subr.bf16.mxu1 %v5787_v12 }
 0x300   :  { %4317 = vmatpush1.bf16.msra.mxu0 %v5790_v38  ;;  %4349 = vmatpush1.bf16.msra.mxu1 %v5794_v15  ;;  %v6726_v15 = vld [vmem:[#allocation22_spill] sm:$0xff] }
 0x301   :  { %4351 = vmatprep.subr.bf16.mxu0 %v5796_v56  ;;  %4383 = vmatprep.subr.bf16.mxu1 %v5799_v47  ;;  %v6727_v56 = vld [vmem:[#allocation23_spill] sm:$0xff]  ;;  %v6728_v47 = vld [vmem:[#allocation24_spill] sm:$0xff] }
 0x3b6   :  { %v1370_v59 = vpop.f32.mrb[4].mxu0  ;;  %v1441_v8 = vpop.f32.mrb[4].mxu1 }
 0x3b7   :  { %v1468_v26 = vadd.f32 %v1451_v21, %v1370_v59  ;;  %v1372_v31 = vpop.f32.mrb[5].mxu0  ;;  %v1443_v40 = vpop.f32.mrb[5].mxu1  ;;  %v1470_v11 = vadd.f32 %v1459_v60, %v1441_v8  ;;  %v2039_v21 = vld [vmem:[#allocation12 + $0x48] sm:$0xff]  ;;  %v2041_v59 = vld [vmem:[#allocation12 + $0x58] sm:$0xff] }
 0x3b8   :  { %v1469_v53 = vadd.f32 %v1455_v30, %v1372_v31  ;;  %v1471_v43 = vadd.f32 %v1463_v25, %v1443_v40  ;;  %v2043_v30 = vld [vmem:[#allocation12 + $0x68] sm:$0xff]  ;;  %v2038_v31 = vld [vmem:[#allocation12 + $0x40] sm:$0xff]  ;;  %v2044_v25 = vld [vmem:[#allocation12 + $0x70] sm:$0xff] }
 0x3b9   :  { %v3884_v7 = vmul.f32 -1.442695, %v1468_v26  ;;  %v6001_v8 = vpack.c.bf16 %v2043_v30, %v2039_v21  ;;  %v2045_v26 = vld [vmem:[#allocation12 + $0x78] sm:$0xff]  ;;  %v2042_v40 = vld [vmem:[#allocation12 + $0x60] sm:$0xff]  ;;  %v2047_v60 = vld [vmem:[#allocation12 + $0x88] sm:$0xff] }
 0x3ba   :  { %v3885_v16 = vmul.f32 -1.442695, %v1469_v53  ;;  %v3886_v61 = vmul.f32 -1.442695, %v1471_v43  ;;  %v6003_v53 = vpack.c.bf16 %v2045_v26, %v2041_v59  ;;  %v2074_v21 = vld [vmem:[#allocation12 + $0x160] sm:$0xff]  ;;  %v2072_v26 = vld [vmem:[#allocation12 + $0x150] sm:$0xff] }
 0x3bb   :  { %5003 = vpow2.f32 %v3884_v7  ;;  %v6005_v7 = vpack.c.bf16 %v2042_v40, %v2038_v31  ;;  %v2076_v31 = vld [vmem:[#allocation12 + $0x170] sm:$0xff]  ;;  %v2079_v40 = vld [vmem:[#allocation12 + $0x188] sm:$0xff] }
 0x3bc   :  { %5005 = vpow2.f32 %v3885_v16  ;;  %v2040_v16 = vld [vmem:[#allocation12 + $0x50] sm:$0xff] }
 0x3bd   :  { %5007 = vpow2.f32 %v3886_v61  ;;  %v6008_v43 = vpack.c.bf16 %v2044_v25, %v2040_v16  ;;  %v2051_v61 = vld [vmem:[#allocation12 + $0xa8] sm:$0xff]  ;;  %v6056_v16 = vpack.c.bf16 %v2076_v31, %v2072_v26 }
 0x3be   :  { %5009 = vtanh.f32 %v1470_v11  ;;  %v2049_v11 = vld [vmem:[#allocation12 + $0x98] sm:$0xff]  ;;  %v2083_v25 = vld [vmem:[#allocation12 + $0x1a8] sm:$0xff] }
 0x3c5   :  { %v5004_v29 = vpop.eup %5003 }
 0x3c6   :  { %v5006_v42 = vpop.eup %5005  ;;  %v1475_v48 = vadd.f32 1.0, %v5004_v29  ;;  %v6013_v29 = vpack.c.bf16 %v2051_v61, %v2047_v60  ;;  %v2081_v60 = vld [vmem:[#allocation12 + $0x198] sm:$0xff] }
 0x3c7   :  { %v1481_v23 = vadd.f32 1.0, %v5006_v42  ;;  %v5008_v5 = vpop.eup %5007  ;;  %v2053_v42 = vld [vmem:[#allocation12 + $0xb8] sm:$0xff] }
 0x3c8   :  { %5011 = vrcp.f32 %v1475_v48  ;;  %v5010_v3 = vpop.eup %5009  ;;  %v1488_v63 = vadd.f32 1.0, %v5008_v5  ;;  %v2046_v48 = vld [vmem:[#allocation12 + $0x80] sm:$0xff]  ;;  %v6015_v5 = vpack.c.bf16 %v2053_v42, %v2049_v11  ;;  %v2085_v61 = vld [vmem:[#allocation12 + $0x1b8] sm:$0xff]  ;;  %v6060_v11 = vpack.c.bf16 %v2083_v25, %v2079_v40 }
 0x3c9   :  { %5013 = vrcp.f32 %v1481_v23  ;;  %v2050_v23 = vld [vmem:[#allocation12 + $0xa0] sm:$0xff]  ;;  %v6062_v42 = vpack.c.bf16 %v2085_v61, %v2081_v60 }
 0x3ca   :  { %5015 = vrcp.f32 %v1488_v63  ;;  %v2055_v63 = vld [vmem:[#allocation12 + $0xc8] sm:$0xff] }
 0x3d2   :  { %v5012_v4 = vpop.eup %5011 }
 0x3d3   :  { %v5014_v35 = vpop.eup %5013  ;;  %v1492_v52 = vmul.f32 %v5012_v4, %v5010_v3  ;;  %v6017_v3 = vpack.c.bf16 %v2050_v23, %v2046_v48  ;;  %v2048_v4 = vld [vmem:[#allocation12 + $0x90] sm:$0xff]  ;;  %v2078_v48 = vld [vmem:[#allocation12 + $0x180] sm:$0xff] }
 0x3d4   :  { %v1491_v20 = vmul.f32 %v5014_v35, %v5813_v39  ;;  %v5016_v54 = vpop.eup %5015  ;;  %v6729_v39 = vld [vmem:[#allocation25_spill] sm:$0xff]  ;;  %v2052_v35 = vld [vmem:[#allocation12 + $0xb0] sm:$0xff]  ;;  %v2082_v23 = vld [vmem:[#allocation12 + $0x1a0] sm:$0xff] }
 0x3d6   :  { %v5952_v50 = vadd.f32 %v1492_v52, %v1491_v20  ;;  %v6020_v52 = vpack.c.bf16 %v2052_v35, %v2048_v4  ;;  %v2059_v20 = vld [vmem:[#allocation12 + $0xe8] sm:$0xff]  ;;  %v2080_v4 = vld [vmem:[#allocation12 + $0x190] sm:$0xff]  ;;  %v6065_v35 = vpack.c.bf16 %v2082_v23, %v2078_v48 }
 0x3d8   :  { %5017 = vtanh.f32 %v5952_v50 }
 0x3e2   :  { %v5018_v12 = vpop.eup %5017 }
 0x3e3   :  { %v1495_v38 = vmul.f32 %v5018_v12, %v5016_v54  ;;  %v2057_v54 = vld [vmem:[#allocation12 + $0xd8] sm:$0xff]  ;;  %v6025_v12 = vpack.c.bf16 %v2059_v20, %v2055_v63  ;;  %v2084_v63 = vld [vmem:[#allocation12 + $0x1b0] sm:$0xff]  ;;  %v2087_v20 = vld [vmem:[#allocation12 + $0x1c8] sm:$0xff] }
 0x3e5   :  { %1497 = vst [vmem:[#allocation13 + $0x10] sm:$0xff] %v1495_v38  ;;  %1693 = vmatmul.mubr.f32.vlgmr.msra.gmra.mrb[6].mxu0 %v1495_v38  ;;  %1764 = vmatmul.mubr.f32.vlgmr.msra.gmra.mrb[6].mxu1 %v1495_v38  ;;  %v2061_v38 = vld [vmem:[#allocation12 + $0xf8] sm:$0xff] }
 0x3e6   :  { %4353 = vmatpush1.bf16.msra.mxu0 %v5816_v55  ;;  %4385 = vmatpush1.bf16.msra.mxu1 %v5818_v6  ;;  %v6733_v55 = vld [vmem:[#allocation29_spill] sm:$0xff]  ;;  %v6734_v6 = vld [vmem:[#allocation30_spill] sm:$0xff] }
 0x3e7   :  { %4355 = vmatprep.subr.bf16.mxu0 %v6726_v15  ;;  %4387 = vmatprep.subr.bf16.mxu1 %v6727_v56  ;;  %v2054_v15 = vld [vmem:[#allocation12 + $0xc0] sm:$0xff] }
 0x3e8   :  { %1834 = vmatprep.mubr.f32.mxu0 %v6699_v46  ;;  %1905 = vmatprep.mubr.f32.mxu1 %v6699_v46  ;;  %v2058_v56 = vld [vmem:[#allocation12 + $0xe0] sm:$0xff] }
 0x3ea   :  { %4357 = vmatpush1.bf16.msra.mxu0 %v6728_v47  ;;  %4389 = vmatpush1.bf16.msra.mxu1 %v6729_v39  ;;  %v6027_v47 = vpack.c.bf16 %v2061_v38, %v2057_v54  ;;  %v6029_v39 = vpack.c.bf16 %v2058_v56, %v2054_v15  ;;  %v2091_v54 = vld [vmem:[#allocation12 + $0x1e8] sm:$0xff]  ;;  %v6069_v38 = vpack.c.bf16 %v2084_v63, %v2080_v4  ;;  %v2089_v56 = vld [vmem:[#allocation12 + $0x1d8] sm:$0xff] }
 0x3eb   :  { %4359 = vmatprep.subr.bf16.mxu0 %v6730_v36  ;;  %4391 = vmatprep.subr.bf16.mxu1 %v6731_v41  ;;  %v2056_v36 = vld [vmem:[#allocation12 + $0xd0] sm:$0xff]  ;;  %v6071_v15 = vpack.c.bf16 %v2091_v54, %v2087_v20 }
 0x3ec   :  { %v2060_v41 = vld [vmem:[#allocation12 + $0xf0] sm:$0xff] }
 0x3ee   :  { %4361 = vmatpush1.bf16.msra.mxu0 %v6732_v62  ;;  %4393 = vmatpush1.bf16.msra.mxu1 %v6733_v55  ;;  %v6032_v62 = vpack.c.bf16 %v2060_v41, %v2056_v36  ;;  %v2063_v55 = vld [vmem:[#allocation12 + $0x108] sm:$0xff]  ;;  %v2093_v36 = vld [vmem:[#allocation12 + $0x1f8] sm:$0xff]  ;;  %v2086_v41 = vld [vmem:[#allocation12 + $0x1c0] sm:$0xff] }
 0x3ef   :  { %4363 = vmatprep.subr.bf16.mxu0 %v6734_v6  ;;  %4395 = vmatprep.subr.bf16.mxu1 %v6735_v32  ;;  %v2067_v6 = vld [vmem:[#allocation12 + $0x128] sm:$0xff]  ;;  %v2065_v32 = vld [vmem:[#allocation12 + $0x118] sm:$0xff] }
 0x3f2   :  { %4365 = vmatpush1.bf16.msra.mxu0 %v6736_v28  ;;  %4397 = vmatpush1.bf16.msra.mxu1 %v6737_v18  ;;  %v6037_v28 = vpack.c.bf16 %v2067_v6, %v2063_v55  ;;  %v2069_v18 = vld [vmem:[#allocation12 + $0x138] sm:$0xff]  ;;  %v6073_v55 = vpack.c.bf16 %v2093_v36, %v2089_v56  ;;  %v2090_v6 = vld [vmem:[#allocation12 + $0x1e0] sm:$0xff] }
 0x3f3   :  { %4367 = vmatprep.subr.bf16.mxu0 %v6738_v22  ;;  %4399 = vmatprep.subr.bf16.mxu1 %v6739_v44  ;;  %v2062_v22 = vld [vmem:[#allocation12 + $0x100] sm:$0xff] }
 0x3f4   :  { %v2066_v44 = vld [vmem:[#allocation12 + $0x120] sm:$0xff] }
 0x3f6   :  { %4369 = vmatpush1.bf16.msra.mxu0 %v6740_v49  ;;  %4401 = vmatpush1.bf16.msra.mxu1 %v6741_v34  ;;  %v6039_v49 = vpack.c.bf16 %v2069_v18, %v2065_v32  ;;  %v6041_v34 = vpack.c.bf16 %v2066_v44, %v2062_v22  ;;  %v2088_v32 = vld [vmem:[#allocation12 + $0x1d0] sm:$0xff]  ;;  %v6076_v22 = vpack.c.bf16 %v2090_v6, %v2086_v41  ;;  %v1967_v44 = vld [vmem:[#allocation10 + $0x8] sm:$0xff] }
 0x3f7   :  { %4371 = vmatprep.subr.bf16.mxu0 %v5870_v24  ;;  %4403 = vmatprep.subr.bf16.mxu1 %v5872_v33  ;;  %v1499_v24 = vld [vmem:[#allocation4 + $0x18] sm:$0xff]  ;;  %v2092_v18 = vld [vmem:[#allocation12 + $0x1f0] sm:$0xff] }
 0x3f8   :  { %v2031_v33 = vld [vmem:[#allocation12 + $0x8] sm:$0xff] }
 0x3fa   :  { %4373 = vmatpush1.bf16.msra.mxu0 %v5876_v2  ;;  %4405 = vmatpush1.bf16.msra.mxu1 %v5878_v19  ;;  %v2035_v2 = vld [vmem:[#allocation12 + $0x28] sm:$0xff]  ;;  %v2033_v19 = vld [vmem:[#allocation12 + $0x18] sm:$0xff] }
 0x3fb   :  { %4375 = vmatprep.subr.bf16.mxu0 %v5882_v51  ;;  %4407 = vmatprep.subr.bf16.mxu1 %v5884_v1  ;;  %v5989_v51 = vpack.c.bf16 %v2035_v2, %v2031_v33  ;;  %v2037_v1 = vld [vmem:[#allocation12 + $0x38] sm:$0xff]  ;;  %v2068_v33 = vld [vmem:[#allocation12 + $0x130] sm:$0xff] }
 0x3fe   :  { %4377 = vmatpush1.bf16.msra.mxu0 %v5888_v58  ;;  %4409 = vmatpush1.bf16.msra.mxu1 %v5890_v13  ;;  %v2030_v58 = vld [vmem:[#allocation12] sm:$0xff] }
 0x3ff   :  { %4379 = vmatprep.subr.bf16.mxu0 %v5894_v45  ;;  %4411 = vmatprep.subr.bf16.mxu1 %v5896_v10  ;;  %v2034_v13 = vld [vmem:[#allocation12 + $0x20] sm:$0xff]  ;;  %v5991_v45 = vpack.c.bf16 %v2037_v1, %v2033_v19  ;;  %v2071_v19 = vld [vmem:[#allocation12 + $0x148] sm:$0xff] }
 0x400   :  { %v5993_v10 = vpack.c.bf16 %v2034_v13, %v2030_v58  ;;  %v2075_v1 = vld [vmem:[#allocation12 + $0x168] sm:$0xff]  ;;  %v2073_v58 = vld [vmem:[#allocation12 + $0x158] sm:$0xff] }
 0x401   :  { %v6049_v13 = vpack.c.bf16 %v2075_v1, %v2071_v19  ;;  %v6080_v19 = vpack.c.bf16 %v2092_v18, %v2088_v32 }
 0x402   :  { %4381 = vmatpush1.bf16.msra.mxu0 %v5900_v37  ;;  %4413 = vmatpush1.bf16.msra.mxu1 %v5902_v14  ;;  %v2032_v37 = vld [vmem:[#allocation12 + $0x10] sm:$0xff] }
 0x403   :  { %v2036_v14 = vld [vmem:[#allocation12 + $0x30] sm:$0xff]  ;;  %4415 = vmatprep.subr.bf16.mxu0 %v5989_v51  ;;  %4447 = vmatprep.subr.bf16.mxu1 %v5991_v45 }
 0x404   :  { %v5996_v0 = vpack.c.bf16 %v2036_v14, %v2032_v37  ;;  %v2077_v37 = vld [vmem:[#allocation12 + $0x178] sm:$0xff]  ;;  %v2070_v14 = vld [vmem:[#allocation12 + $0x140] sm:$0xff] }
 0x405   :  { %1835 = vmatmul.mubr.f32.vlgmr.msra.gmra.mrb[6].mxu0 %v1499_v24  ;;  %1906 = vmatmul.mubr.f32.vlgmr.msra.gmra.mrb[6].mxu1 %v1499_v24  ;;  %v2064_v24 = vld [vmem:[#allocation12 + $0x110] sm:$0xff]  ;;  %v6051_v30 = vpack.c.bf16 %v2077_v37, %v2073_v58  ;;  %v6053_v59 = vpack.c.bf16 %v2074_v21, %v2070_v14  ;;  %v1973_v58 = vld [vmem:[#allocation10 + $0x38] sm:$0xff] }
 0x406   :  { %2158 = vmatprep.mubr.f32.mxu0 %v6699_v46  ;;  %2229 = vmatprep.mubr.f32.mxu1 %v6699_v46  ;;  %v6044_v2 = vpack.c.bf16 %v2068_v33, %v2064_v24  ;;  %v1971_v24 = vld [vmem:[#allocation10 + $0x28] sm:$0xff]  ;;  %v1969_v33 = vld [vmem:[#allocation10 + $0x18] sm:$0xff]  ;;  %v1912_v14 = vld [vmem:[%s6625_s5] sm:$0xf] }
 0x407   :  { %4417 = vmatpush1.bf16.msra.mxu0 %v5993_v10  ;;  %4449 = vmatpush1.bf16.msra.mxu1 %v5996_v0  ;;  %v6082_v1 = vpack.c.bf16 %v1971_v24, %v1967_v44  ;;  %v6085_v37 = vpack.c.bf16 %v1973_v58, %v1969_v33  ;;  %v1917_v21 = vrot.slane %v1912_v14, %v5651_v9 }
 0x408   :  { %4419 = vmatprep.subr.bf16.mxu0 %v6001_v8  ;;  %4451 = vmatprep.subr.bf16.mxu1 %v6003_v53  ;;  %v1921_v26 = vrot.slane %v1912_v14, %v5656_v17  ;;  %v1929_v63 = vrot.slane %v1912_v14, %v5660_v27  ;;  %v1925_v54 = vrot.slane %v1912_v14, %v5663_v57  ;;  %v1966_v14 = vld [vmem:[#allocation10] sm:$0xff] }
 0x40b   :  { %4421 = vmatpush1.bf16.msra.mxu0 %v6005_v7  ;;  %4453 = vmatpush1.bf16.msra.mxu1 %v6008_v43 }
 0x40c   :  { %4423 = vmatprep.subr.bf16.mxu0 %v6013_v29  ;;  %4455 = vmatprep.subr.bf16.mxu1 %v6015_v5 }
 0x40f   :  { %4425 = vmatpush1.bf16.msra.mxu0 %v6017_v3  ;;  %4457 = vmatpush1.bf16.msra.mxu1 %v6020_v52 }
 0x410   :  { %4427 = vmatprep.subr.bf16.mxu0 %v6025_v12  ;;  %4459 = vmatprep.subr.bf16.mxu1 %v6027_v47 }
 0x413   :  { %4429 = vmatpush1.bf16.msra.mxu0 %v6029_v39  ;;  %4461 = vmatpush1.bf16.msra.mxu1 %v6032_v62 }
 0x414   :  { %4431 = vmatprep.subr.bf16.mxu0 %v6037_v28  ;;  %4463 = vmatprep.subr.bf16.mxu1 %v6039_v49 }
 0x417   :  { %4433 = vmatpush1.bf16.msra.mxu0 %v6041_v34  ;;  %4465 = vmatpush1.bf16.msra.mxu1 %v6044_v2 }
 0x418   :  { %4435 = vmatprep.subr.bf16.mxu0 %v6049_v13  ;;  %4467 = vmatprep.subr.bf16.mxu1 %v6051_v30 }
 0x41b   :  { %4437 = vmatpush1.bf16.msra.mxu0 %v6053_v59  ;;  %4469 = vmatpush1.bf16.msra.mxu1 %v6056_v16 }
 0x41c   :  { %4439 = vmatprep.subr.bf16.mxu0 %v6060_v11  ;;  %4471 = vmatprep.subr.bf16.mxu1 %v6062_v42 }
 0x41f   :  { %4441 = vmatpush1.bf16.msra.mxu0 %v6065_v35  ;;  %4473 = vmatpush1.bf16.msra.mxu1 %v6069_v38 }
 0x420   :  { %4443 = vmatprep.subr.bf16.mxu0 %v6071_v15  ;;  %4475 = vmatprep.subr.bf16.mxu1 %v6073_v55 }
 0x423   :  { %4445 = vmatpush1.bf16.msra.mxu0 %v6076_v22  ;;  %4477 = vmatpush1.bf16.msra.mxu1 %v6080_v19 }
 0x424   :  { %4479 = vmatprep.subr.bf16.mxu0 %v6082_v1  ;;  %4511 = vmatprep.subr.bf16.mxu1 %v6085_v37 }
 0x4d8   :  { %v1836_v31 = vpop.f32.mrb[6].mxu0  ;;  %v1907_v40 = vpop.f32.mrb[6].mxu1 }
 0x4d9   :  { %v1934_v25 = vadd.f32 %v1917_v21, %v1836_v31  ;;  %v1838_v60 = vpop.f32.mrb[7].mxu0  ;;  %v1909_v61 = vpop.f32.mrb[7].mxu1  ;;  %v1936_v36 = vadd.f32 %v1925_v54, %v1907_v40  ;;  %v1970_v40 = vld [vmem:[#allocation10 + $0x20] sm:$0xff] }
 0x4da   :  { %v1935_v48 = vadd.f32 %v1921_v26, %v1838_v60  ;;  %v1937_v20 = vadd.f32 %v1929_v63, %v1909_v61  ;;  %v1968_v60 = vld [vmem:[#allocation10 + $0x10] sm:$0xff]  ;;  %v1981_v63 = vld [vmem:[#allocation10 + $0x78] sm:$0xff] }
 0x4db   :  { %v3887_v23 = vmul.f32 -1.442695, %v1934_v25  ;;  %v1972_v61 = vld [vmem:[#allocation10 + $0x30] sm:$0xff] }
 0x4dc   :  { %v3888_v4 = vmul.f32 -1.442695, %v1935_v48  ;;  %v3889_v56 = vmul.f32 -1.442695, %v1937_v20  ;;  %v1975_v48 = vld [vmem:[#allocation10 + $0x48] sm:$0xff] }
 0x4dd   :  { %5019 = vpow2.f32 %v3887_v23  ;;  %v1979_v23 = vld [vmem:[#allocation10 + $0x68] sm:$0xff] }
 0x4de   :  { %5021 = vpow2.f32 %v3888_v4  ;;  %v1977_v4 = vld [vmem:[#allocation10 + $0x58] sm:$0xff] }
 0x4df   :  { %5023 = vpow2.f32 %v3889_v56  ;;  %v6102_v56 = vpack.c.bf16 %v1970_v40, %v1966_v14  ;;  %v1982_v40 = vld [vmem:[#allocation10 + $0x80] sm:$0xff] }
 0x4e0   :  { %5025 = vtanh.f32 %v1936_v36  ;;  %v6104_v36 = vpack.c.bf16 %v1972_v61, %v1968_v60  ;;  %v1986_v60 = vld [vmem:[#allocation10 + $0xa0] sm:$0xff] }
 0x4e7   :  { %v5020_v41 = vpop.eup %5019 }
 0x4e8   :  { %v5022_v6 = vpop.eup %5021  ;;  %v1941_v32 = vadd.f32 1.0, %v5020_v41  ;;  %v1978_v41 = vld [vmem:[#allocation10 + $0x60] sm:$0xff] }
 0x4e9   :  { %v1947_v18 = vadd.f32 1.0, %v5022_v6  ;;  %v5024_v44 = vpop.eup %5023 }
 0x4ea   :  { %5027 = vrcp.f32 %v1941_v32  ;;  %v5026_v24 = vpop.eup %5025  ;;  %v1954_v26 = vadd.f32 1.0, %v5024_v44  ;;  %v6106_v32 = vpack.c.bf16 %v1979_v23, %v1975_v48  ;;  %v1976_v44 = vld [vmem:[#allocation10 + $0x50] sm:$0xff] }
 0x4eb   :  { %5029 = vrcp.f32 %v1947_v18  ;;  %v6108_v18 = vpack.c.bf16 %v1981_v63, %v1977_v4  ;;  %v1984_v23 = vld [vmem:[#allocation10 + $0x90] sm:$0xff]  ;;  %v1991_v63 = vld [vmem:[#allocation10 + $0xc8] sm:$0xff] }
 0x4ec   :  { %5031 = vrcp.f32 %v1954_v26  ;;  %6742 = vst [vmem:[#allocation22_spill] sm:$0xff] %v6106_v32  ;;  %v1989_v26 = vld [vmem:[#allocation10 + $0xb8] sm:$0xff]  ;;  %v1988_v4 = vld [vmem:[#allocation10 + $0xb0] sm:$0xff] }
 0x4ed   :  { %6743 = vst [vmem:[#allocation23_spill] sm:$0xff] %v6108_v18 }
 0x4f4   :  { %v5028_v33 = vpop.eup %5027 }
 0x4f5   :  { %v5030_v58 = vpop.eup %5029  ;;  %v1958_v21 = vmul.f32 %v5028_v33, %v5026_v24  ;;  %v1980_v24 = vld [vmem:[#allocation10 + $0x70] sm:$0xff]  ;;  %v1983_v33 = vld [vmem:[#allocation10 + $0x88] sm:$0xff] }
 0x4f6   :  { %v1957_v31 = vmul.f32 %v5030_v58, %v5952_v50  ;;  %v5032_v20 = vpop.eup %5031  ;;  %v1974_v50 = vld [vmem:[#allocation10 + $0x40] sm:$0xff]  ;;  %v1987_v58 = vld [vmem:[#allocation10 + $0xa8] sm:$0xff]  ;;  %v6114_v14 = vpack.c.bf16 %v1980_v24, %v1976_v44 }
 0x4f7   :  { %v6118_v61 = vpack.c.bf16 %v1987_v58, %v1983_v33  ;;  %v1990_v44 = vld [vmem:[#allocation10 + $0xc0] sm:$0xff] }
 0x4f8   :  { %v6099_v25 = vadd.f32 %v1958_v21, %v1957_v31  ;;  %v1985_v21 = vld [vmem:[#allocation10 + $0x98] sm:$0xff]  ;;  %v6112_v31 = vpack.c.bf16 %v1978_v41, %v1974_v50  ;;  %6745 = vst [vmem:[#allocation25_spill] sm:$0xff] %v6114_v14  ;;  %v6126_v50 = vpack.c.bf16 %v1986_v60, %v1982_v40  ;;  %v6128_v41 = vpack.c.bf16 %v1988_v4, %v1984_v23  ;;  %v1994_v24 = vld [vmem:[#allocation10 + $0xe0] sm:$0xff] }
 0x4f9   :  { %6746 = vst [vmem:[#allocation26_spill] sm:$0xff] %v6118_v61  ;;  %v6120_v48 = vpack.c.bf16 %v1989_v26, %v1985_v21  ;;  %v1992_v21 = vld [vmem:[#allocation10 + $0xd0] sm:$0xff]  ;;  %v6138_v40 = vpack.c.bf16 %v1994_v24, %v1990_v44  ;;  %v1998_v23 = vld [vmem:[#allocation10 + $0x100] sm:$0xff] }
 0x4fa   :  { %5033 = vtanh.f32 %v6099_v25  ;;  %6744 = vst [vmem:[#allocation24_spill] sm:$0xff] %v6112_v31  ;;  %6748 = vst [vmem:[#allocation28_spill] sm:$0xff] %v6126_v50  ;;  %v1996_v26 = vld [vmem:[#allocation10 + $0xf0] sm:$0xff]  ;;  %v2002_v4 = vld [vmem:[#allocation10 + $0x120] sm:$0xff] }
 0x4fb   :  { %6747 = vst [vmem:[#allocation27_spill] sm:$0xff] %v6120_v48  ;;  %6749 = vst [vmem:[#allocation29_spill] sm:$0xff] %v6128_v41  ;;  %v6140_v60 = vpack.c.bf16 %v1996_v26, %v1992_v21  ;;  %v6150_v44 = vpack.c.bf16 %v2002_v4, %v1998_v23  ;;  %v2006_v21 = vld [vmem:[#allocation10 + $0x140] sm:$0xff] }
 0x4fc   :  { %6752 = vst [vmem:[#allocation32_spill] sm:$0xff] %v6138_v40  ;;  %v2010_v26 = vld [vmem:[#allocation10 + $0x160] sm:$0xff] }
 0x4fd   :  { %6753 = vst [vmem:[#allocation33_spill] sm:$0xff] %v6140_v60  ;;  %6756 = vst [vmem:[#allocation36_spill] sm:$0xff] %v6150_v44  ;;  %v6162_v23 = vpack.c.bf16 %v2010_v26, %v2006_v21 }
 0x504   :  { %v5034_v54 = vpop.eup %5033 }
 0x505   :  { %v1961_v6 = vmul.f32 %v5034_v54, %v5032_v20  ;;  %v1995_v20 = vld [vmem:[#allocation10 + $0xe8] sm:$0xff]  ;;  %v1993_v54 = vld [vmem:[#allocation10 + $0xd8] sm:$0xff] }
 0x506   :  { %v6132_v33 = vpack.c.bf16 %v1995_v20, %v1991_v63 }
 0x507   :  { %1963 = vst [vmem:[#allocation13 + $0x18] sm:$0xff] %v1961_v6  ;;  %2159 = vmatmul.mubr.f32.vlgmr.msra.gmra.mrb[8].mxu0 %v1961_v6  ;;  %2230 = vmatmul.mubr.f32.vlgmr.msra.gmra.mrb[8].mxu1 %v1961_v6  ;;  %v1997_v6 = vld [vmem:[#allocation10 + $0xf8] sm:$0xff] }
 0x508   :  { %4481 = vmatpush1.bf16.msra.mxu0 %v6102_v56  ;;  %4513 = vmatpush1.bf16.msra.mxu1 %v6104_v36  ;;  %6750 = vst [vmem:[#allocation30_spill] sm:$0xff] %v6132_v33  ;;  %v6134_v58 = vpack.c.bf16 %v1997_v6, %v1993_v54  ;;  %v2000_v54 = vld [vmem:[#allocation10 + $0x110] sm:$0xff] }
 0x509   :  { %4483 = vmatprep.subr.bf16.mxu0 %v6106_v32  ;;  %4515 = vmatprep.subr.bf16.mxu1 %v6108_v18  ;;  %v1999_v18 = vld [vmem:[#allocation10 + $0x108] sm:$0xff]  ;;  %v2001_v32 = vld [vmem:[#allocation10 + $0x118] sm:$0xff]  ;;  %v2004_v6 = vld [vmem:[#allocation10 + $0x130] sm:$0xff] }
 0x50a   :  { %2300 = vmatprep.mubr.f32.mxu0 %v6699_v46  ;;  %2371 = vmatprep.mubr.f32.mxu1 %v6699_v46  ;;  %6751 = vst [vmem:[#allocation31_spill] sm:$0xff] %v6134_v58  ;;  %v6152_v24 = vpack.c.bf16 %v2004_v6, %v2000_v54  ;;  %v2014_v54 = vld [vmem:[#allocation10 + $0x180] sm:$0xff] }
 0x50b   :  { %v2018_v6 = vld [vmem:[#allocation10 + $0x1a0] sm:$0xff] }
 0x50c   :  { %4485 = vmatpush1.bf16.msra.mxu0 %v6112_v31  ;;  %4517 = vmatpush1.bf16.msra.mxu1 %v6114_v14  ;;  %v2003_v31 = vld [vmem:[#allocation10 + $0x128] sm:$0xff]  ;;  %v2005_v14 = vld [vmem:[#allocation10 + $0x138] sm:$0xff]  ;;  %6757 = vst [vmem:[#allocation37_spill] sm:$0xff] %v6152_v24  ;;  %v6174_v21 = vpack.c.bf16 %v2018_v6, %v2014_v54 }
 0x50d   :  { %4487 = vmatprep.subr.bf16.mxu0 %v6118_v61  ;;  %4519 = vmatprep.subr.bf16.mxu1 %v6120_v48  ;;  %v6144_v63 = vpack.c.bf16 %v2003_v31, %v1999_v18  ;;  %v6146_v20 = vpack.c.bf16 %v2005_v14, %v2001_v32  ;;  %v2007_v48 = vld [vmem:[#allocation10 + $0x148] sm:$0xff]  ;;  %v2009_v61 = vld [vmem:[#allocation10 + $0x158] sm:$0xff]  ;;  %v2008_v31 = vld [vmem:[#allocation10 + $0x150] sm:$0xff] }
 0x50e   :  { %v2012_v14 = vld [vmem:[#allocation10 + $0x170] sm:$0xff] }
 0x50f   :  { %6754 = vst [vmem:[#allocation34_spill] sm:$0xff] %v6144_v63  ;;  %6755 = vst [vmem:[#allocation35_spill] sm:$0xff] %v6146_v20  ;;  %v6164_v4 = vpack.c.bf16 %v2012_v14, %v2008_v31  ;;  %v2022_v31 = vld [vmem:[#allocation10 + $0x1c0] sm:$0xff]  ;;  %v2028_v14 = vld [vmem:[#allocation10 + $0x1f0] sm:$0xff] }
 0x510   :  { %4489 = vmatpush1.bf16.msra.mxu0 %v6126_v50  ;;  %4521 = vmatpush1.bf16.msra.mxu1 %v6128_v41  ;;  %v2011_v50 = vld [vmem:[#allocation10 + $0x168] sm:$0xff]  ;;  %v2013_v41 = vld [vmem:[#allocation10 + $0x178] sm:$0xff] }
 0x511   :  { %4491 = vmatprep.subr.bf16.mxu0 %v6132_v33  ;;  %4523 = vmatprep.subr.bf16.mxu1 %v6134_v58  ;;  %v6156_v32 = vpack.c.bf16 %v2011_v50, %v2007_v48  ;;  %v6158_v18 = vpack.c.bf16 %v2013_v41, %v2009_v61  ;;  %v2015_v58 = vld [vmem:[#allocation10 + $0x188] sm:$0xff]  ;;  %v2017_v33 = vld [vmem:[#allocation10 + $0x198] sm:$0xff]  ;;  %v2016_v50 = vld [vmem:[#allocation10 + $0x190] sm:$0xff] }
 0x512   :  { %v2020_v41 = vld [vmem:[#allocation10 + $0x1b0] sm:$0xff] }
 0x513   :  { %v6176_v26 = vpack.c.bf16 %v2020_v41, %v2016_v50  ;;  %v6767_v50 = vld [vmem:[#allocation31_spill] sm:$0xff]  ;;  %v6768_v41 = vld [vmem:[#allocation32_spill] sm:$0xff] }
 0x514   :  { %4493 = vmatpush1.bf16.msra.mxu0 %v6138_v40  ;;  %4525 = vmatpush1.bf16.msra.mxu1 %v6140_v60  ;;  %v2019_v40 = vld [vmem:[#allocation10 + $0x1a8] sm:$0xff]  ;;  %v2021_v60 = vld [vmem:[#allocation10 + $0x1b8] sm:$0xff] }
 0x515   :  { %4495 = vmatprep.subr.bf16.mxu0 %v6144_v63  ;;  %4527 = vmatprep.subr.bf16.mxu1 %v6146_v20  ;;  %v6168_v61 = vpack.c.bf16 %v2019_v40, %v2015_v58  ;;  %v6170_v48 = vpack.c.bf16 %v2021_v60, %v2017_v33  ;;  %v2023_v20 = vld [vmem:[#allocation10 + $0x1c8] sm:$0xff]  ;;  %v2025_v63 = vld [vmem:[#allocation10 + $0x1d8] sm:$0xff]  ;;  %v2026_v40 = vld [vmem:[#allocation10 + $0x1e0] sm:$0xff] }
 0x516   :  { %v2024_v60 = vld [vmem:[#allocation10 + $0x1d0] sm:$0xff]  ;;  %v6186_v54 = vpack.c.bf16 %v2026_v40, %v2022_v31  ;;  %v6769_v31 = vld [vmem:[#allocation33_spill] sm:$0xff] }
 0x517   :  { %v6188_v6 = vpack.c.bf16 %v2028_v14, %v2024_v60  ;;  %v6770_v40 = vld [vmem:[#allocation34_spill] sm:$0xff]  ;;  %v6771_v60 = vld [vmem:[#allocation35_spill] sm:$0xff]  ;;  %v6772_v14 = vld [vmem:[#allocation36_spill] sm:$0xff] }
 0x518   :  { %4497 = vmatpush1.bf16.msra.mxu0 %v6150_v44  ;;  %4529 = vmatpush1.bf16.msra.mxu1 %v6152_v24  ;;  %v2027_v44 = vld [vmem:[#allocation10 + $0x1e8] sm:$0xff]  ;;  %v2029_v24 = vld [vmem:[#allocation10 + $0x1f8] sm:$0xff] }
 0x519   :  { %4499 = vmatprep.subr.bf16.mxu0 %v6156_v32  ;;  %4531 = vmatprep.subr.bf16.mxu1 %v6158_v18  ;;  %v6180_v33 = vpack.c.bf16 %v2027_v44, %v2023_v20  ;;  %v6182_v58 = vpack.c.bf16 %v2029_v24, %v2025_v63  ;;  %v1965_v63 = vld [vmem:[#allocation4 + $0x20] sm:$0xff]  ;;  %v6763_v44 = vld [vmem:[#allocation27_spill] sm:$0xff]  ;;  %v6764_v24 = vld [vmem:[#allocation28_spill] sm:$0xff] }
 0x51a   :  { %v6762_v20 = vld [vmem:[#allocation26_spill] sm:$0xff] }
 0x51c   :  { %4501 = vmatpush1.bf16.msra.mxu0 %v6162_v23  ;;  %4533 = vmatpush1.bf16.msra.mxu1 %v6164_v4 }
 0x51d   :  { %4503 = vmatprep.subr.bf16.mxu0 %v6168_v61  ;;  %4535 = vmatprep.subr.bf16.mxu1 %v6170_v48 }
 0x520   :  { %4505 = vmatpush1.bf16.msra.mxu0 %v6174_v21  ;;  %4537 = vmatpush1.bf16.msra.mxu1 %v6176_v26 }
 0x521   :  { %4507 = vmatprep.subr.bf16.mxu0 %v6180_v33  ;;  %4539 = vmatprep.subr.bf16.mxu1 %v6182_v58 }
 0x524   :  { %4509 = vmatpush1.bf16.msra.mxu0 %v6186_v54  ;;  %4541 = vmatpush1.bf16.msra.mxu1 %v6188_v6 }
 0x525   :  { %4543 = vmatprep.subr.bf16.mxu0 %v5989_v51  ;;  %4575 = vmatprep.subr.bf16.mxu1 %v5991_v45  ;;  %v2378_v51 = vld [vmem:[%s6625_s5] sm:$0xf] }
 0x526   :  { %v2383_v45 = vrot.slane %v2378_v51, %v5651_v9 }
 0x527   :  { %2301 = vmatmul.mubr.f32.vlgmr.msra.gmra.mrb[8].mxu0 %v1965_v63  ;;  %2372 = vmatmul.mubr.f32.vlgmr.msra.gmra.mrb[8].mxu1 %v1965_v63  ;;  %v6773_v63 = vld [vmem:[#allocation37_spill] sm:$0xff] }
 0x528   :  { %4545 = vmatpush1.bf16.msra.mxu0 %v5993_v10  ;;  %4577 = vmatpush1.bf16.msra.mxu1 %v5996_v0  ;;  %v2387_v10 = vrot.slane %v2378_v51, %v5656_v17 }
 0x529   :  { %4547 = vmatprep.subr.bf16.mxu0 %v6001_v8  ;;  %4579 = vmatprep.subr.bf16.mxu1 %v6003_v53 }
 0x52a   :  { %2624 = vmatprep.mubr.f32.mxu0 %v6699_v46  ;;  %2695 = vmatprep.mubr.f32.mxu1 %v6699_v46 }
 0x52c   :  { %4549 = vmatpush1.bf16.msra.mxu0 %v6005_v7  ;;  %4581 = vmatpush1.bf16.msra.mxu1 %v6008_v43 }
 0x52d   :  { %4551 = vmatprep.subr.bf16.mxu0 %v6013_v29  ;;  %4583 = vmatprep.subr.bf16.mxu1 %v6015_v5 }
 0x530   :  { %4553 = vmatpush1.bf16.msra.mxu0 %v6017_v3  ;;  %4585 = vmatpush1.bf16.msra.mxu1 %v6020_v52  ;;  %v2395_v52 = vrot.slane %v2378_v51, %v5660_v27 }
 0x531   :  { %4555 = vmatprep.subr.bf16.mxu0 %v6025_v12  ;;  %4587 = vmatprep.subr.bf16.mxu1 %v6027_v47  ;;  %v2391_v47 = vrot.slane %v2378_v51, %v5663_v57 }
 0x534   :  { %4557 = vmatpush1.bf16.msra.mxu0 %v6029_v39  ;;  %4589 = vmatpush1.bf16.msra.mxu1 %v6032_v62 }
 0x535   :  { %4559 = vmatprep.subr.bf16.mxu0 %v6037_v28  ;;  %4591 = vmatprep.subr.bf16.mxu1 %v6039_v49 }
 0x538   :  { %4561 = vmatpush1.bf16.msra.mxu0 %v6041_v34  ;;  %4593 = vmatpush1.bf16.msra.mxu1 %v6044_v2 }
 0x539   :  { %4563 = vmatprep.subr.bf16.mxu0 %v6049_v13  ;;  %4595 = vmatprep.subr.bf16.mxu1 %v6051_v30 }
 0x53c   :  { %4565 = vmatpush1.bf16.msra.mxu0 %v6053_v59  ;;  %4597 = vmatpush1.bf16.msra.mxu1 %v6056_v16 }
 0x53d   :  { %4567 = vmatprep.subr.bf16.mxu0 %v6060_v11  ;;  %4599 = vmatprep.subr.bf16.mxu1 %v6062_v42 }
 0x540   :  { %4569 = vmatpush1.bf16.msra.mxu0 %v6065_v35  ;;  %4601 = vmatpush1.bf16.msra.mxu1 %v6069_v38 }
 0x541   :  { %4571 = vmatprep.subr.bf16.mxu0 %v6071_v15  ;;  %4603 = vmatprep.subr.bf16.mxu1 %v6073_v55 }
 0x544   :  { %4573 = vmatpush1.bf16.msra.mxu0 %v6076_v22  ;;  %4605 = vmatpush1.bf16.msra.mxu1 %v6080_v19  ;;  %v6758_v19 = vld [vmem:[#allocation22_spill] sm:$0xff] }
 0x545   :  { %4607 = vmatprep.subr.bf16.mxu0 %v6082_v1  ;;  %4639 = vmatprep.subr.bf16.mxu1 %v6085_v37  ;;  %v6759_v1 = vld [vmem:[#allocation23_spill] sm:$0xff]  ;;  %v6760_v37 = vld [vmem:[#allocation24_spill] sm:$0xff] }
 0x5fa   :  { %v2302_v0 = vpop.f32.mrb[8].mxu0  ;;  %v2373_v8 = vpop.f32.mrb[8].mxu1 }
 0x5fb   :  { %v2400_v53 = vadd.f32 %v2383_v45, %v2302_v0  ;;  %v2304_v7 = vpop.f32.mrb[9].mxu0  ;;  %v2375_v43 = vpop.f32.mrb[9].mxu1  ;;  %v2402_v62 = vadd.f32 %v2391_v47, %v2373_v8  ;;  %v2971_v45 = vld [vmem:[#allocation12 + $0x48] sm:$0xff]  ;;  %v2973_v0 = vld [vmem:[#allocation12 + $0x58] sm:$0xff] }
 0x5fc   :  { %v2401_v29 = vadd.f32 %v2387_v10, %v2304_v7  ;;  %v2403_v12 = vadd.f32 %v2395_v52, %v2375_v43  ;;  %v2975_v10 = vld [vmem:[#allocation12 + $0x68] sm:$0xff]  ;;  %v2970_v7 = vld [vmem:[#allocation12 + $0x40] sm:$0xff]  ;;  %v2976_v52 = vld [vmem:[#allocation12 + $0x70] sm:$0xff] }
 0x5fd   :  { %v3890_v5 = vmul.f32 -1.442695, %v2400_v53  ;;  %v6287_v8 = vpack.c.bf16 %v2975_v10, %v2971_v45  ;;  %v2977_v53 = vld [vmem:[#allocation12 + $0x78] sm:$0xff]  ;;  %v2974_v43 = vld [vmem:[#allocation12 + $0x60] sm:$0xff]  ;;  %v2979_v47 = vld [vmem:[#allocation12 + $0x88] sm:$0xff] }
 0x5fe   :  { %v3891_v3 = vmul.f32 -1.442695, %v2401_v29  ;;  %v3892_v39 = vmul.f32 -1.442695, %v2403_v12  ;;  %v6289_v29 = vpack.c.bf16 %v2977_v53, %v2973_v0  ;;  %v3006_v45 = vld [vmem:[#allocation12 + $0x160] sm:$0xff]  ;;  %v3004_v53 = vld [vmem:[#allocation12 + $0x150] sm:$0xff] }
 0x5ff   :  { %5035 = vpow2.f32 %v3890_v5  ;;  %v6291_v5 = vpack.c.bf16 %v2974_v43, %v2970_v7  ;;  %v3008_v7 = vld [vmem:[#allocation12 + $0x170] sm:$0xff]  ;;  %v3011_v43 = vld [vmem:[#allocation12 + $0x188] sm:$0xff] }
 0x600   :  { %5037 = vpow2.f32 %v3891_v3  ;;  %v2972_v3 = vld [vmem:[#allocation12 + $0x50] sm:$0xff] }
 0x601   :  { %5039 = vpow2.f32 %v3892_v39  ;;  %v6294_v12 = vpack.c.bf16 %v2976_v52, %v2972_v3  ;;  %v2983_v39 = vld [vmem:[#allocation12 + $0xa8] sm:$0xff]  ;;  %v6342_v3 = vpack.c.bf16 %v3008_v7, %v3004_v53 }
 0x602   :  { %5041 = vtanh.f32 %v2402_v62  ;;  %v2981_v62 = vld [vmem:[#allocation12 + $0x98] sm:$0xff]  ;;  %v3015_v52 = vld [vmem:[#allocation12 + $0x1a8] sm:$0xff] }
 0x609   :  { %v5036_v28 = vpop.eup %5035 }
 0x60a   :  { %v5038_v49 = vpop.eup %5037  ;;  %v2407_v34 = vadd.f32 1.0, %v5036_v28  ;;  %v6299_v28 = vpack.c.bf16 %v2983_v39, %v2979_v47  ;;  %v3013_v47 = vld [vmem:[#allocation12 + $0x198] sm:$0xff] }
 0x60b   :  { %v2413_v2 = vadd.f32 1.0, %v5038_v49  ;;  %v5040_v13 = vpop.eup %5039  ;;  %v2985_v49 = vld [vmem:[#allocation12 + $0xb8] sm:$0xff] }
 0x60c   :  { %5043 = vrcp.f32 %v2407_v34  ;;  %v5042_v30 = vpop.eup %5041  ;;  %v2420_v42 = vadd.f32 1.0, %v5040_v13  ;;  %v2978_v34 = vld [vmem:[#allocation12 + $0x80] sm:$0xff]  ;;  %v6301_v13 = vpack.c.bf16 %v2985_v49, %v2981_v62  ;;  %v3017_v39 = vld [vmem:[#allocation12 + $0x1b8] sm:$0xff]  ;;  %v6346_v62 = vpack.c.bf16 %v3015_v52, %v3011_v43 }
 0x60d   :  { %5045 = vrcp.f32 %v2413_v2  ;;  %v2982_v2 = vld [vmem:[#allocation12 + $0xa0] sm:$0xff]  ;;  %v6348_v49 = vpack.c.bf16 %v3017_v39, %v3013_v47 }
 0x60e   :  { %5047 = vrcp.f32 %v2420_v42  ;;  %v2987_v42 = vld [vmem:[#allocation12 + $0xc8] sm:$0xff] }
 0x616   :  { %v5044_v59 = vpop.eup %5043 }
 0x617   :  { %v5046_v16 = vpop.eup %5045  ;;  %v2424_v11 = vmul.f32 %v5044_v59, %v5042_v30  ;;  %v6303_v30 = vpack.c.bf16 %v2982_v2, %v2978_v34  ;;  %v2980_v59 = vld [vmem:[#allocation12 + $0x90] sm:$0xff]  ;;  %v3010_v34 = vld [vmem:[#allocation12 + $0x180] sm:$0xff] }
 0x618   :  { %v2423_v35 = vmul.f32 %v5046_v16, %v6099_v25  ;;  %v5048_v15 = vpop.eup %5047  ;;  %v6761_v25 = vld [vmem:[#allocation25_spill] sm:$0xff]  ;;  %v2984_v16 = vld [vmem:[#allocation12 + $0xb0] sm:$0xff]  ;;  %v3014_v2 = vld [vmem:[#allocation12 + $0x1a0] sm:$0xff] }
 0x61a   :  { %v6238_v38 = vadd.f32 %v2424_v11, %v2423_v35  ;;  %v6306_v11 = vpack.c.bf16 %v2984_v16, %v2980_v59  ;;  %v2991_v35 = vld [vmem:[#allocation12 + $0xe8] sm:$0xff]  ;;  %v3012_v59 = vld [vmem:[#allocation12 + $0x190] sm:$0xff]  ;;  %v6351_v16 = vpack.c.bf16 %v3014_v2, %v3010_v34 }
 0x61c   :  { %5049 = vtanh.f32 %v6238_v38 }
 0x626   :  { %v5050_v55 = vpop.eup %5049 }
 0x627   :  { %v2427_v22 = vmul.f32 %v5050_v55, %v5048_v15  ;;  %v2989_v15 = vld [vmem:[#allocation12 + $0xd8] sm:$0xff]  ;;  %v6311_v55 = vpack.c.bf16 %v2991_v35, %v2987_v42  ;;  %v3016_v42 = vld [vmem:[#allocation12 + $0x1b0] sm:$0xff]  ;;  %v3019_v35 = vld [vmem:[#allocation12 + $0x1c8] sm:$0xff] }
 0x629   :  { %2429 = vst [vmem:[#allocation13 + $0x20] sm:$0xff] %v2427_v22  ;;  %2625 = vmatmul.mubr.f32.vlgmr.msra.gmra.mrb[10].mxu0 %v2427_v22  ;;  %2696 = vmatmul.mubr.f32.vlgmr.msra.gmra.mrb[10].mxu1 %v2427_v22  ;;  %v2993_v22 = vld [vmem:[#allocation12 + $0xf8] sm:$0xff] }
 0x62a   :  { %4609 = vmatpush1.bf16.msra.mxu0 %v6102_v56  ;;  %4641 = vmatpush1.bf16.msra.mxu1 %v6104_v36  ;;  %v6765_v56 = vld [vmem:[#allocation29_spill] sm:$0xff]  ;;  %v6766_v36 = vld [vmem:[#allocation30_spill] sm:$0xff] }
 0x62b   :  { %4611 = vmatprep.subr.bf16.mxu0 %v6758_v19  ;;  %4643 = vmatprep.subr.bf16.mxu1 %v6759_v1  ;;  %v2986_v19 = vld [vmem:[#allocation12 + $0xc0] sm:$0xff] }
 0x62c   :  { %2766 = vmatprep.mubr.f32.mxu0 %v6699_v46  ;;  %2837 = vmatprep.mubr.f32.mxu1 %v6699_v46  ;;  %v2990_v1 = vld [vmem:[#allocation12 + $0xe0] sm:$0xff] }
 0x62e   :  { %4613 = vmatpush1.bf16.msra.mxu0 %v6760_v37  ;;  %4645 = vmatpush1.bf16.msra.mxu1 %v6761_v25  ;;  %v6313_v37 = vpack.c.bf16 %v2993_v22, %v2989_v15  ;;  %v6315_v25 = vpack.c.bf16 %v2990_v1, %v2986_v19  ;;  %v3023_v15 = vld [vmem:[#allocation12 + $0x1e8] sm:$0xff]  ;;  %v6355_v22 = vpack.c.bf16 %v3016_v42, %v3012_v59  ;;  %v3021_v1 = vld [vmem:[#allocation12 + $0x1d8] sm:$0xff] }
 0x62f   :  { %4615 = vmatprep.subr.bf16.mxu0 %v6762_v20  ;;  %4647 = vmatprep.subr.bf16.mxu1 %v6763_v44  ;;  %v2988_v20 = vld [vmem:[#allocation12 + $0xd0] sm:$0xff]  ;;  %v6357_v19 = vpack.c.bf16 %v3023_v15, %v3019_v35 }
 0x630   :  { %v2992_v44 = vld [vmem:[#allocation12 + $0xf0] sm:$0xff] }
 0x632   :  { %4617 = vmatpush1.bf16.msra.mxu0 %v6764_v24  ;;  %4649 = vmatpush1.bf16.msra.mxu1 %v6765_v56  ;;  %v6318_v24 = vpack.c.bf16 %v2992_v44, %v2988_v20  ;;  %v2995_v56 = vld [vmem:[#allocation12 + $0x108] sm:$0xff]  ;;  %v3025_v20 = vld [vmem:[#allocation12 + $0x1f8] sm:$0xff]  ;;  %v3018_v44 = vld [vmem:[#allocation12 + $0x1c0] sm:$0xff] }
 0x633   :  { %4619 = vmatprep.subr.bf16.mxu0 %v6766_v36  ;;  %4651 = vmatprep.subr.bf16.mxu1 %v6767_v50  ;;  %v2999_v36 = vld [vmem:[#allocation12 + $0x128] sm:$0xff]  ;;  %v2997_v50 = vld [vmem:[#allocation12 + $0x118] sm:$0xff] }
 0x636   :  { %4621 = vmatpush1.bf16.msra.mxu0 %v6768_v41  ;;  %4653 = vmatpush1.bf16.msra.mxu1 %v6769_v31  ;;  %v6323_v41 = vpack.c.bf16 %v2999_v36, %v2995_v56  ;;  %v3001_v31 = vld [vmem:[#allocation12 + $0x138] sm:$0xff]  ;;  %v6359_v56 = vpack.c.bf16 %v3025_v20, %v3021_v1  ;;  %v3022_v36 = vld [vmem:[#allocation12 + $0x1e0] sm:$0xff] }
 0x637   :  { %4623 = vmatprep.subr.bf16.mxu0 %v6770_v40  ;;  %4655 = vmatprep.subr.bf16.mxu1 %v6771_v60  ;;  %v2994_v40 = vld [vmem:[#allocation12 + $0x100] sm:$0xff] }
 0x638   :  { %v2998_v60 = vld [vmem:[#allocation12 + $0x120] sm:$0xff] }
 0x63a   :  { %4625 = vmatpush1.bf16.msra.mxu0 %v6772_v14  ;;  %4657 = vmatpush1.bf16.msra.mxu1 %v6773_v63  ;;  %v6325_v14 = vpack.c.bf16 %v3001_v31, %v2997_v50  ;;  %v6327_v63 = vpack.c.bf16 %v2998_v60, %v2994_v40  ;;  %v3020_v50 = vld [vmem:[#allocation12 + $0x1d0] sm:$0xff]  ;;  %v6362_v40 = vpack.c.bf16 %v3022_v36, %v3018_v44  ;;  %v2899_v60 = vld [vmem:[#allocation10 + $0x8] sm:$0xff] }
 0x63b   :  { %4627 = vmatprep.subr.bf16.mxu0 %v6156_v32  ;;  %4659 = vmatprep.subr.bf16.mxu1 %v6158_v18  ;;  %v2431_v32 = vld [vmem:[#allocation4 + $0x28] sm:$0xff]  ;;  %v2963_v18 = vld [vmem:[#allocation12 + $0x8] sm:$0xff]  ;;  %v3024_v31 = vld [vmem:[#allocation12 + $0x1f0] sm:$0xff] }
 0x63e   :  { %4629 = vmatpush1.bf16.msra.mxu0 %v6162_v23  ;;  %4661 = vmatpush1.bf16.msra.mxu1 %v6164_v4  ;;  %v2967_v23 = vld [vmem:[#allocation12 + $0x28] sm:$0xff]  ;;  %v2965_v4 = vld [vmem:[#allocation12 + $0x18] sm:$0xff] }
 0x63f   :  { %4631 = vmatprep.subr.bf16.mxu0 %v6168_v61  ;;  %4663 = vmatprep.subr.bf16.mxu1 %v6170_v48  ;;  %v6275_v61 = vpack.c.bf16 %v2967_v23, %v2963_v18  ;;  %v2969_v48 = vld [vmem:[#allocation12 + $0x38] sm:$0xff]  ;;  %v3000_v18 = vld [vmem:[#allocation12 + $0x130] sm:$0xff] }
 0x642   :  { %4633 = vmatpush1.bf16.msra.mxu0 %v6174_v21  ;;  %4665 = vmatpush1.bf16.msra.mxu1 %v6176_v26  ;;  %v2962_v21 = vld [vmem:[#allocation12] sm:$0xff] }
 0x643   :  { %4635 = vmatprep.subr.bf16.mxu0 %v6180_v33  ;;  %4667 = vmatprep.subr.bf16.mxu1 %v6182_v58  ;;  %v2966_v26 = vld [vmem:[#allocation12 + $0x20] sm:$0xff]  ;;  %v6277_v33 = vpack.c.bf16 %v2969_v48, %v2965_v4  ;;  %v3003_v4 = vld [vmem:[#allocation12 + $0x148] sm:$0xff] }
 0x644   :  { %v6279_v58 = vpack.c.bf16 %v2966_v26, %v2962_v21  ;;  %v3007_v48 = vld [vmem:[#allocation12 + $0x168] sm:$0xff]  ;;  %v3005_v21 = vld [vmem:[#allocation12 + $0x158] sm:$0xff] }
 0x645   :  { %v6335_v26 = vpack.c.bf16 %v3007_v48, %v3003_v4  ;;  %v6366_v4 = vpack.c.bf16 %v3024_v31, %v3020_v50 }
 0x646   :  { %4637 = vmatpush1.bf16.msra.mxu0 %v6186_v54  ;;  %4669 = vmatpush1.bf16.msra.mxu1 %v6188_v6  ;;  %v2964_v54 = vld [vmem:[#allocation12 + $0x10] sm:$0xff] }
 0x647   :  { %v2968_v6 = vld [vmem:[#allocation12 + $0x30] sm:$0xff]  ;;  %4671 = vmatprep.subr.bf16.mxu0 %v6275_v61  ;;  %4703 = vmatprep.subr.bf16.mxu1 %v6277_v33 }
 0x648   :  { %v6282_v51 = vpack.c.bf16 %v2968_v6, %v2964_v54  ;;  %v3009_v54 = vld [vmem:[#allocation12 + $0x178] sm:$0xff]  ;;  %v3002_v6 = vld [vmem:[#allocation12 + $0x140] sm:$0xff] }
 0x649   :  { %2767 = vmatmul.mubr.f32.vlgmr.msra.gmra.mrb[10].mxu0 %v2431_v32  ;;  %2838 = vmatmul.mubr.f32.vlgmr.msra.gmra.mrb[10].mxu1 %v2431_v32  ;;  %v2996_v32 = vld [vmem:[#allocation12 + $0x110] sm:$0xff]  ;;  %v6337_v10 = vpack.c.bf16 %v3009_v54, %v3005_v21  ;;  %v6339_v0 = vpack.c.bf16 %v3006_v45, %v3002_v6  ;;  %v2905_v21 = vld [vmem:[#allocation10 + $0x38] sm:$0xff] }
 0x64a   :  { %3090 = vmatprep.mubr.f32.mxu0 %v6699_v46  ;;  %3161 = vmatprep.mubr.f32.mxu1 %v6699_v46  ;;  %v6330_v23 = vpack.c.bf16 %v3000_v18, %v2996_v32  ;;  %v2903_v32 = vld [vmem:[#allocation10 + $0x28] sm:$0xff]  ;;  %v2901_v18 = vld [vmem:[#allocation10 + $0x18] sm:$0xff]  ;;  %v2844_v6 = vld [vmem:[%s6625_s5] sm:$0xf] }
 0x64b   :  { %4673 = vmatpush1.bf16.msra.mxu0 %v6279_v58  ;;  %4705 = vmatpush1.bf16.msra.mxu1 %v6282_v51  ;;  %v6368_v48 = vpack.c.bf16 %v2903_v32, %v2899_v60  ;;  %v6371_v54 = vpack.c.bf16 %v2905_v21, %v2901_v18  ;;  %v2849_v45 = vrot.slane %v2844_v6, %v5651_v9 }
 0x64c   :  { %4675 = vmatprep.subr.bf16.mxu0 %v6287_v8  ;;  %4707 = vmatprep.subr.bf16.mxu1 %v6289_v29  ;;  %v2853_v53 = vrot.slane %v2844_v6, %v5656_v17  ;;  %v2861_v42 = vrot.slane %v2844_v6, %v5660_v27  ;;  %v2857_v15 = vrot.slane %v2844_v6, %v5663_v57  ;;  %v2898_v6 = vld [vmem:[#allocation10] sm:$0xff] }
 0x64f   :  { %4677 = vmatpush1.bf16.msra.mxu0 %v6291_v5  ;;  %4709 = vmatpush1.bf16.msra.mxu1 %v6294_v12 }
 0x650   :  { %4679 = vmatprep.subr.bf16.mxu0 %v6299_v28  ;;  %4711 = vmatprep.subr.bf16.mxu1 %v6301_v13 }
 0x653   :  { %4681 = vmatpush1.bf16.msra.mxu0 %v6303_v30  ;;  %4713 = vmatpush1.bf16.msra.mxu1 %v6306_v11 }
 0x654   :  { %4683 = vmatprep.subr.bf16.mxu0 %v6311_v55  ;;  %4715 = vmatprep.subr.bf16.mxu1 %v6313_v37 }
 0x657   :  { %4685 = vmatpush1.bf16.msra.mxu0 %v6315_v25  ;;  %4717 = vmatpush1.bf16.msra.mxu1 %v6318_v24 }
 0x658   :  { %4687 = vmatprep.subr.bf16.mxu0 %v6323_v41  ;;  %4719 = vmatprep.subr.bf16.mxu1 %v6325_v14 }
 0x65b   :  { %4689 = vmatpush1.bf16.msra.mxu0 %v6327_v63  ;;  %4721 = vmatpush1.bf16.msra.mxu1 %v6330_v23 }
 0x65c   :  { %4691 = vmatprep.subr.bf16.mxu0 %v6335_v26  ;;  %4723 = vmatprep.subr.bf16.mxu1 %v6337_v10 }
 0x65f   :  { %4693 = vmatpush1.bf16.msra.mxu0 %v6339_v0  ;;  %4725 = vmatpush1.bf16.msra.mxu1 %v6342_v3 }
 0x660   :  { %4695 = vmatprep.subr.bf16.mxu0 %v6346_v62  ;;  %4727 = vmatprep.subr.bf16.mxu1 %v6348_v49 }
 0x663   :  { %4697 = vmatpush1.bf16.msra.mxu0 %v6351_v16  ;;  %4729 = vmatpush1.bf16.msra.mxu1 %v6355_v22 }
 0x664   :  { %4699 = vmatprep.subr.bf16.mxu0 %v6357_v19  ;;  %4731 = vmatprep.subr.bf16.mxu1 %v6359_v56 }
 0x667   :  { %4701 = vmatpush1.bf16.msra.mxu0 %v6362_v40  ;;  %4733 = vmatpush1.bf16.msra.mxu1 %v6366_v4 }
 0x668   :  { %4735 = vmatprep.subr.bf16.mxu0 %v6368_v48  ;;  %4767 = vmatprep.subr.bf16.mxu1 %v6371_v54 }
 0x71c   :  { %v2768_v7 = vpop.f32.mrb[10].mxu0  ;;  %v2839_v43 = vpop.f32.mrb[10].mxu1 }
 0x71d   :  { %v2866_v52 = vadd.f32 %v2849_v45, %v2768_v7  ;;  %v2770_v47 = vpop.f32.mrb[11].mxu0  ;;  %v2841_v39 = vpop.f32.mrb[11].mxu1  ;;  %v2868_v20 = vadd.f32 %v2857_v15, %v2839_v43  ;;  %v2902_v43 = vld [vmem:[#allocation10 + $0x20] sm:$0xff] }
 0x71e   :  { %v2867_v34 = vadd.f32 %v2853_v53, %v2770_v47  ;;  %v2869_v35 = vadd.f32 %v2861_v42, %v2841_v39  ;;  %v2900_v47 = vld [vmem:[#allocation10 + $0x10] sm:$0xff]  ;;  %v2913_v42 = vld [vmem:[#allocation10 + $0x78] sm:$0xff] }
 0x71f   :  { %v3893_v2 = vmul.f32 -1.442695, %v2866_v52  ;;  %v2904_v39 = vld [vmem:[#allocation10 + $0x30] sm:$0xff] }
 0x720   :  { %v3894_v59 = vmul.f32 -1.442695, %v2867_v34  ;;  %v3895_v1 = vmul.f32 -1.442695, %v2869_v35  ;;  %v2907_v34 = vld [vmem:[#allocation10 + $0x48] sm:$0xff] }
 0x721   :  { %5051 = vpow2.f32 %v3893_v2  ;;  %v2911_v2 = vld [vmem:[#allocation10 + $0x68] sm:$0xff] }
 0x722   :  { %5053 = vpow2.f32 %v3894_v59  ;;  %v2909_v59 = vld [vmem:[#allocation10 + $0x58] sm:$0xff] }
 0x723   :  { %5055 = vpow2.f32 %v3895_v1  ;;  %v6388_v1 = vpack.c.bf16 %v2902_v43, %v2898_v6  ;;  %v2914_v43 = vld [vmem:[#allocation10 + $0x80] sm:$0xff] }
 0x724   :  { %5057 = vtanh.f32 %v2868_v20  ;;  %v6390_v20 = vpack.c.bf16 %v2904_v39, %v2900_v47  ;;  %v2918_v47 = vld [vmem:[#allocation10 + $0xa0] sm:$0xff] }
 0x72b   :  { %v5052_v44 = vpop.eup %5051 }
 0x72c   :  { %v5054_v36 = vpop.eup %5053  ;;  %v2873_v50 = vadd.f32 1.0, %v5052_v44  ;;  %v2910_v44 = vld [vmem:[#allocation10 + $0x60] sm:$0xff] }
 0x72d   :  { %v2879_v31 = vadd.f32 1.0, %v5054_v36  ;;  %v5056_v60 = vpop.eup %5055 }
 0x72e   :  { %5059 = vrcp.f32 %v2873_v50  ;;  %v5058_v32 = vpop.eup %5057  ;;  %v2886_v53 = vadd.f32 1.0, %v5056_v60  ;;  %v6392_v50 = vpack.c.bf16 %v2911_v2, %v2907_v34  ;;  %v2908_v60 = vld [vmem:[#allocation10 + $0x50] sm:$0xff] }
 0x72f   :  { %5061 = vrcp.f32 %v2879_v31  ;;  %v6394_v31 = vpack.c.bf16 %v2913_v42, %v2909_v59  ;;  %v2916_v2 = vld [vmem:[#allocation10 + $0x90] sm:$0xff]  ;;  %v2923_v42 = vld [vmem:[#allocation10 + $0xc8] sm:$0xff] }
 0x730   :  { %5063 = vrcp.f32 %v2886_v53  ;;  %6774 = vst [vmem:[#allocation22_spill] sm:$0xff] %v6392_v50  ;;  %v2921_v53 = vld [vmem:[#allocation10 + $0xb8] sm:$0xff]  ;;  %v2920_v59 = vld [vmem:[#allocation10 + $0xb0] sm:$0xff] }
 0x731   :  { %6775 = vst [vmem:[#allocation23_spill] sm:$0xff] %v6394_v31 }
 0x738   :  { %v5060_v18 = vpop.eup %5059 }
 0x739   :  { %v5062_v21 = vpop.eup %5061  ;;  %v2890_v45 = vmul.f32 %v5060_v18, %v5058_v32  ;;  %v2912_v32 = vld [vmem:[#allocation10 + $0x70] sm:$0xff]  ;;  %v2915_v18 = vld [vmem:[#allocation10 + $0x88] sm:$0xff] }
 0x73a   :  { %v2889_v7 = vmul.f32 %v5062_v21, %v6238_v38  ;;  %v5064_v35 = vpop.eup %5063  ;;  %v2906_v38 = vld [vmem:[#allocation10 + $0x40] sm:$0xff]  ;;  %v2919_v21 = vld [vmem:[#allocation10 + $0xa8] sm:$0xff]  ;;  %v6400_v6 = vpack.c.bf16 %v2912_v32, %v2908_v60 }
 0x73b   :  { %v6404_v39 = vpack.c.bf16 %v2919_v21, %v2915_v18  ;;  %v2922_v60 = vld [vmem:[#allocation10 + $0xc0] sm:$0xff] }
 0x73c   :  { %v6385_v52 = vadd.f32 %v2890_v45, %v2889_v7  ;;  %v2917_v45 = vld [vmem:[#allocation10 + $0x98] sm:$0xff]  ;;  %v6398_v7 = vpack.c.bf16 %v2910_v44, %v2906_v38  ;;  %6777 = vst [vmem:[#allocation25_spill] sm:$0xff] %v6400_v6  ;;  %v6412_v38 = vpack.c.bf16 %v2918_v47, %v2914_v43  ;;  %v6414_v44 = vpack.c.bf16 %v2920_v59, %v2916_v2  ;;  %v2926_v32 = vld [vmem:[#allocation10 + $0xe0] sm:$0xff] }
 0x73d   :  { %6778 = vst [vmem:[#allocation26_spill] sm:$0xff] %v6404_v39  ;;  %v6406_v34 = vpack.c.bf16 %v2921_v53, %v2917_v45  ;;  %v2924_v45 = vld [vmem:[#allocation10 + $0xd0] sm:$0xff]  ;;  %v6424_v43 = vpack.c.bf16 %v2926_v32, %v2922_v60  ;;  %v2930_v2 = vld [vmem:[#allocation10 + $0x100] sm:$0xff] }
 0x73e   :  { %5065 = vtanh.f32 %v6385_v52  ;;  %6776 = vst [vmem:[#allocation24_spill] sm:$0xff] %v6398_v7  ;;  %6780 = vst [vmem:[#allocation28_spill] sm:$0xff] %v6412_v38  ;;  %v2928_v53 = vld [vmem:[#allocation10 + $0xf0] sm:$0xff]  ;;  %v2934_v59 = vld [vmem:[#allocation10 + $0x120] sm:$0xff] }
 0x73f   :  { %6779 = vst [vmem:[#allocation27_spill] sm:$0xff] %v6406_v34  ;;  %6781 = vst [vmem:[#allocation29_spill] sm:$0xff] %v6414_v44  ;;  %v6426_v47 = vpack.c.bf16 %v2928_v53, %v2924_v45  ;;  %v6436_v60 = vpack.c.bf16 %v2934_v59, %v2930_v2  ;;  %v2938_v45 = vld [vmem:[#allocation10 + $0x140] sm:$0xff] }
 0x740   :  { %6784 = vst [vmem:[#allocation32_spill] sm:$0xff] %v6424_v43  ;;  %v2942_v53 = vld [vmem:[#allocation10 + $0x160] sm:$0xff] }
 0x741   :  { %6785 = vst [vmem:[#allocation33_spill] sm:$0xff] %v6426_v47  ;;  %6788 = vst [vmem:[#allocation36_spill] sm:$0xff] %v6436_v60  ;;  %v6448_v2 = vpack.c.bf16 %v2942_v53, %v2938_v45 }
 0x748   :  { %v5066_v15 = vpop.eup %5065 }
 0x749   :  { %v2893_v36 = vmul.f32 %v5066_v15, %v5064_v35  ;;  %v2927_v35 = vld [vmem:[#allocation10 + $0xe8] sm:$0xff]  ;;  %v2925_v15 = vld [vmem:[#allocation10 + $0xd8] sm:$0xff] }
 0x74a   :  { %v6418_v18 = vpack.c.bf16 %v2927_v35, %v2923_v42 }
 0x74b   :  { %2895 = vst [vmem:[#allocation13 + $0x28] sm:$0xff] %v2893_v36  ;;  %3091 = vmatmul.mubr.f32.vlgmr.msra.gmra.mrb[12].mxu0 %v2893_v36  ;;  %3162 = vmatmul.mubr.f32.vlgmr.msra.gmra.mrb[12].mxu1 %v2893_v36  ;;  %v2929_v36 = vld [vmem:[#allocation10 + $0xf8] sm:$0xff] }
 0x74c   :  { %4737 = vmatpush1.bf16.msra.mxu0 %v6388_v1  ;;  %4769 = vmatpush1.bf16.msra.mxu1 %v6390_v20  ;;  %6782 = vst [vmem:[#allocation30_spill] sm:$0xff] %v6418_v18  ;;  %v6420_v21 = vpack.c.bf16 %v2929_v36, %v2925_v15  ;;  %v2932_v15 = vld [vmem:[#allocation10 + $0x110] sm:$0xff] }
 0x74d   :  { %4739 = vmatprep.subr.bf16.mxu0 %v6392_v50  ;;  %4771 = vmatprep.subr.bf16.mxu1 %v6394_v31  ;;  %v2931_v31 = vld [vmem:[#allocation10 + $0x108] sm:$0xff]  ;;  %v2933_v50 = vld [vmem:[#allocation10 + $0x118] sm:$0xff]  ;;  %v2936_v36 = vld [vmem:[#allocation10 + $0x130] sm:$0xff] }
 0x74e   :  { %3232 = vmatprep.mubr.f32.mxu0 %v6699_v46  ;;  %3303 = vmatprep.mubr.f32.mxu1 %v6699_v46  ;;  %6783 = vst [vmem:[#allocation31_spill] sm:$0xff] %v6420_v21  ;;  %v6438_v32 = vpack.c.bf16 %v2936_v36, %v2932_v15  ;;  %v2946_v15 = vld [vmem:[#allocation10 + $0x180] sm:$0xff] }
 0x74f   :  { %v2950_v36 = vld [vmem:[#allocation10 + $0x1a0] sm:$0xff] }
 0x750   :  { %4741 = vmatpush1.bf16.msra.mxu0 %v6398_v7  ;;  %4773 = vmatpush1.bf16.msra.mxu1 %v6400_v6  ;;  %v2935_v7 = vld [vmem:[#allocation10 + $0x128] sm:$0xff]  ;;  %v2937_v6 = vld [vmem:[#allocation10 + $0x138] sm:$0xff]  ;;  %6789 = vst [vmem:[#allocation37_spill] sm:$0xff] %v6438_v32  ;;  %v6460_v45 = vpack.c.bf16 %v2950_v36, %v2946_v15 }
 0x751   :  { %4743 = vmatprep.subr.bf16.mxu0 %v6404_v39  ;;  %4775 = vmatprep.subr.bf16.mxu1 %v6406_v34  ;;  %v6430_v42 = vpack.c.bf16 %v2935_v7, %v2931_v31  ;;  %v6432_v35 = vpack.c.bf16 %v2937_v6, %v2933_v50  ;;  %v2939_v34 = vld [vmem:[#allocation10 + $0x148] sm:$0xff]  ;;  %v2941_v39 = vld [vmem:[#allocation10 + $0x158] sm:$0xff]  ;;  %v2940_v7 = vld [vmem:[#allocation10 + $0x150] sm:$0xff] }
 0x752   :  { %v2944_v6 = vld [vmem:[#allocation10 + $0x170] sm:$0xff] }
 0x753   :  { %6786 = vst [vmem:[#allocation34_spill] sm:$0xff] %v6430_v42  ;;  %6787 = vst [vmem:[#allocation35_spill] sm:$0xff] %v6432_v35  ;;  %v6450_v59 = vpack.c.bf16 %v2944_v6, %v2940_v7  ;;  %v2954_v7 = vld [vmem:[#allocation10 + $0x1c0] sm:$0xff]  ;;  %v2960_v6 = vld [vmem:[#allocation10 + $0x1f0] sm:$0xff] }
 0x754   :  { %4745 = vmatpush1.bf16.msra.mxu0 %v6412_v38  ;;  %4777 = vmatpush1.bf16.msra.mxu1 %v6414_v44  ;;  %v2943_v38 = vld [vmem:[#allocation10 + $0x168] sm:$0xff]  ;;  %v2945_v44 = vld [vmem:[#allocation10 + $0x178] sm:$0xff] }
 0x755   :  { %4747 = vmatprep.subr.bf16.mxu0 %v6418_v18  ;;  %4779 = vmatprep.subr.bf16.mxu1 %v6420_v21  ;;  %v6442_v50 = vpack.c.bf16 %v2943_v38, %v2939_v34  ;;  %v6444_v31 = vpack.c.bf16 %v2945_v44, %v2941_v39  ;;  %v2947_v21 = vld [vmem:[#allocation10 + $0x188] sm:$0xff]  ;;  %v2949_v18 = vld [vmem:[#allocation10 + $0x198] sm:$0xff]  ;;  %v2948_v38 = vld [vmem:[#allocation10 + $0x190] sm:$0xff] }
 0x756   :  { %v2952_v44 = vld [vmem:[#allocation10 + $0x1b0] sm:$0xff] }
 0x757   :  { %v6462_v53 = vpack.c.bf16 %v2952_v44, %v2948_v38  ;;  %v6799_v38 = vld [vmem:[#allocation31_spill] sm:$0xff]  ;;  %v6800_v44 = vld [vmem:[#allocation32_spill] sm:$0xff] }
 0x758   :  { %4749 = vmatpush1.bf16.msra.mxu0 %v6424_v43  ;;  %4781 = vmatpush1.bf16.msra.mxu1 %v6426_v47  ;;  %v2951_v43 = vld [vmem:[#allocation10 + $0x1a8] sm:$0xff]  ;;  %v2953_v47 = vld [vmem:[#allocation10 + $0x1b8] sm:$0xff] }
 0x759   :  { %4751 = vmatprep.subr.bf16.mxu0 %v6430_v42  ;;  %4783 = vmatprep.subr.bf16.mxu1 %v6432_v35  ;;  %v6454_v39 = vpack.c.bf16 %v2951_v43, %v2947_v21  ;;  %v6456_v34 = vpack.c.bf16 %v2953_v47, %v2949_v18  ;;  %v2955_v35 = vld [vmem:[#allocation10 + $0x1c8] sm:$0xff]  ;;  %v2957_v42 = vld [vmem:[#allocation10 + $0x1d8] sm:$0xff]  ;;  %v2958_v43 = vld [vmem:[#allocation10 + $0x1e0] sm:$0xff] }
 0x75a   :  { %v2956_v47 = vld [vmem:[#allocation10 + $0x1d0] sm:$0xff]  ;;  %v6472_v15 = vpack.c.bf16 %v2958_v43, %v2954_v7  ;;  %v6801_v7 = vld [vmem:[#allocation33_spill] sm:$0xff]  ;;  %v6803_v43 = vld [vmem:[#allocation35_spill] sm:$0xff] }
 0x75b   :  { %v6474_v36 = vpack.c.bf16 %v2960_v6, %v2956_v47  ;;  %v6804_v47 = vld [vmem:[#allocation36_spill] sm:$0xff]  ;;  %v6805_v6 = vld [vmem:[#allocation37_spill] sm:$0xff] }
 0x75c   :  { %4753 = vmatpush1.bf16.msra.mxu0 %v6436_v60  ;;  %4785 = vmatpush1.bf16.msra.mxu1 %v6438_v32  ;;  %v2959_v60 = vld [vmem:[#allocation10 + $0x1e8] sm:$0xff]  ;;  %v2961_v32 = vld [vmem:[#allocation10 + $0x1f8] sm:$0xff] }
 0x75d   :  { %4755 = vmatprep.subr.bf16.mxu0 %v6442_v50  ;;  %4787 = vmatprep.subr.bf16.mxu1 %v6444_v31  ;;  %v6466_v18 = vpack.c.bf16 %v2959_v60, %v2955_v35  ;;  %v6468_v21 = vpack.c.bf16 %v2961_v32, %v2957_v42  ;;  %v2897_v42 = vld [vmem:[#allocation4 + $0x30] sm:$0xff]  ;;  %v6794_v35 = vld [vmem:[#allocation26_spill] sm:$0xff]  ;;  %v6795_v60 = vld [vmem:[#allocation27_spill] sm:$0xff] }
 0x75e   :  { %v6796_v32 = vld [vmem:[#allocation28_spill] sm:$0xff] }
 0x760   :  { %4757 = vmatpush1.bf16.msra.mxu0 %v6448_v2  ;;  %4789 = vmatpush1.bf16.msra.mxu1 %v6450_v59 }
 0x761   :  { %4759 = vmatprep.subr.bf16.mxu0 %v6454_v39  ;;  %4791 = vmatprep.subr.bf16.mxu1 %v6456_v34 }
 0x764   :  { %4761 = vmatpush1.bf16.msra.mxu0 %v6460_v45  ;;  %4793 = vmatpush1.bf16.msra.mxu1 %v6462_v53 }
 0x765   :  { %4763 = vmatprep.subr.bf16.mxu0 %v6466_v18  ;;  %4795 = vmatprep.subr.bf16.mxu1 %v6468_v21 }
 0x768   :  { %4765 = vmatpush1.bf16.msra.mxu0 %v6472_v15  ;;  %4797 = vmatpush1.bf16.msra.mxu1 %v6474_v36 }
 0x769   :  { %4799 = vmatprep.subr.bf16.mxu0 %v6275_v61  ;;  %4831 = vmatprep.subr.bf16.mxu1 %v6277_v33  ;;  %v3310_v61 = vld [vmem:[%s6625_s5] sm:$0xf] }
 0x76a   :  { %v3315_v33 = vrot.slane %v3310_v61, %v5651_v9 }
 0x76b   :  { %3233 = vmatmul.mubr.f32.vlgmr.msra.gmra.mrb[12].mxu0 %v2897_v42  ;;  %3304 = vmatmul.mubr.f32.vlgmr.msra.gmra.mrb[12].mxu1 %v2897_v42 }
 0x76c   :  { %4801 = vmatpush1.bf16.msra.mxu0 %v6279_v58  ;;  %4833 = vmatpush1.bf16.msra.mxu1 %v6282_v51  ;;  %v3319_v58 = vrot.slane %v3310_v61, %v5656_v17 }
 0x76d   :  { %4803 = vmatprep.subr.bf16.mxu0 %v6287_v8  ;;  %4835 = vmatprep.subr.bf16.mxu1 %v6289_v29 }
 0x76e   :  { %3556 = vmatprep.mubr.f32.mxu0 %v6699_v46  ;;  %3627 = vmatprep.mubr.f32.mxu1 %v6699_v46 }
 0x770   :  { %4805 = vmatpush1.bf16.msra.mxu0 %v6291_v5  ;;  %4837 = vmatpush1.bf16.msra.mxu1 %v6294_v12 }
 0x771   :  { %4807 = vmatprep.subr.bf16.mxu0 %v6299_v28  ;;  %4839 = vmatprep.subr.bf16.mxu1 %v6301_v13 }
 0x774   :  { %4809 = vmatpush1.bf16.msra.mxu0 %v6303_v30  ;;  %4841 = vmatpush1.bf16.msra.mxu1 %v6306_v11  ;;  %v3327_v11 = vrot.slane %v3310_v61, %v5660_v27 }
 0x775   :  { %4811 = vmatprep.subr.bf16.mxu0 %v6311_v55  ;;  %4843 = vmatprep.subr.bf16.mxu1 %v6313_v37  ;;  %v3323_v37 = vrot.slane %v3310_v61, %v5663_v57 }
 0x778   :  { %4813 = vmatpush1.bf16.msra.mxu0 %v6315_v25  ;;  %4845 = vmatpush1.bf16.msra.mxu1 %v6318_v24 }
 0x779   :  { %4815 = vmatprep.subr.bf16.mxu0 %v6323_v41  ;;  %4847 = vmatprep.subr.bf16.mxu1 %v6325_v14 }
 0x77c   :  { %4817 = vmatpush1.bf16.msra.mxu0 %v6327_v63  ;;  %4849 = vmatpush1.bf16.msra.mxu1 %v6330_v23 }
 0x77d   :  { %4819 = vmatprep.subr.bf16.mxu0 %v6335_v26  ;;  %4851 = vmatprep.subr.bf16.mxu1 %v6337_v10 }
 0x780   :  { %4821 = vmatpush1.bf16.msra.mxu0 %v6339_v0  ;;  %4853 = vmatpush1.bf16.msra.mxu1 %v6342_v3 }
 0x781   :  { %4823 = vmatprep.subr.bf16.mxu0 %v6346_v62  ;;  %4855 = vmatprep.subr.bf16.mxu1 %v6348_v49 }
 0x784   :  { %4825 = vmatpush1.bf16.msra.mxu0 %v6351_v16  ;;  %4857 = vmatpush1.bf16.msra.mxu1 %v6355_v22 }
 0x785   :  { %4827 = vmatprep.subr.bf16.mxu0 %v6357_v19  ;;  %4859 = vmatprep.subr.bf16.mxu1 %v6359_v56 }
 0x788   :  { %4829 = vmatpush1.bf16.msra.mxu0 %v6362_v40  ;;  %4861 = vmatpush1.bf16.msra.mxu1 %v6366_v4  ;;  %v6790_v4 = vld [vmem:[#allocation22_spill] sm:$0xff] }
 0x789   :  { %4863 = vmatprep.subr.bf16.mxu0 %v6368_v48  ;;  %4895 = vmatprep.subr.bf16.mxu1 %v6371_v54  ;;  %v6791_v48 = vld [vmem:[#allocation23_spill] sm:$0xff]  ;;  %v6792_v54 = vld [vmem:[#allocation24_spill] sm:$0xff] }
 0x83e   :  { %v3234_v51 = vpop.f32.mrb[12].mxu0  ;;  %v3305_v8 = vpop.f32.mrb[12].mxu1 }
 0x83f   :  { %v3332_v29 = vadd.f32 %v3315_v33, %v3234_v51  ;;  %v3236_v5 = vpop.f32.mrb[13].mxu0  ;;  %v3307_v12 = vpop.f32.mrb[13].mxu1  ;;  %v3334_v24 = vadd.f32 %v3323_v37, %v3305_v8 }
 0x840   :  { %v3333_v28 = vadd.f32 %v3319_v58, %v3236_v5  ;;  %v3335_v55 = vadd.f32 %v3327_v11, %v3307_v12 }
 0x841   :  { %v3896_v13 = vmul.f32 -1.442695, %v3332_v29 }
 0x842   :  { %v3897_v30 = vmul.f32 -1.442695, %v3333_v28  ;;  %v3898_v25 = vmul.f32 -1.442695, %v3335_v55 }
 0x843   :  { %5067 = vpow2.f32 %v3896_v13 }
 0x844   :  { %5069 = vpow2.f32 %v3897_v30 }
 0x845   :  { %5071 = vpow2.f32 %v3898_v25 }
 0x846   :  { %5073 = vtanh.f32 %v3334_v24 }
 0x84d   :  { %v5068_v41 = vpop.eup %5067 }
 0x84e   :  { %v5070_v14 = vpop.eup %5069  ;;  %v3339_v63 = vadd.f32 1.0, %v5068_v41 }
 0x84f   :  { %v3345_v23 = vadd.f32 1.0, %v5070_v14  ;;  %v5072_v26 = vpop.eup %5071 }
 0x850   :  { %5075 = vrcp.f32 %v3339_v63  ;;  %v5074_v10 = vpop.eup %5073  ;;  %v3352_v49 = vadd.f32 1.0, %v5072_v26 }
 0x851   :  { %5077 = vrcp.f32 %v3345_v23 }
 0x852   :  { %5079 = vrcp.f32 %v3352_v49 }
 0x85a   :  { %v5076_v0 = vpop.eup %5075 }
 0x85b   :  { %v5078_v3 = vpop.eup %5077  ;;  %v3356_v62 = vmul.f32 %v5076_v0, %v5074_v10 }
 0x85c   :  { %v3355_v16 = vmul.f32 %v5078_v3, %v6385_v52  ;;  %v5080_v19 = vpop.eup %5079  ;;  %v6793_v52 = vld [vmem:[#allocation25_spill] sm:$0xff] }
 0x85e   :  { %v6524_v22 = vadd.f32 %v3356_v62, %v3355_v16 }
 0x860   :  { %5081 = vtanh.f32 %v6524_v22 }
 0x86a   :  { %v5082_v56 = vpop.eup %5081 }
 0x86b   :  { %v3359_v40 = vmul.f32 %v5082_v56, %v5080_v19 }
 0x86d   :  { %3361 = vst [vmem:[#allocation13 + $0x30] sm:$0xff] %v3359_v40  ;;  %3557 = vmatmul.mubr.f32.vlgmr.msra.gmra.mrb[14].mxu0 %v3359_v40  ;;  %3628 = vmatmul.mubr.f32.vlgmr.msra.gmra.mrb[14].mxu1 %v3359_v40 }
 0x86e   :  { %4865 = vmatpush1.bf16.msra.mxu0 %v6388_v1  ;;  %4897 = vmatpush1.bf16.msra.mxu1 %v6390_v20  ;;  %v6797_v1 = vld [vmem:[#allocation29_spill] sm:$0xff]  ;;  %v6798_v20 = vld [vmem:[#allocation30_spill] sm:$0xff] }
 0x86f   :  { %4867 = vmatprep.subr.bf16.mxu0 %v6790_v4  ;;  %4899 = vmatprep.subr.bf16.mxu1 %v6791_v48 }
 0x870   :  { %3698 = vmatprep.mubr.f32.mxu0 %v6699_v46  ;;  %3769 = vmatprep.mubr.f32.mxu1 %v6699_v46  ;;  %v6802_v46 = vld [vmem:[#allocation34_spill] sm:$0xff] }
 0x872   :  { %4869 = vmatpush1.bf16.msra.mxu0 %v6792_v54  ;;  %4901 = vmatpush1.bf16.msra.mxu1 %v6793_v52 }
 0x873   :  { %4871 = vmatprep.subr.bf16.mxu0 %v6794_v35  ;;  %4903 = vmatprep.subr.bf16.mxu1 %v6795_v60 }
 0x876   :  { %4873 = vmatpush1.bf16.msra.mxu0 %v6796_v32  ;;  %4905 = vmatpush1.bf16.msra.mxu1 %v6797_v1 }
 0x877   :  { %4875 = vmatprep.subr.bf16.mxu0 %v6798_v20  ;;  %4907 = vmatprep.subr.bf16.mxu1 %v6799_v38 }
 0x87a   :  { %4877 = vmatpush1.bf16.msra.mxu0 %v6800_v44  ;;  %4909 = vmatpush1.bf16.msra.mxu1 %v6801_v7 }
 0x87b   :  { %4879 = vmatprep.subr.bf16.mxu0 %v6802_v46  ;;  %4911 = vmatprep.subr.bf16.mxu1 %v6803_v43 }
 0x87e   :  { %4881 = vmatpush1.bf16.msra.mxu0 %v6804_v47  ;;  %4913 = vmatpush1.bf16.msra.mxu1 %v6805_v6 }
 0x87f   :  { %4883 = vmatprep.subr.bf16.mxu0 %v6442_v50  ;;  %4915 = vmatprep.subr.bf16.mxu1 %v6444_v31  ;;  %v3363_v50 = vld [vmem:[#allocation4 + $0x38] sm:$0xff]  ;;  %v3776_v31 = vld [vmem:[%s6625_s5] sm:$0xf]  ;;  %s5295_s5 = smov [#allocation14]  }
 0x880   :  { %v3789_v33 = vrot.slane %v3776_v31, %v5663_v57  ;;  %s3850_s15 = sshll.u32 %s5295_s5, 4  ;;  %s3851_s15 = int_to_ptr.vmem [resolvable:$true] %s3850_s15 }
 0x881   :  { %s5209_s20 = scalar_lea.vmem %s3851_s15, 128  ;;  %p5214_p13 = scmp.lt.s32.totalorder %s3851_s15, %s3851_s15 }
 0x882   :  { %4885 = vmatpush1.bf16.msra.mxu0 %v6448_v2  ;;  %4917 = vmatpush1.bf16.msra.mxu1 %v6450_v59  ;;  %v3781_v2 = vrot.slane %v3776_v31, %v5651_v9  ;;  %v3785_v59 = vrot.slane %v3776_v31, %v5656_v17  ;;  %p5210_p12 = scmp.ne.s32.totalorder %s3851_s15, %s5209_s20  ;;  %p5215_p0 = scmp.lt.s32.totalorder %s5209_s20, %s5209_s20 }
 0x883   :  { %4887 = vmatprep.subr.bf16.mxu0 %v6454_v39  ;;  %4919 = vmatprep.subr.bf16.mxu1 %v6456_v34 }
 0x884   :  { %p5216_p1 = por %p5215_p0, %p5214_p13 }
 0x886   :  { %4889 = vmatpush1.bf16.msra.mxu0 %v6460_v45  ;;  %4921 = vmatpush1.bf16.msra.mxu1 %v6462_v53  ;;  %p5217_p2 = pnand %p5216_p1, %p5210_p12 }
 0x887   :  { %4891 = vmatprep.subr.bf16.mxu0 %v6466_v18  ;;  %4923 = vmatprep.subr.bf16.mxu1 %v6468_v21 }
 0x88a   :  { %4893 = vmatpush1.bf16.msra.mxu0 %v6472_v15  ;;  %4925 = vmatpush1.bf16.msra.mxu1 %v6474_v36  ;;  %v3793_v36 = vrot.slane %v3776_v31, %v5660_v27 }
 0x88d   :  { %3699 = vmatmul.mubr.f32.vlgmr.msra.gmra.mrb[14].mxu0 %v3363_v50  ;;  %3770 = vmatmul.mubr.f32.vlgmr.msra.gmra.mrb[14].mxu1 %v3363_v50 }
 0x960   :  { %v3700_v39 = vpop.f32.mrb[14].mxu0  ;;  %v3771_v34 = vpop.f32.mrb[14].mxu1 }
 0x961   :  { %v3798_v45 = vadd.f32 %v3781_v2, %v3700_v39  ;;  %v3702_v53 = vpop.f32.mrb[15].mxu0  ;;  %v3773_v18 = vpop.f32.mrb[15].mxu1  ;;  %v3800_v51 = vadd.f32 %v3789_v33, %v3771_v34 }
 0x962   :  { %v3799_v21 = vadd.f32 %v3785_v59, %v3702_v53  ;;  %v3801_v61 = vadd.f32 %v3793_v36, %v3773_v18 }
 0x963   :  { %v3899_v15 = vmul.f32 -1.442695, %v3798_v45 }
 0x964   :  { %v3900_v42 = vmul.f32 -1.442695, %v3799_v21  ;;  %v3901_v58 = vmul.f32 -1.442695, %v3801_v61 }
 0x965   :  { %5083 = vpow2.f32 %v3899_v15 }
 0x966   :  { %5085 = vpow2.f32 %v3900_v42 }
 0x967   :  { %5087 = vpow2.f32 %v3901_v58 }
 0x968   :  { %5089 = vtanh.f32 %v3800_v51 }
 0x96f   :  { %v5084_v9 = vpop.eup %5083 }
 0x970   :  { %v5086_v8 = vpop.eup %5085  ;;  %v3805_v17 = vadd.f32 1.0, %v5084_v9 }
 0x971   :  { %v3811_v29 = vadd.f32 1.0, %v5086_v8  ;;  %v5088_v5 = vpop.eup %5087 }
 0x972   :  { %5091 = vrcp.f32 %v3805_v17  ;;  %v5090_v12 = vpop.eup %5089  ;;  %v3818_v30 = vadd.f32 1.0, %v5088_v5 }
 0x973   :  { %5093 = vrcp.f32 %v3811_v29 }
 0x974   :  { %5095 = vrcp.f32 %v3818_v30 }
 0x97c   :  { %v5092_v28 = vpop.eup %5091 }
 0x97d   :  { %v5094_v13 = vpop.eup %5093  ;;  %v3822_v27 = vmul.f32 %v5092_v28, %v5090_v12 }
 0x97e   :  { %v3821_v11 = vmul.f32 %v5094_v13, %v6524_v22  ;;  %v5096_v57 = vpop.eup %5095 }
 0x980   :  { %v3823_v55 = vadd.f32 %v3822_v27, %v3821_v11 }
 0x982   :  { %5097 = vtanh.f32 %v3823_v55  ;;  %3831 = vst [vmem:[#allocation16] sm:$0xff] %v3823_v55 }
 0x98c   :  { %v5098_v37 = vpop.eup %5097 }
 0x98d   :  { %v3825_v25 = vmul.f32 %v5098_v37, %v5096_v57 }
 0x98f   :  { %3827 = vst [vmem:[#allocation13 + $0x38] sm:$0xff] %v3825_v25  ;;  %3830 = vst [vmem:[#allocation14] sm:$0xff] %v3825_v25 }
 0x990   :  { %5220 = shalt.err (!%p5217_p2)
}
 0x991   :  { %s5221_s22 = scalar_lea.hbm %s6627_s7, 128 }
 0x992   :  { %p5222_p3 = scmp.ne.s32.totalorder %s6627_s7, %s5221_s22  ;;  %p5225_p4 = scmp.lt.u32.totalorder %s5221_s22, %s6627_s7 }
 0x994   :  { %p5227_p5 = pnand %p5225_p4, %p5222_p3 }
 0x996   :  { %5230 = shalt.err (!%p5227_p5)
}
 0x997   :  { %3853 = dma.vmem_to_hbm [thread:$0]  %s3851_s15, 128, %s6627_s7, [#allocation15]  }
 0x998   :  { %s5231_s26 = scalar_lea.vmem %s6567_s17, 1024  ;;  %p5236_p7 = scmp.lt.s32.totalorder %s6567_s17, %s6567_s17 }
 0x999   :  { %p5232_p6 = scmp.ne.s32.totalorder %s6567_s17, %s5231_s26  ;;  %p5237_p8 = scmp.lt.s32.totalorder %s5231_s26, %s5231_s26 }
 0x99b   :  { %p5238_p9 = por %p5237_p8, %p5236_p7 }
 0x99d   :  { %p5239_p10 = pnand %p5238_p9, %p5232_p6 }
 0x99f   :  { %5242 = shalt.err (!%p5239_p10)
}
 0x9a0   :  { %s5243_s9 = scalar_lea.hbm %s6626_s6, 1024 }
 0x9a1   :  { %p5244_p11 = scmp.ne.s32.totalorder %s6626_s6, %s5243_s9  ;;  %p5247_p12 = scmp.lt.u32.totalorder %s5243_s9, %s6626_s6 }
 0x9a3   :  { %p5249_p13 = pnand %p5247_p12, %p5244_p11 }
 0x9a5   :  { %5252 = shalt.err (!%p5249_p13)
}
 0x9a6   :  { %3843 = dma.vmem_to_hbm [thread:$0]  %s6567_s17, 1024, %s6626_s6, [#allocation6], %s5290_s3, %s5290_s3, %s5291_s30  }
 0x9a7   :  { %s5253_s14 = scalar_lea.vmem %s6569_s19, 128  ;;  %p5258_p1 = scmp.lt.s32.totalorder %s6569_s19, %s6569_s19 }
 0x9a8   :  { %p5254_p0 = scmp.ne.s32.totalorder %s6569_s19, %s5253_s14  ;;  %p5259_p2 = scmp.lt.s32.totalorder %s5253_s14, %s5253_s14 }
 0x9aa   :  { %p5260_p3 = por %p5259_p2, %p5258_p1 }
 0x9ac   :  { %p5261_p4 = pnand %p5260_p3, %p5254_p0 }
 0x9ae   :  { %5264 = shalt.err (!%p5261_p4)
}
 0x9af   :  { %s5265_s16 = scalar_lea.hbm %s6628_s8, 128 }
 0x9b0   :  { %p5266_p5 = scmp.ne.s32.totalorder %s6628_s8, %s5265_s16  ;;  %p5269_p6 = scmp.lt.u32.totalorder %s5265_s16, %s6628_s8 }
 0x9b2   :  { %p5271_p7 = pnand %p5269_p6, %p5266_p5 }
 0x9b4   :  { %5274 = shalt.err (!%p5271_p7)
}
 0x9b5   :  { %3863 = dma.vmem_to_hbm [thread:$0]  %s6569_s19, 128, %s6628_s8, [#allocation15]  }
 0x9b6   :  { %5281 = dma.done.wait [#allocation6], 1024  }
 0x9b7   :  { %5282 = vsyncadd [#allocation6], 4294966272 }
 0x9b8   :  { %5283 = dma.done.wait [#allocation15], 256  }
 0x9b9   :  { %5284 = vsyncadd [#allocation15], 4294967040 }
 0x9ba   :  { %3873 = vsyncpa [#allocation5], 1 }
 0x9bb   :  { %3874 = vsyncpa [#allocation8], 1 }
 0x9bc   :  { %3875 = vsyncpa [#allocation11], 1 }
 0x9bd   :  { %3876 = vsyncpa [#allocation6], 1 }
 0x9be   :  { %3877 = vsyncpa [#allocation15], 1 }

</bundles_post_ra>
